<compile_context>
chip_gen: v5e
topology: v5e:2x2
jax: 0.10.0
libtpu: 0.0.40
codegen_flags: <defaults>
</compile_context>

<pallas_src>
import functools
import math

import numpy as np
import jax
import jax.numpy as jnp
from jax.experimental import pallas as pl
from jax.experimental.pallas import tpu as pltpu


def _round_up(x, m):
    return ((x + m - 1) // m) * m


# ----------------------------- Pallas kernel --------------------------------

def _subtok_attn_kernel(x_ref, valid_ref, wqk_ref, bqk_ref, out_ref, qk_scr,
                        *, num_heads):
    """Per-word subtoken contribution coefficients, words-on-lanes layout.

    x_ref    : (S, H, TN)   padded subtoken embeddings (bf16/f32), words on lanes
    valid_ref: (S, TN)      1.0 where the subtoken row is non-padding (f32)
    wqk_ref  : (2H, H)      fused Q|K projection weight (= in_proj_weight[:2H])
    bqk_ref  : (2H, 1)      fused Q|K bias (f32)
    out_ref  : (S, TN)      contributions; key position on sublanes, words on lanes
    qk_scr   : (2H, S, TN)  f32 VMEM scratch holding projected Q|K for this tile
    """
    S, H, TN = x_ref.shape
    hd = H // num_heads
    scale = 1.0 / math.sqrt(hd)

    w = wqk_ref[...]                                   # (2H, H)
    b = bqk_ref[...]                                   # (2H, 1) f32

    # 1) Fused Q|K projection: one MXU matmul per subtoken position.
    #    Output columns = TN (lane-dense); rows = 2H.  f32 accumulation.
    for s in range(S):
        qk_scr[:, s, :] = (
            jnp.dot(w, x_ref[s], preferred_element_type=jnp.float32) + b)

    valid = valid_ref[...]                             # (S, TN) f32

    # 2) Scores on the VPU (contraction dim hd is tiny, MXU is the wrong tool).
    #    scores[j][h] is an (S_query, TN) tile -> full 128-lane occupancy.
    #    Head slicing happens on the leading (non-tiled) axis of the scratch,
    #    so there are no lane-dim relayouts and no jnp.stack.
    scores = [[None] * num_heads for _ in range(S)]
    for h in range(num_heads):
        qh = qk_scr[h * hd:(h + 1) * hd]               # (hd, S, TN)
        for j in range(S):
            khj = qk_scr[H + h * hd:H + (h + 1) * hd, j, :]   # (hd, TN)
            raw = jnp.sum(qh * khj[:, None, :], axis=0)       # (S, TN)
            scores[j][h] = raw * scale

    # Additive float masks (torch float attn_mask + float key_padding_mask):
    #   scores += pair(i,j) + valid(j) == (valid(i) + 1) * valid(j)
    for j in range(S):
        bias_j = (valid + 1.0) * valid[j]              # (S, TN)
        for h in range(num_heads):
            scores[j][h] = scores[j][h] + bias_j

    # 3) Softmax over keys j: j is an unrolled leading axis -> plain vreg
    #    max/add (no XLU lane reductions).  Reciprocals go to the EUP.
    m = [scores[0][h] for h in range(num_heads)]
    for j in range(1, S):
        for h in range(num_heads):
            m[h] = jnp.maximum(m[h], scores[j][h])
    e = [[jnp.exp(scores[j][h] - m[h]) for h in range(num_heads)]
         for j in range(S)]
    denom = [e[0][h] for h in range(num_heads)]
    for j in range(1, S):
        for h in range(num_heads):
            denom[h] = denom[h] + e[j][h]
    inv_denom = [pl.reciprocal(denom[h], approx=True) for h in range(num_heads)]

    # 4) Head-averaged probabilities, masked reduction over query positions
    #    (one sublane reduce per key j), and per-word normalization.
    inv_heads = 1.0 / num_heads
    mw = []
    for j in range(S):
        aw_j = e[j][0] * inv_denom[0]
        for h in range(1, num_heads):
            aw_j = aw_j + e[j][h] * inv_denom[h]
        aw_j = aw_j * inv_heads                        # (S, TN)
        pair_j = valid * valid[j]                      # (S, TN)
        mw.append(jnp.sum(pair_j * aw_j, axis=0))      # (TN,)
    tot = mw[0]
    for j in range(1, S):
        tot = tot + mw[j]
    inv_tot = pl.reciprocal(tot + 1e-8, approx=True)   # (TN,)
    for j in range(S):
        out_ref[j, :] = mw[j] * inv_tot                # lane-dense row stores


def subtok_contributions_pallas(flat, wqk_t, bqk, num_heads, *, tile_n=256,
                                use_bf16=True):
    """flat: (N, S, H) padded subtoken embeddings -> (N, S) contributions."""
    N, S, H = flat.shape
    assert tile_n % 128 == 0
    flat = flat.astype(jnp.float32)
    wqk_t = wqk_t.astype(jnp.float32)
    bqk = bqk.astype(jnp.float32)

    # Same padding-detection semantics as the original module, computed from the
    # f32 input BEFORE any bf16 cast (per review correctness note).
    valid = (jnp.sum(flat, axis=-1) != 0).astype(jnp.float32)     # (N, S)

    # Force grid >= 2 so ("parallel",) actually uses both v7x TensorCores; the
    # extra all-zero padding words are sliced away below (negligible work).
    n_pad = max(_round_up(max(N, 1), tile_n), 2 * tile_n)
    if n_pad != N:
        flat = jnp.pad(flat, ((0, n_pad - N), (0, 0), (0, 0)))
        valid = jnp.pad(valid, ((0, n_pad - N), (0, 0)))

    # Words-on-lanes layout for the whole kernel (wrapper-side layout plumbing).
    x_t = jnp.transpose(flat, (1, 2, 0))               # (S, H, n_pad)
    valid_t = jnp.transpose(valid, (1, 0))             # (S, n_pad)
    if use_bf16:
        x_t = x_t.astype(jnp.bfloat16)
        wqk_t = wqk_t.astype(jnp.bfloat16)

    kern = functools.partial(_subtok_attn_kernel, num_heads=num_heads)
    out = pl.pallas_call(
        kern,
        out_shape=jax.ShapeDtypeStruct((S, n_pad), jnp.float32),
        grid=(n_pad // tile_n,),
        in_specs=[
            pl.BlockSpec((S, H, tile_n), lambda i: (0, 0, i)),
            pl.BlockSpec((S, tile_n), lambda i: (0, i)),
            pl.BlockSpec((2 * H, H), lambda i: (0, 0)),
            pl.BlockSpec((2 * H, 1), lambda i: (0, 0)),
        ],
        out_specs=pl.BlockSpec((S, tile_n), lambda i: (0, i)),
        scratch_shapes=[pltpu.VMEM((2 * H, S, tile_n), jnp.float32)],
        compiler_params=pltpu.CompilerParams(
            dimension_semantics=("parallel",),
            vmem_limit_bytes=48 * 1024 * 1024),
    )(x_t, valid_t, wqk_t, bqk.reshape(2 * H, 1))
    return out[:, :N].T                                # (N, S)


# ------------------------------ host-side glue -------------------------------

def get_subtok_map(subtoken_positions, batch_size):
    word_tok_map = [[] for _ in range(batch_size)]
    for b in range(batch_size):
        if len(subtoken_positions[b]) > 0:
            subtoks = sorted(subtoken_positions[b])
            word_tok_map[b].append([subtoks[0] - 1, subtoks[0]])
            for i in range(1, len(subtoks)):
                if subtoks[i] != subtoks[i - 1] + 1:
                    word_tok_map[b].append([subtoks[i] - 1])
                word_tok_map[b][-1].append(subtoks[i])
    return word_tok_map


def build_subtokens(token_embeddings, word_tok_map):
    """Vectorized mirror of get_subtokens + pad_sequence: one gather -> (B, W, S, H)."""
    B, _, H = token_embeddings.shape
    lens = [len(m) for batch in word_tok_map for m in batch]
    S = max(lens) if lens else 1
    W = max(max((len(b) for b in word_tok_map), default=1), 1)
    tok_idx = np.zeros((B, W, S), dtype=np.int32)
    mask = np.zeros((B, W, S), dtype=np.float32)
    for b, mappings in enumerate(word_tok_map):
        for w, mapping in enumerate(mappings):
            tok_idx[b, w, :len(mapping)] = mapping
            mask[b, w, :len(mapping)] = 1.0
    batch_idx = np.arange(B, dtype=np.int32)[:, None, None]
    subtokens = token_embeddings[batch_idx, tok_idx] * jnp.asarray(mask)[..., None]
    return subtokens, S


def _merge_indices(word_tok_map):
    g_b, g_w, g_slot, g_tok, g_word = [], [], [], [], []
    head_b, head_t = [], []
    zero_b, zero_t = [], []
    wid = 0
    for b, mappings in enumerate(word_tok_map):
        for w, mapping in enumerate(mappings):
            for j, t in enumerate(mapping):
                g_b.append(b); g_w.append(w); g_slot.append(j)
                g_tok.append(t); g_word.append(wid)
            head_b.append(b); head_t.append(mapping[0])
            zero_b.extend([b] * (len(mapping) - 1))
            zero_t.extend(mapping[1:])
            wid += 1
    to = lambda a: np.asarray(a, np.int32)
    return (to(g_b), to(g_w), to(g_slot), to(g_tok), to(g_word),
            to(head_b), to(head_t), to(zero_b), to(zero_t), wid)


def merge_word_embeddings(token_embeddings, contrib, word_tok_map):
    """Vectorized merge: gather + segment_sum + two scatters (no per-word loop)."""
    (g_b, g_w, g_slot, g_tok, g_word,
     head_b, head_t, zero_b, zero_t, n_words) = _merge_indices(word_tok_map)
    if n_words == 0:
        return token_embeddings
    coeffs = contrib[g_b, g_w, g_slot]                       # (K,)
    gathered = token_embeddings[g_b, g_tok]                  # (K, H)
    merged = jax.ops.segment_sum(gathered * coeffs[:, None],
                                 jnp.asarray(g_word), num_segments=n_words)
    new_emb = token_embeddings
    if zero_t.size > 0:
        new_emb = new_emb.at[zero_b, zero_t].set(0.0)
    new_emb = new_emb.at[head_b, head_t].set(merged)
    return new_emb


def subtoken_merger_forward(token_embeddings, subtoken_positions, params,
                            num_heads, build_subtok_weights=True):
    B, _, H = token_embeddings.shape
    word_tok_map = get_subtok_map(subtoken_positions, B)
    subtokens, S = build_subtokens(token_embeddings, word_tok_map)   # (B, W, S, H)
    W = subtokens.shape[1]
    flat = subtokens.reshape(B * W, S, H)

    # torch MultiheadAttention: q|k = x @ in_proj_weight[:2H].T + in_proj_bias[:2H]
    # -> fused weight is simply in_proj_weight[:2H] (shape (2H, H)) in our layout.
    wqk_t = params['in_proj_weight'][:2 * H]
    bqk = params['in_proj_bias'][:2 * H]
    # V / out_proj never affect the returned attention weights.

    contrib = subtok_contributions_pallas(flat, wqk_t, bqk, num_heads)
    contrib = contrib.reshape(B, W, S)

    new_emb = merge_word_embeddings(token_embeddings, contrib, word_tok_map)

    subtok_weights = None
    if build_subtok_weights:
        # Optional host sync; production callers pass build_subtok_weights=False
        # to keep contrib on device and avoid blocking the pipeline.
        contrib_np = np.asarray(contrib)
        subtok_weights = []
        for b, mappings in enumerate(word_tok_map):
            if len(mappings) > 0:
                subtok_weights.append(
                    [contrib_np[b, w, :len(m)].tolist()
                     for w, m in enumerate(mappings)])
            else:
                subtok_weights.append([])
    return new_emb, subtok_weights, contrib


# ------------------------------ reference (jnp) -------------------------------

def contributions_ref(flat, wqk_t, bqk, num_heads, use_bf16=True):
    N, S, H = flat.shape
    hd = H // num_heads
    valid = (flat.sum(-1) != 0).astype(jnp.float32)
    pair = valid[:, :, None] * valid[:, None, :]
    add_bias = pair + valid[:, None, :]
    x = flat.astype(jnp.bfloat16) if use_bf16 else flat
    w = wqk_t.astype(jnp.bfloat16) if use_bf16 else wqk_t
    qk = jnp.einsum('nsd,cd->nsc', x, w,
                    preferred_element_type=jnp.float32) + bqk
    q = qk[..., :H].reshape(N, S, num_heads, hd).transpose(0, 2, 1, 3)
    k = qk[..., H:].reshape(N, S, num_heads, hd).transpose(0, 2, 1, 3)
    scores = jnp.einsum('nhqd,nhkd->nhqk', q, k,
                        precision=jax.lax.Precision.HIGHEST) / math.sqrt(hd)
    scores = scores + add_bias[:, None]
    p = jax.nn.softmax(scores, axis=-1)
    attn_w = p.mean(axis=1)
    mw = (pair * attn_w).sum(axis=1)
    return mw / (mw.sum(-1, keepdims=True) + 1e-8)


# ----------------------------------- main -------------------------------------

if __name__ == "__main__":
    HIDDEN = 32
    NUM_HEADS = 4
    BATCH = 2
    SEQ = 8

    key = jax.random.PRNGKey(0)
    k_emb, k_w, k_b, k_ow = jax.random.split(key, 4)

    token_embeddings = jax.random.normal(k_emb, (BATCH, SEQ, HIDDEN), jnp.float32)
    subtoken_positions = [[3, 4], [2, 3, 5]]

    limit = math.sqrt(6.0 / (3 * HIDDEN + HIDDEN))   # xavier_uniform bound
    params = {
        'in_proj_weight': jax.random.uniform(k_w, (3 * HIDDEN, HIDDEN), jnp.float32,
                                             -limit, limit),
        'in_proj_bias': 0.1 * jax.random.normal(k_b, (3 * HIDDEN,), jnp.float32),
        'out_proj_weight': jax.random.normal(k_ow, (HIDDEN, HIDDEN), jnp.float32) * 0.02,
        'out_proj_bias': jnp.zeros((HIDDEN,), jnp.float32),  # unused for attn weights
    }

    new_emb, subtok_weights, contrib = subtoken_merger_forward(
        token_embeddings, subtoken_positions, params, NUM_HEADS)
    new_emb = jax.block_until_ready(new_emb)
    contrib = jax.block_until_ready(contrib)

    # 1) Pallas hot path vs. plain-JAX reference (same bf16-cast projection;
    #    tolerance loosened for bf16 matmul + approx reciprocals).
    word_tok_map = get_subtok_map(subtoken_positions, BATCH)
    subtokens, S = build_subtokens(token_embeddings, word_tok_map)
    flat = subtokens.reshape(-1, S, HIDDEN)
    wqk_t = params['in_proj_weight'][:2 * HIDDEN]
    bqk = params['in_proj_bias'][:2 * HIDDEN]
    ref = contributions_ref(flat, wqk_t, bqk, NUM_HEADS,
                            use_bf16=True).reshape(contrib.shape)
    assert np.allclose(np.asarray(contrib), np.asarray(ref), atol=1e-2, rtol=1e-2)

    # 2) Vectorized merge vs. per-word loop reference (original module semantics).
    contrib_np = np.asarray(contrib)
    emb_np = np.asarray(token_embeddings)
    ref_emb = emb_np.copy()
    for b, mappings in enumerate(word_tok_map):
        for w, mapping in enumerate(mappings):
            co = contrib_np[b, w, :len(mapping)][:, None]
            unified = (emb_np[b, mapping] * co).sum(axis=0)
            ref_emb[b, mapping[0]] = unified
            for t in mapping[1:]:
                ref_emb[b, t] = 0.0
    assert np.allclose(np.asarray(new_emb), ref_emb, atol=1e-5, rtol=1e-5)
    assert new_emb.shape == token_embeddings.shape
    assert subtok_weights is not None and len(subtok_weights) == BATCH

    print("KERNEL_OK")
</pallas_src>

<mosaic_0001>
module attributes {stable_mosaic.version = 11 : i64} {
  func.func @_subtok_attn_kernel(%arg0: i32, %arg1: memref<3x32x256xbf16, #tpu.memory_space<vmem>>, %arg2: memref<3x256xf32, #tpu.memory_space<vmem>>, %arg3: memref<64x32xbf16, #tpu.memory_space<vmem>>, %arg4: memref<64x1xf32, #tpu.memory_space<vmem>>, %arg5: memref<3x256xf32, #tpu.memory_space<vmem>>, %arg6: memref<64x3x256xf32, #tpu.memory_space<vmem>>) attributes {dimension_semantics = [#tpu.dimension_semantics<parallel>], iteration_bounds = array<i64: 2>, scalar_prefetch = 0 : i64, scratch_operands = 1 : i64, tpu.core_type = #tpu.core_type<tc>, window_params = [{transform_indices = @transform_0, window_bounds = array<i64: 3, 32, 256>}, {transform_indices = @transform_1, window_bounds = array<i64: 3, 256>}, {pipeline_mode = #tpu.pipeline_mode<synchronous>, transform_indices = @transform_2, window_bounds = array<i64: 64, 32>}, {pipeline_mode = #tpu.pipeline_mode<synchronous>, transform_indices = @transform_3, window_bounds = array<i64: 64, 1>}, {transform_indices = @transform_4, window_bounds = array<i64: 3, 256>}]} {
    %c0 = arith.constant 0 : index
    %c0_0 = arith.constant 0 : index
    %0 = vector.load %arg3[%c0, %c0_0] : memref<64x32xbf16, #tpu.memory_space<vmem>>, vector<64x32xbf16>
    %c0_1 = arith.constant 0 : index
    %c0_2 = arith.constant 0 : index
    %1 = vector.load %arg4[%c0_1, %c0_2] : memref<64x1xf32, #tpu.memory_space<vmem>>, vector<64x1xf32>
    %c0_3 = arith.constant 0 : index
    %c0_4 = arith.constant 0 : index
    %c0_5 = arith.constant 0 : index
    %2 = vector.load %arg1[%c0_3, %c0_4, %c0_5] : memref<3x32x256xbf16, #tpu.memory_space<vmem>>, vector<1x32x256xbf16>
    %3 = vector.shape_cast %2 : vector<1x32x256xbf16> to vector<32x256xbf16>
    %cst = arith.constant dense<0.000000e+00> : vector<64x256xf32>
    %4 = tpu.matmul %0, %3, %cst {dimension_numbers = #tpu.dot_dimension_numbers<[1], [0], [0], [1], [0, 0, 1, 1], [], []>} : vector<64x32xbf16>, vector<32x256xbf16>, vector<64x256xf32> -> vector<64x256xf32>
    %5 = vector.broadcast %1 : vector<64x1xf32> to vector<64x256xf32>
    %6 = arith.addf %4, %5 : vector<64x256xf32>
    %c0_6 = arith.constant 0 : index
    %c0_7 = arith.constant 0 : index
    %c0_8 = arith.constant 0 : index
    %7 = vector.load %arg6[%c0_6, %c0_7, %c0_8] : memref<64x3x256xf32, #tpu.memory_space<vmem>>, vector<64x1x256xf32>
    %8 = vector.shape_cast %7 : vector<64x1x256xf32> to vector<64x256xf32>
    %9 = vector.shape_cast %6 : vector<64x256xf32> to vector<64x1x256xf32>
    tpu.vector_store %arg6[%c0_6, %c0_7, %c0_8], %9 {strides = array<i32>} : memref<64x3x256xf32, #tpu.memory_space<vmem>>, vector<64x1x256xf32>,
    %c1 = arith.constant 1 : index
    %c0_9 = arith.constant 0 : index
    %c0_10 = arith.constant 0 : index
    %10 = vector.load %arg1[%c1, %c0_9, %c0_10] : memref<3x32x256xbf16, #tpu.memory_space<vmem>>, vector<1x32x256xbf16>
    %11 = vector.shape_cast %10 : vector<1x32x256xbf16> to vector<32x256xbf16>
    %cst_11 = arith.constant dense<0.000000e+00> : vector<64x256xf32>
    %12 = tpu.matmul %0, %11, %cst_11 {dimension_numbers = #tpu.dot_dimension_numbers<[1], [0], [0], [1], [0, 0, 1, 1], [], []>} : vector<64x32xbf16>, vector<32x256xbf16>, vector<64x256xf32> -> vector<64x256xf32>
    %13 = vector.broadcast %1 : vector<64x1xf32> to vector<64x256xf32>
    %14 = arith.addf %12, %13 : vector<64x256xf32>
    %c0_12 = arith.constant 0 : index
    %c1_13 = arith.constant 1 : index
    %c0_14 = arith.constant 0 : index
    %15 = vector.load %arg6[%c0_12, %c1_13, %c0_14] : memref<64x3x256xf32, #tpu.memory_space<vmem>>, vector<64x1x256xf32>
    %16 = vector.shape_cast %15 : vector<64x1x256xf32> to vector<64x256xf32>
    %17 = vector.shape_cast %14 : vector<64x256xf32> to vector<64x1x256xf32>
    tpu.vector_store %arg6[%c0_12, %c1_13, %c0_14], %17 {strides = array<i32>} : memref<64x3x256xf32, #tpu.memory_space<vmem>>, vector<64x1x256xf32>,
    %c2 = arith.constant 2 : index
    %c0_15 = arith.constant 0 : index
    %c0_16 = arith.constant 0 : index
    %18 = vector.load %arg1[%c2, %c0_15, %c0_16] : memref<3x32x256xbf16, #tpu.memory_space<vmem>>, vector<1x32x256xbf16>
    %19 = vector.shape_cast %18 : vector<1x32x256xbf16> to vector<32x256xbf16>
    %cst_17 = arith.constant dense<0.000000e+00> : vector<64x256xf32>
    %20 = tpu.matmul %0, %19, %cst_17 {dimension_numbers = #tpu.dot_dimension_numbers<[1], [0], [0], [1], [0, 0, 1, 1], [], []>} : vector<64x32xbf16>, vector<32x256xbf16>, vector<64x256xf32> -> vector<64x256xf32>
    %21 = vector.broadcast %1 : vector<64x1xf32> to vector<64x256xf32>
    %22 = arith.addf %20, %21 : vector<64x256xf32>
    %c0_18 = arith.constant 0 : index
    %c2_19 = arith.constant 2 : index
    %c0_20 = arith.constant 0 : index
    %23 = vector.load %arg6[%c0_18, %c2_19, %c0_20] : memref<64x3x256xf32, #tpu.memory_space<vmem>>, vector<64x1x256xf32>
    %24 = vector.shape_cast %23 : vector<64x1x256xf32> to vector<64x256xf32>
    %25 = vector.shape_cast %22 : vector<64x256xf32> to vector<64x1x256xf32>
    tpu.vector_store %arg6[%c0_18, %c2_19, %c0_20], %25 {strides = array<i32>} : memref<64x3x256xf32, #tpu.memory_space<vmem>>, vector<64x1x256xf32>,
    %c0_21 = arith.constant 0 : index
    %c0_22 = arith.constant 0 : index
    %26 = vector.load %arg2[%c0_21, %c0_22] : memref<3x256xf32, #tpu.memory_space<vmem>>, vector<3x256xf32>
    %c0_23 = arith.constant 0 : index
    %c0_24 = arith.constant 0 : index
    %c0_25 = arith.constant 0 : index
    %27 = vector.load %arg6[%c0_23, %c0_24, %c0_25] : memref<64x3x256xf32, #tpu.memory_space<vmem>>, vector<8x3x256xf32>
    %c32 = arith.constant 32 : index
    %c0_26 = arith.constant 0 : index
    %c0_27 = arith.constant 0 : index
    %28 = vector.load %arg6[%c32, %c0_26, %c0_27] : memref<64x3x256xf32, #tpu.memory_space<vmem>>, vector<8x1x256xf32>
    %29 = vector.shape_cast %28 : vector<8x1x256xf32> to vector<8x256xf32>
    %30 = vector.shape_cast %29 : vector<8x256xf32> to vector<8x1x256xf32>
    %31 = vector.broadcast %30 : vector<8x1x256xf32> to vector<8x3x256xf32>
    %32 = arith.mulf %27, %31 : vector<8x3x256xf32>
    %cst_28 = arith.constant dense<0.000000e+00> : vector<3x256xf32>
    %33 = vector.multi_reduction <add>, %32, %cst_28 [0] : vector<8x3x256xf32> to vector<3x256xf32>
    %cst_29 = arith.constant 0.353553385 : f32
    %34 = vector.broadcast %cst_29 : f32 to vector<3x256xf32>
    %35 = arith.mulf %33, %34 : vector<3x256xf32>
    %c32_30 = arith.constant 32 : index
    %c1_31 = arith.constant 1 : index
    %c0_32 = arith.constant 0 : index
    %36 = vector.load %arg6[%c32_30, %c1_31, %c0_32] : memref<64x3x256xf32, #tpu.memory_space<vmem>>, vector<8x1x256xf32>
    %37 = vector.shape_cast %36 : vector<8x1x256xf32> to vector<8x256xf32>
    %38 = vector.shape_cast %37 : vector<8x256xf32> to vector<8x1x256xf32>
    %39 = vector.broadcast %38 : vector<8x1x256xf32> to vector<8x3x256xf32>
    %40 = arith.mulf %27, %39 : vector<8x3x256xf32>
    %cst_33 = arith.constant dense<0.000000e+00> : vector<3x256xf32>
    %41 = vector.multi_reduction <add>, %40, %cst_33 [0] : vector<8x3x256xf32> to vector<3x256xf32>
    %cst_34 = arith.constant 0.353553385 : f32
    %42 = vector.broadcast %cst_34 : f32 to vector<3x256xf32>
    %43 = arith.mulf %41, %42 : vector<3x256xf32>
    %c32_35 = arith.constant 32 : index
    %c2_36 = arith.constant 2 : index
    %c0_37 = arith.constant 0 : index
    %44 = vector.load %arg6[%c32_35, %c2_36, %c0_37] : memref<64x3x256xf32, #tpu.memory_space<vmem>>, vector<8x1x256xf32>
    %45 = vector.shape_cast %44 : vector<8x1x256xf32> to vector<8x256xf32>
    %46 = vector.shape_cast %45 : vector<8x256xf32> to vector<8x1x256xf32>
    %47 = vector.broadcast %46 : vector<8x1x256xf32> to vector<8x3x256xf32>
    %48 = arith.mulf %27, %47 : vector<8x3x256xf32>
    %cst_38 = arith.constant dense<0.000000e+00> : vector<3x256xf32>
    %49 = vector.multi_reduction <add>, %48, %cst_38 [0] : vector<8x3x256xf32> to vector<3x256xf32>
    %cst_39 = arith.constant 0.353553385 : f32
    %50 = vector.broadcast %cst_39 : f32 to vector<3x256xf32>
    %51 = arith.mulf %49, %50 : vector<3x256xf32>
    %c8 = arith.constant 8 : index
    %c0_40 = arith.constant 0 : index
    %c0_41 = arith.constant 0 : index
    %52 = vector.load %arg6[%c8, %c0_40, %c0_41] : memref<64x3x256xf32, #tpu.memory_space<vmem>>, vector<8x3x256xf32>
    %c40 = arith.constant 40 : index
    %c0_42 = arith.constant 0 : index
    %c0_43 = arith.constant 0 : index
    %53 = vector.load %arg6[%c40, %c0_42, %c0_43] : memref<64x3x256xf32, #tpu.memory_space<vmem>>, vector<8x1x256xf32>
    %54 = vector.shape_cast %53 : vector<8x1x256xf32> to vector<8x256xf32>
    %55 = vector.shape_cast %54 : vector<8x256xf32> to vector<8x1x256xf32>
    %56 = vector.broadcast %55 : vector<8x1x256xf32> to vector<8x3x256xf32>
    %57 = arith.mulf %52, %56 : vector<8x3x256xf32>
    %cst_44 = arith.constant dense<0.000000e+00> : vector<3x256xf32>
    %58 = vector.multi_reduction <add>, %57, %cst_44 [0] : vector<8x3x256xf32> to vector<3x256xf32>
    %cst_45 = arith.constant 0.353553385 : f32
    %59 = vector.broadcast %cst_45 : f32 to vector<3x256xf32>
    %60 = arith.mulf %58, %59 : vector<3x256xf32>
    %c40_46 = arith.constant 40 : index
    %c1_47 = arith.constant 1 : index
    %c0_48 = arith.constant 0 : index
    %61 = vector.load %arg6[%c40_46, %c1_47, %c0_48] : memref<64x3x256xf32, #tpu.memory_space<vmem>>, vector<8x1x256xf32>
    %62 = vector.shape_cast %61 : vector<8x1x256xf32> to vector<8x256xf32>
    %63 = vector.shape_cast %62 : vector<8x256xf32> to vector<8x1x256xf32>
    %64 = vector.broadcast %63 : vector<8x1x256xf32> to vector<8x3x256xf32>
    %65 = arith.mulf %52, %64 : vector<8x3x256xf32>
    %cst_49 = arith.constant dense<0.000000e+00> : vector<3x256xf32>
    %66 = vector.multi_reduction <add>, %65, %cst_49 [0] : vector<8x3x256xf32> to vector<3x256xf32>
    %cst_50 = arith.constant 0.353553385 : f32
    %67 = vector.broadcast %cst_50 : f32 to vector<3x256xf32>
    %68 = arith.mulf %66, %67 : vector<3x256xf32>
    %c40_51 = arith.constant 40 : index
    %c2_52 = arith.constant 2 : index
    %c0_53 = arith.constant 0 : index
    %69 = vector.load %arg6[%c40_51, %c2_52, %c0_53] : memref<64x3x256xf32, #tpu.memory_space<vmem>>, vector<8x1x256xf32>
    %70 = vector.shape_cast %69 : vector<8x1x256xf32> to vector<8x256xf32>
    %71 = vector.shape_cast %70 : vector<8x256xf32> to vector<8x1x256xf32>
    %72 = vector.broadcast %71 : vector<8x1x256xf32> to vector<8x3x256xf32>
    %73 = arith.mulf %52, %72 : vector<8x3x256xf32>
    %cst_54 = arith.constant dense<0.000000e+00> : vector<3x256xf32>
    %74 = vector.multi_reduction <add>, %73, %cst_54 [0] : vector<8x3x256xf32> to vector<3x256xf32>
    %cst_55 = arith.constant 0.353553385 : f32
    %75 = vector.broadcast %cst_55 : f32 to vector<3x256xf32>
    %76 = arith.mulf %74, %75 : vector<3x256xf32>
    %c16 = arith.constant 16 : index
    %c0_56 = arith.constant 0 : index
    %c0_57 = arith.constant 0 : index
    %77 = vector.load %arg6[%c16, %c0_56, %c0_57] : memref<64x3x256xf32, #tpu.memory_space<vmem>>, vector<8x3x256xf32>
    %c48 = arith.constant 48 : index
    %c0_58 = arith.constant 0 : index
    %c0_59 = arith.constant 0 : index
    %78 = vector.load %arg6[%c48, %c0_58, %c0_59] : memref<64x3x256xf32, #tpu.memory_space<vmem>>, vector<8x1x256xf32>
    %79 = vector.shape_cast %78 : vector<8x1x256xf32> to vector<8x256xf32>
    %80 = vector.shape_cast %79 : vector<8x256xf32> to vector<8x1x256xf32>
    %81 = vector.broadcast %80 : vector<8x1x256xf32> to vector<8x3x256xf32>
    %82 = arith.mulf %77, %81 : vector<8x3x256xf32>
    %cst_60 = arith.constant dense<0.000000e+00> : vector<3x256xf32>
    %83 = vector.multi_reduction <add>, %82, %cst_60 [0] : vector<8x3x256xf32> to vector<3x256xf32>
    %cst_61 = arith.constant 0.353553385 : f32
    %84 = vector.broadcast %cst_61 : f32 to vector<3x256xf32>
    %85 = arith.mulf %83, %84 : vector<3x256xf32>
    %c48_62 = arith.constant 48 : index
    %c1_63 = arith.constant 1 : index
    %c0_64 = arith.constant 0 : index
    %86 = vector.load %arg6[%c48_62, %c1_63, %c0_64] : memref<64x3x256xf32, #tpu.memory_space<vmem>>, vector<8x1x256xf32>
    %87 = vector.shape_cast %86 : vector<8x1x256xf32> to vector<8x256xf32>
    %88 = vector.shape_cast %87 : vector<8x256xf32> to vector<8x1x256xf32>
    %89 = vector.broadcast %88 : vector<8x1x256xf32> to vector<8x3x256xf32>
    %90 = arith.mulf %77, %89 : vector<8x3x256xf32>
    %cst_65 = arith.constant dense<0.000000e+00> : vector<3x256xf32>
    %91 = vector.multi_reduction <add>, %90, %cst_65 [0] : vector<8x3x256xf32> to vector<3x256xf32>
    %cst_66 = arith.constant 0.353553385 : f32
    %92 = vector.broadcast %cst_66 : f32 to vector<3x256xf32>
    %93 = arith.mulf %91, %92 : vector<3x256xf32>
    %c48_67 = arith.constant 48 : index
    %c2_68 = arith.constant 2 : index
    %c0_69 = arith.constant 0 : index
    %94 = vector.load %arg6[%c48_67, %c2_68, %c0_69] : memref<64x3x256xf32, #tpu.memory_space<vmem>>, vector<8x1x256xf32>
    %95 = vector.shape_cast %94 : vector<8x1x256xf32> to vector<8x256xf32>
    %96 = vector.shape_cast %95 : vector<8x256xf32> to vector<8x1x256xf32>
    %97 = vector.broadcast %96 : vector<8x1x256xf32> to vector<8x3x256xf32>
    %98 = arith.mulf %77, %97 : vector<8x3x256xf32>
    %cst_70 = arith.constant dense<0.000000e+00> : vector<3x256xf32>
    %99 = vector.multi_reduction <add>, %98, %cst_70 [0] : vector<8x3x256xf32> to vector<3x256xf32>
    %cst_71 = arith.constant 0.353553385 : f32
    %100 = vector.broadcast %cst_71 : f32 to vector<3x256xf32>
    %101 = arith.mulf %99, %100 : vector<3x256xf32>
    %c24 = arith.constant 24 : index
    %c0_72 = arith.constant 0 : index
    %c0_73 = arith.constant 0 : index
    %102 = vector.load %arg6[%c24, %c0_72, %c0_73] : memref<64x3x256xf32, #tpu.memory_space<vmem>>, vector<8x3x256xf32>
    %c56 = arith.constant 56 : index
    %c0_74 = arith.constant 0 : index
    %c0_75 = arith.constant 0 : index
    %103 = vector.load %arg6[%c56, %c0_74, %c0_75] : memref<64x3x256xf32, #tpu.memory_space<vmem>>, vector<8x1x256xf32>
    %104 = vector.shape_cast %103 : vector<8x1x256xf32> to vector<8x256xf32>
    %105 = vector.shape_cast %104 : vector<8x256xf32> to vector<8x1x256xf32>
    %106 = vector.broadcast %105 : vector<8x1x256xf32> to vector<8x3x256xf32>
    %107 = arith.mulf %102, %106 : vector<8x3x256xf32>
    %cst_76 = arith.constant dense<0.000000e+00> : vector<3x256xf32>
    %108 = vector.multi_reduction <add>, %107, %cst_76 [0] : vector<8x3x256xf32> to vector<3x256xf32>
    %cst_77 = arith.constant 0.353553385 : f32
    %109 = vector.broadcast %cst_77 : f32 to vector<3x256xf32>
    %110 = arith.mulf %108, %109 : vector<3x256xf32>
    %c56_78 = arith.constant 56 : index
    %c1_79 = arith.constant 1 : index
    %c0_80 = arith.constant 0 : index
    %111 = vector.load %arg6[%c56_78, %c1_79, %c0_80] : memref<64x3x256xf32, #tpu.memory_space<vmem>>, vector<8x1x256xf32>
    %112 = vector.shape_cast %111 : vector<8x1x256xf32> to vector<8x256xf32>
    %113 = vector.shape_cast %112 : vector<8x256xf32> to vector<8x1x256xf32>
    %114 = vector.broadcast %113 : vector<8x1x256xf32> to vector<8x3x256xf32>
    %115 = arith.mulf %102, %114 : vector<8x3x256xf32>
    %cst_81 = arith.constant dense<0.000000e+00> : vector<3x256xf32>
    %116 = vector.multi_reduction <add>, %115, %cst_81 [0] : vector<8x3x256xf32> to vector<3x256xf32>
    %cst_82 = arith.constant 0.353553385 : f32
    %117 = vector.broadcast %cst_82 : f32 to vector<3x256xf32>
    %118 = arith.mulf %116, %117 : vector<3x256xf32>
    %c56_83 = arith.constant 56 : index
    %c2_84 = arith.constant 2 : index
    %c0_85 = arith.constant 0 : index
    %119 = vector.load %arg6[%c56_83, %c2_84, %c0_85] : memref<64x3x256xf32, #tpu.memory_space<vmem>>, vector<8x1x256xf32>
    %120 = vector.shape_cast %119 : vector<8x1x256xf32> to vector<8x256xf32>
    %121 = vector.shape_cast %120 : vector<8x256xf32> to vector<8x1x256xf32>
    %122 = vector.broadcast %121 : vector<8x1x256xf32> to vector<8x3x256xf32>
    %123 = arith.mulf %102, %122 : vector<8x3x256xf32>
    %cst_86 = arith.constant dense<0.000000e+00> : vector<3x256xf32>
    %124 = vector.multi_reduction <add>, %123, %cst_86 [0] : vector<8x3x256xf32> to vector<3x256xf32>
    %cst_87 = arith.constant 0.353553385 : f32
    %125 = vector.broadcast %cst_87 : f32 to vector<3x256xf32>
    %126 = arith.mulf %124, %125 : vector<3x256xf32>
    %cst_88 = arith.constant 1.000000e+00 : f32
    %127 = vector.broadcast %cst_88 : f32 to vector<3x256xf32>
    %128 = arith.addf %26, %127 : vector<3x256xf32>
    %129 = vector.extract_strided_slice %26 {offsets = [0, 0], sizes = [1, 256], strides = [1, 1]} : vector<3x256xf32> to vector<1x256xf32>
    %130 = vector.shape_cast %129 : vector<1x256xf32> to vector<256xf32>
    %131 = vector.shape_cast %130 : vector<256xf32> to vector<1x256xf32>
    %132 = vector.broadcast %131 : vector<1x256xf32> to vector<3x256xf32>
    %133 = arith.mulf %128, %132 : vector<3x256xf32>
    %134 = arith.addf %35, %133 : vector<3x256xf32>
    %135 = arith.addf %60, %133 : vector<3x256xf32>
    %136 = arith.addf %85, %133 : vector<3x256xf32>
    %137 = arith.addf %110, %133 : vector<3x256xf32>
    %cst_89 = arith.constant 1.000000e+00 : f32
    %138 = vector.broadcast %cst_89 : f32 to vector<3x256xf32>
    %139 = arith.addf %26, %138 : vector<3x256xf32>
    %140 = vector.extract_strided_slice %26 {offsets = [1, 0], sizes = [1, 256], strides = [1, 1]} : vector<3x256xf32> to vector<1x256xf32>
    %141 = vector.shape_cast %140 : vector<1x256xf32> to vector<256xf32>
    %142 = vector.shape_cast %141 : vector<256xf32> to vector<1x256xf32>
    %143 = vector.broadcast %142 : vector<1x256xf32> to vector<3x256xf32>
    %144 = arith.mulf %139, %143 : vector<3x256xf32>
    %145 = arith.addf %43, %144 : vector<3x256xf32>
    %146 = arith.addf %68, %144 : vector<3x256xf32>
    %147 = arith.addf %93, %144 : vector<3x256xf32>
    %148 = arith.addf %118, %144 : vector<3x256xf32>
    %cst_90 = arith.constant 1.000000e+00 : f32
    %149 = vector.broadcast %cst_90 : f32 to vector<3x256xf32>
    %150 = arith.addf %26, %149 : vector<3x256xf32>
    %151 = vector.extract_strided_slice %26 {offsets = [2, 0], sizes = [1, 256], strides = [1, 1]} : vector<3x256xf32> to vector<1x256xf32>
    %152 = vector.shape_cast %151 : vector<1x256xf32> to vector<256xf32>
    %153 = vector.shape_cast %152 : vector<256xf32> to vector<1x256xf32>
    %154 = vector.broadcast %153 : vector<1x256xf32> to vector<3x256xf32>
    %155 = arith.mulf %150, %154 : vector<3x256xf32>
    %156 = arith.addf %51, %155 : vector<3x256xf32>
    %157 = arith.addf %76, %155 : vector<3x256xf32>
    %158 = arith.addf %101, %155 : vector<3x256xf32>
    %159 = arith.addf %126, %155 : vector<3x256xf32>
    %160 = arith.maximumf %134, %145 : vector<3x256xf32>
    %161 = arith.maximumf %135, %146 : vector<3x256xf32>
    %162 = arith.maximumf %136, %147 : vector<3x256xf32>
    %163 = arith.maximumf %137, %148 : vector<3x256xf32>
    %164 = arith.maximumf %160, %156 : vector<3x256xf32>
    %165 = arith.maximumf %161, %157 : vector<3x256xf32>
    %166 = arith.maximumf %162, %158 : vector<3x256xf32>
    %167 = arith.maximumf %163, %159 : vector<3x256xf32>
    %168 = arith.subf %134, %164 : vector<3x256xf32>
    %169 = math.exp %168 : vector<3x256xf32>
    %170 = arith.subf %135, %165 : vector<3x256xf32>
    %171 = math.exp %170 : vector<3x256xf32>
    %172 = arith.subf %136, %166 : vector<3x256xf32>
    %173 = math.exp %172 : vector<3x256xf32>
    %174 = arith.subf %137, %167 : vector<3x256xf32>
    %175 = math.exp %174 : vector<3x256xf32>
    %176 = arith.subf %145, %164 : vector<3x256xf32>
    %177 = math.exp %176 : vector<3x256xf32>
    %178 = arith.subf %146, %165 : vector<3x256xf32>
    %179 = math.exp %178 : vector<3x256xf32>
    %180 = arith.subf %147, %166 : vector<3x256xf32>
    %181 = math.exp %180 : vector<3x256xf32>
    %182 = arith.subf %148, %167 : vector<3x256xf32>
    %183 = math.exp %182 : vector<3x256xf32>
    %184 = arith.subf %156, %164 : vector<3x256xf32>
    %185 = math.exp %184 : vector<3x256xf32>
    %186 = arith.subf %157, %165 : vector<3x256xf32>
    %187 = math.exp %186 : vector<3x256xf32>
    %188 = arith.subf %158, %166 : vector<3x256xf32>
    %189 = math.exp %188 : vector<3x256xf32>
    %190 = arith.subf %159, %167 : vector<3x256xf32>
    %191 = math.exp %190 : vector<3x256xf32>
    %192 = arith.addf %169, %177 : vector<3x256xf32>
    %193 = arith.addf %171, %179 : vector<3x256xf32>
    %194 = arith.addf %173, %181 : vector<3x256xf32>
    %195 = arith.addf %175, %183 : vector<3x256xf32>
    %196 = arith.addf %192, %185 : vector<3x256xf32>
    %197 = arith.addf %193, %187 : vector<3x256xf32>
    %198 = arith.addf %194, %189 : vector<3x256xf32>
    %199 = arith.addf %195, %191 : vector<3x256xf32>
    %200 = tpu.reciprocal %196 {approx = true} : vector<3x256xf32> -> vector<3x256xf32>
    %201 = tpu.reciprocal %197 {approx = true} : vector<3x256xf32> -> vector<3x256xf32>
    %202 = tpu.reciprocal %198 {approx = true} : vector<3x256xf32> -> vector<3x256xf32>
    %203 = tpu.reciprocal %199 {approx = true} : vector<3x256xf32> -> vector<3x256xf32>
    %204 = arith.mulf %169, %200 : vector<3x256xf32>
    %205 = arith.mulf %171, %201 : vector<3x256xf32>
    %206 = arith.addf %204, %205 : vector<3x256xf32>
    %207 = arith.mulf %173, %202 : vector<3x256xf32>
    %208 = arith.addf %206, %207 : vector<3x256xf32>
    %209 = arith.mulf %175, %203 : vector<3x256xf32>
    %210 = arith.addf %208, %209 : vector<3x256xf32>
    %cst_91 = arith.constant 2.500000e-01 : f32
    %211 = vector.broadcast %cst_91 : f32 to vector<3x256xf32>
    %212 = arith.mulf %210, %211 : vector<3x256xf32>
    %213 = vector.extract_strided_slice %26 {offsets = [0, 0], sizes = [1, 256], strides = [1, 1]} : vector<3x256xf32> to vector<1x256xf32>
    %214 = vector.shape_cast %213 : vector<1x256xf32> to vector<256xf32>
    %215 = vector.shape_cast %214 : vector<256xf32> to vector<1x256xf32>
    %216 = vector.broadcast %215 : vector<1x256xf32> to vector<3x256xf32>
    %217 = arith.mulf %26, %216 : vector<3x256xf32>
    %218 = arith.mulf %217, %212 : vector<3x256xf32>
    %cst_92 = arith.constant dense<0.000000e+00> : vector<256xf32>
    %219 = vector.multi_reduction <add>, %218, %cst_92 [0] : vector<3x256xf32> to vector<256xf32>
    %220 = arith.mulf %177, %200 : vector<3x256xf32>
    %221 = arith.mulf %179, %201 : vector<3x256xf32>
    %222 = arith.addf %220, %221 : vector<3x256xf32>
    %223 = arith.mulf %181, %202 : vector<3x256xf32>
    %224 = arith.addf %222, %223 : vector<3x256xf32>
    %225 = arith.mulf %183, %203 : vector<3x256xf32>
    %226 = arith.addf %224, %225 : vector<3x256xf32>
    %cst_93 = arith.constant 2.500000e-01 : f32
    %227 = vector.broadcast %cst_93 : f32 to vector<3x256xf32>
    %228 = arith.mulf %226, %227 : vector<3x256xf32>
    %229 = vector.extract_strided_slice %26 {offsets = [1, 0], sizes = [1, 256], strides = [1, 1]} : vector<3x256xf32> to vector<1x256xf32>
    %230 = vector.shape_cast %229 : vector<1x256xf32> to vector<256xf32>
    %231 = vector.shape_cast %230 : vector<256xf32> to vector<1x256xf32>
    %232 = vector.broadcast %231 : vector<1x256xf32> to vector<3x256xf32>
    %233 = arith.mulf %26, %232 : vector<3x256xf32>
    %234 = arith.mulf %233, %228 : vector<3x256xf32>
    %cst_94 = arith.constant dense<0.000000e+00> : vector<256xf32>
    %235 = vector.multi_reduction <add>, %234, %cst_94 [0] : vector<3x256xf32> to vector<256xf32>
    %236 = arith.mulf %185, %200 : vector<3x256xf32>
    %237 = arith.mulf %187, %201 : vector<3x256xf32>
    %238 = arith.addf %236, %237 : vector<3x256xf32>
    %239 = arith.mulf %189, %202 : vector<3x256xf32>
    %240 = arith.addf %238, %239 : vector<3x256xf32>
    %241 = arith.mulf %191, %203 : vector<3x256xf32>
    %242 = arith.addf %240, %241 : vector<3x256xf32>
    %cst_95 = arith.constant 2.500000e-01 : f32
    %243 = vector.broadcast %cst_95 : f32 to vector<3x256xf32>
    %244 = arith.mulf %242, %243 : vector<3x256xf32>
    %245 = vector.extract_strided_slice %26 {offsets = [2, 0], sizes = [1, 256], strides = [1, 1]} : vector<3x256xf32> to vector<1x256xf32>
    %246 = vector.shape_cast %245 : vector<1x256xf32> to vector<256xf32>
    %247 = vector.shape_cast %246 : vector<256xf32> to vector<1x256xf32>
    %248 = vector.broadcast %247 : vector<1x256xf32> to vector<3x256xf32>
    %249 = arith.mulf %26, %248 : vector<3x256xf32>
    %250 = arith.mulf %249, %244 : vector<3x256xf32>
    %cst_96 = arith.constant dense<0.000000e+00> : vector<256xf32>
    %251 = vector.multi_reduction <add>, %250, %cst_96 [0] : vector<3x256xf32> to vector<256xf32>
    %252 = arith.addf %219, %235 : vector<256xf32>
    %253 = arith.addf %252, %251 : vector<256xf32>
    %cst_97 = arith.constant 9.99999993E-9 : f32
    %254 = vector.broadcast %cst_97 : f32 to vector<256xf32>
    %255 = arith.addf %253, %254 : vector<256xf32>
    %256 = tpu.reciprocal %255 {approx = true} : vector<256xf32> -> vector<256xf32>
    %257 = arith.mulf %219, %256 : vector<256xf32>
    %c0_98 = arith.constant 0 : index
    %c0_99 = arith.constant 0 : index
    %258 = vector.load %arg5[%c0_98, %c0_99] : memref<3x256xf32, #tpu.memory_space<vmem>>, vector<1x256xf32>
    %259 = vector.shape_cast %258 : vector<1x256xf32> to vector<256xf32>
    %260 = vector.shape_cast %257 : vector<256xf32> to vector<1x256xf32>
    tpu.vector_store %arg5[%c0_98, %c0_99], %260 {strides = array<i32>} : memref<3x256xf32, #tpu.memory_space<vmem>>, vector<1x256xf32>,
    %261 = arith.mulf %235, %256 : vector<256xf32>
    %c1_100 = arith.constant 1 : index
    %c0_101 = arith.constant 0 : index
    %262 = vector.load %arg5[%c1_100, %c0_101] : memref<3x256xf32, #tpu.memory_space<vmem>>, vector<1x256xf32>
    %263 = vector.shape_cast %262 : vector<1x256xf32> to vector<256xf32>
    %264 = vector.shape_cast %261 : vector<256xf32> to vector<1x256xf32>
    tpu.vector_store %arg5[%c1_100, %c0_101], %264 {strides = array<i32>} : memref<3x256xf32, #tpu.memory_space<vmem>>, vector<1x256xf32>,
    %265 = arith.mulf %251, %256 : vector<256xf32>
    %c2_102 = arith.constant 2 : index
    %c0_103 = arith.constant 0 : index
    %266 = vector.load %arg5[%c2_102, %c0_103] : memref<3x256xf32, #tpu.memory_space<vmem>>, vector<1x256xf32>
    %267 = vector.shape_cast %266 : vector<1x256xf32> to vector<256xf32>
    %268 = vector.shape_cast %265 : vector<256xf32> to vector<1x256xf32>
    tpu.vector_store %arg5[%c2_102, %c0_103], %268 {strides = array<i32>} : memref<3x256xf32, #tpu.memory_space<vmem>>, vector<1x256xf32>,
    return
  }
  func.func @transform_0(%arg0: i32) -> (i32, i32, i32) {
    %c0_i32 = arith.constant 0 : i32
    %c0_i32_0 = arith.constant 0 : i32
    %c0_i32_1 = arith.constant 0 : i32
    return %c0_i32, %c0_i32_0, %arg0 : i32, i32, i32
  }
  func.func @transform_1(%arg0: i32) -> (i32, i32) {
    %c0_i32 = arith.constant 0 : i32
    %c0_i32_0 = arith.constant 0 : i32
    return %c0_i32, %arg0 : i32, i32
  }
  func.func @transform_2(%arg0: i32) -> (i32, i32) {
    %c0_i32 = arith.constant 0 : i32
    %c0_i32_0 = arith.constant 0 : i32
    %c0_i32_1 = arith.constant 0 : i32
    return %c0_i32, %c0_i32_0 : i32, i32
  }
  func.func @transform_3(%arg0: i32) -> (i32, i32) {
    %c0_i32 = arith.constant 0 : i32
    %c0_i32_0 = arith.constant 0 : i32
    %c0_i32_1 = arith.constant 0 : i32
    return %c0_i32, %c0_i32_0 : i32, i32
  }
  func.func @transform_4(%arg0: i32) -> (i32, i32) {
    %c0_i32 = arith.constant 0 : i32
    %c0_i32_0 = arith.constant 0 : i32
    return %c0_i32, %arg0 : i32, i32
  }
}

</mosaic_0001>

<bundles_post_ra>
// kernel: tpu_custom_call.1
= control target key start
LH: loop header
LB: loop body
LE: loop exit
PB: predicated region body
PF: predicated region fallthrough
CT: control target
= control target key end

     0   :  { %9 = vsyncpa [#allocation4], 0  ;;  %s6814_s0 = inlined_call_operand.hbm [shape: bf16[3,32,512], index: 0, kind: input, shape index: {}]   ;;  %s6815_s1 = inlined_call_operand.vmem [shape: f32[3,512], index: 1, kind: input, shape index: {}]   ;;  %s6816_s2 = inlined_call_operand.vmem [shape: bf16[64,32], index: 2, kind: input, shape index: {}]   ;;  %s6817_s3 = inlined_call_operand.vmem [shape: f32[64,1], index: 3, kind: input, shape index: {}]   ;;  %s6818_s4 = inlined_call_operand.hbm [shape: f32[3,512], index: 4, kind: output, shape index: {}]  }
   0x1   :  { %11 = vsyncpa [#allocation4 + $0x1], 0 }
   0x2   :  { %12 = vsyncpa [#allocation5], 0 }
   0x3   :  { %14 = vsyncpa [#allocation5 + $0x1], 0  ;;  %s4473_s15 = smov 0   ;;  %s4475_s16 = smov 0  }
   0x4   :  { %s4477_s17 = smov 0   ;;  %s4479_s18 = smov 0  }
   0x5 LB: > { %s4494_s19 = sadd.s32 4294967295, %s4442_s18   ;;  %s4088_s20 = sadd.s32 4294967294, %s4442_s18   ;;  %s4442_s18 = sphi %s4479_s18, %s7071_s18   ;;  %s4438_s17 = sphi %s4477_s17, %s7070_s17   ;;  %s4434_s16 = sphi %s4475_s16, %s7069_s16   ;;  %s4430_s15 = sphi %s4473_s15, %s7068_s15  }
   0x6   : > { %s4498_s21 = sadd.s32 1, %s4442_s18   ;;  %s27_s22 = sadd.s32 1, %s4438_s17 }
   0x7   : > { %s24_s23 = ssub.s32 %s4442_s18, %s4498_s21  ;;  %p34_p0 = scmp.ne.s32.totalorder %s4438_s17, %s4434_s16 }
   0x8   : > { %p25_p1 = scmp.eq.s32.totalorder %s24_s23, 0  ;;  %p35_p2 = scmp.eq.s32.totalorder %s4442_s18, 0 }
   0x9   : > { %p40_p3 = scmp.ne.s32.totalorder %s4434_s16, %s4430_s15  ;;  %p41_p4 = scmp.eq.s32.totalorder %s4494_s19, 0 }
   0xa   : > { %s4510_s24 = scalar_select %p25_p1, %s4438_s17, %s27_s22  }
   0xb   : > { %p36_p5 = por %p35_p2, %p34_p0  ;;  %p4512_p6 = por %p41_p4, %p40_p3 }
   0xc   : > { %p132_p7 = scmp.eq.s32.totalorder %s4494_s19, 1  ;;  %p138_p8 = scmp.eq.s32.totalorder %s4088_s20, 1 }
   0xd   : > { %p4090_p9 = scmp.ge.s32.totalorder %s4442_s18, 2  ;;  %p4236_p10 = scmp.lt.s32.totalorder %s4442_s18, 2 }
   0xe   : > { %p4519_p11 = por %p132_p7, %p34_p0  ;;  %p4523_p12 = por %p138_p8, %p40_p3 }
   0xf   : > { %s164_s28 = sand.u32 1, %s4438_s17   ;;  %s4200_s29 = sshll.u32 %s4442_s18, 3 }
  0x10   : > { %s4222_s30 = smul.u32 96, %s164_s28  ;;  %s173_s7 = scalar_lea.hbm %s6814_s0, %s4200_s29 }
  0x11   : > { %p4532_p13 = pnand %p4236_p10, %p36_p5  ;;  %s174_s9 = sshll.u32 %s173_s7, 4  ;;  %s175_s9 = int_to_ptr.hbm [resolvable:$true] %s174_s9 }
  0x12   : > { %s168_s10 = scalar_lea.vmem [#allocation3], %s4222_s30  ;;  %p4093_p0 = scmp.ge.s32.totalorder %s4442_s18, 1 }
  0x13   : > { %s176_s11 = sshll.u32 %s168_s10, 4  ;;  %s165_s12 = scalar_lea.sflag [#allocation4], %s164_s28  ;;  %s177_s11 = int_to_ptr.vmem [resolvable:$true] %s176_s11 }
  0x14   : > { %s4346_s13 = sshra.s32 %s175_s9, 4  ;;  %p4350_p2 = pneg %p4532_p13  ;;  %s4347_s13 = int_to_ptr.hbm [resolvable:$true] %s4346_s13 }
  0x15   : > { %s4348_s14 = scalar_lea.hbm %s4347_s13, 96  ;;  %s4353_s23 = scalar_lea.hbm %s6814_s0, 192 }
  0x16   : > { %p4349_p1 = scmp.ne.s32.totalorder %s4347_s13, %s4348_s14  ;;  %p4354_p5 = scmp.lt.s32.totalorder %s4347_s13, %s6814_s0 }
  0x17   : > { %p4355_p7 = scmp.lt.s32.totalorder %s4353_s23, %s4348_s14 }
  0x18   : > { %p4351_p3 = pnand %p4350_p2, %p4349_p1 }
  0x19   : > { %p4356_p8 = por %p4355_p7, %p4354_p5 }
  0x1a   : > { %p4352_p4 = pneg %p4351_p3 }
  0x1c   : > { %p4357_p10 = pnand %p4356_p8, %p4352_p4 }
  0x1e   : > { %4360 = shalt.err (!%p4357_p10)
}
  0x1f   : > { %s4444_s28 = smov 256   ;;  %s4445_s30 = smov 128  }
  0x20   : > { %s4446_s6 = smov 8   ;;  %p193_p1 = scmp.lt.s32.totalorder %s4442_s18, 3 }
  0x21   : > { %4231 = dma.hbm_to_vmem [thread:$0]  (!%p4532_p13), %s175_s9, 1536, %s177_s11, %s165_s12, %s4444_s28, %s4445_s30, %s4446_s6  }
  0x22   : > { %p194_p2 = pnand %p4093_p0, %p193_p1 }
  0x24   : > { %197 = sbr.rel (%p194_p2) target bundleno = 870 (0x366), region = 36 }
  0x29   : > { %s4551_s7 = sand.u32 1, %s4434_s16  }
  0x2a   : > { %s4223_s10 = smul.u32 96, %s4551_s7  ;;  %s200_s13 = scalar_lea.sflag [#allocation4], %s4551_s7 }
  0x2c   : > { %s4555_s14 = scalar_lea.vmem [#allocation3], %s4223_s10 }
  0x2d   : > { %4421 = dma.done.wait (%p4512_p6), %s200_s13, 1536  }
  0x2e   : > { %4423 = vsyncadd (%p4512_p6), %s200_s13, 4294965760  ;;  %v4447_v0 = vmov 0   ;;  %v4123_v1 = vld [vmem:[%s4555_s14 + $0x10] sm:$0xf]  ;;  %v4208_v2 = vld [vmem:[%s4555_s14 + $0x14] sm:$0xf0]  ;;  %v630_v50 = vlaneseq }
  0x2f   : > { %4274 = vset.pattern.permute.xlu0 %v4447_v0  ;;  %4275 = vset.pattern.permute.xlu1 %v4447_v0  ;;  %v4207_v3 = vld [vmem:[%s4555_s14 + $0x14] sm:$0xf]  ;;  %v4124_v4 = vor.u32 %v4208_v2, %v4123_v1  ;;  %v4125_v5 = vld [vmem:[%s4555_s14 + $0x18] sm:$0xf0]  ;;  %v4115_v6 = vld [vmem:[%s4555_s14] sm:$0xf] }
  0x30   : > { %4276 = vset.pattern.permute.xlu2 %v4447_v0  ;;  %v4206_v7 = vld [vmem:[%s4555_s14 + $0x4] sm:$0xf0]  ;;  %v4128_v8 = vor.u32 %v4207_v3, %v4125_v5  ;;  %v4205_v9 = vld [vmem:[%s4555_s14 + $0x4] sm:$0xf]  ;;  %v4117_v10 = vld [vmem:[%s4555_s14 + $0x8] sm:$0xf0] }
  0x31   : > { %362 = vmatpush.bf16.msra.mxu0 %v4124_v4  ;;  %4218 = vmatpush.bf16.msra.mxu2 %v4124_v4  ;;  %v4116_v11 = vor.u32 %v4206_v7, %v4115_v6  ;;  %v4211_v12 = vld [vmem:[%s4555_s14 + $0x34] sm:$0xf]  ;;  %v4153_v13 = vld [vmem:[%s4555_s14 + $0x38] sm:$0xf0]  ;;  %v4120_v14 = vor.u32 %v4205_v9, %v4117_v10  ;;  %v4151_v15 = vld [vmem:[%s4555_s14 + $0x30] sm:$0xf] }
  0x32   : > { %391 = vmatpush.bf16.msra.mxu1 %v4128_v8  ;;  %4220 = vmatpush.bf16.msra.mxu3 %v4128_v8  ;;  %v4212_v16 = vld [vmem:[%s4555_s14 + $0x34] sm:$0xf0]  ;;  %vm343_vm0 = vcmask 261120   ;;  %v4579_v18 = vld [vmem:[%s6816_s2 + $0x10] sm:$0xff]  ;;  %v4156_v19 = vor.u32 %v4211_v12, %v4153_v13  ;;  %v4209_v21 = vld [vmem:[%s4555_s14 + $0x24] sm:$0xf] }
  0x33   : > { %v4201_v17 = vld [vmem:[%s6816_s2] sm:$0xff]  ;;  %v4152_v20 = vor.u32 %v4212_v16, %v4151_v15  ;;  %v4145_v22 = vld [vmem:[%s4555_s14 + $0x28] sm:$0xf0]  ;;  %v4143_v23 = vld [vmem:[%s4555_s14 + $0x20] sm:$0xf]  ;;  %vm438_vm1 = vcmask 1040384  }
  0x34   : > { %v4210_v24 = vld [vmem:[%s4555_s14 + $0x24] sm:$0xf0]  ;;  %v4215_v25 = vld [vmem:[%s4555_s14 + $0x54] sm:$0xf]  ;;  %v4181_v26 = vld [vmem:[%s4555_s14 + $0x58] sm:$0xf0]  ;;  %v4148_v30 = vor.u32 %v4209_v21, %v4145_v22 }
  0x35   : > { %363 = vmatpush.bf16.msra.mxu0 %v4116_v11  ;;  %4219 = vmatpush.bf16.msra.mxu2 %v4116_v11  ;;  %v4179_v27 = vld [vmem:[%s4555_s14 + $0x50] sm:$0xf]  ;;  %v4184_v28 = vor.u32 %v4215_v25, %v4181_v26  ;;  %v4216_v29 = vld [vmem:[%s4555_s14 + $0x54] sm:$0xf0]  ;;  %v4144_v32 = vor.u32 %v4210_v24, %v4143_v23  ;;  %v4213_v33 = vld [vmem:[%s4555_s14 + $0x44] sm:$0xf] }
  0x36   : > { %392 = vmatpush.bf16.msra.mxu1 %v4120_v14  ;;  %4221 = vmatpush.bf16.msra.mxu3 %v4120_v14  ;;  %v255_v31 = vld [vmem:[%s6817_s3 + $0x20] sm:$0xff]  ;;  %v4173_v34 = vld [vmem:[%s4555_s14 + $0x48] sm:$0xf0]  ;;  %v4180_v35 = vor.u32 %v4216_v29, %v4179_v27  ;;  %v256_v36 = vld [vmem:[%s6817_s3 + $0x28] sm:$0xff]  ;;  %vm440_vm2 = vcmask 1041409   ;;  %vm443_vm3 = vcmask 1042434  }
  0x37   : > { %v4171_v37 = vld [vmem:[%s4555_s14 + $0x40] sm:$0xf]  ;;  %v4214_v38 = vld [vmem:[%s4555_s14 + $0x44] sm:$0xf0]  ;;  %285 = vperm.xlu0 %4274, %v255_v31   ;;  %v4176_v39 = vor.u32 %v4213_v33, %v4173_v34  ;;  %290 = vperm.xlu1 %4275, %v256_v36   ;;  %v251_v41 = vld [vmem:[%s6817_s3] sm:$0xff]  ;;  %vm446_vm4 = vcmask 1043459  }
  0x38   : > { %4129 = vmatmul.msk.bf16.vlgmr.msra.gmra.mxu0 %vm343_vm0, %v4201_v17  ;;  %4131 = vmatmul.msk.bf16.vlgmr.msra.gmra.mxu2 %vm343_vm0, %v4579_v18  ;;  %v4172_v40 = vor.u32 %v4214_v38, %v4171_v37  ;;  %v252_v42 = vld [vmem:[%s6817_s3 + $0x8] sm:$0xff]  ;;  %v4204_v44 = vld [vmem:[%s6816_s2 + $0x18] sm:$0xff]  ;;  %v257_v47 = vld [vmem:[%s6817_s3 + $0x30] sm:$0xff]  ;;  %vm449_vm5 = vcmask 1044484   ;;  %vm4657_vm6 = vcmp.lt.s32.totalorder %v630_v50, 256  ;;  %v6826_v56 = vmov 0 }
  0x39   : > { %792 = vmatpush.bf16.msrb.mxu2 %v4152_v20  ;;  %4133 = vmatmul.msk.bf16.vlgmr.msra.gmra.mxu1 %vm343_vm0, %v4201_v17  ;;  %v4202_v43 = vld [vmem:[%s6816_s2 + $0x8] sm:$0xff]  ;;  %v258_v45 = vld [vmem:[%s6817_s3 + $0x38] sm:$0xff]  ;;  %v253_v48 = vld [vmem:[%s6817_s3 + $0x10] sm:$0xff]  ;;  %v6827_v56 = vsel %vm4657_vm6, 4294967295, %v6826_v56  ;;  %vm452_vm7 = vcmask 1045509   ;;  %vm455_vm8 = vcmask 1046534  }
  0x3a   : > { %821 = vmatpush.bf16.msrb.mxu3 %v4156_v19  ;;  %1240 = vmatpush.bf16.msrb.mxu1 %v4184_v28  ;;  %v254_v46 = vld [vmem:[%s6817_s3 + $0x18] sm:$0xff]  ;;  %6828 = vst [vmem:[#allocation9_spill] sm:$0xff] %v6827_v56  ;;  %vm458_vm9 = vcmask 1046528   ;;  %vm1656_vm10 = vcmask 1043456   ;;  %vm1732_vm11 = vcmask 1042432   ;;  %s4095_s29 = sshll.u32 %s4494_s19, 1 }
  0x3b   : > { %4135 = vmatmul.msk.bf16.vlgmr.msra.gmra.mxu3 %vm343_vm0, %v4579_v18  ;;  %1211 = vmatpush.bf16.msrb.mxu0 %v4180_v35  ;;  %p6161_p6 = scmp.lt.s32.totalorder %s4095_s29, 3  ;;  %s4094_s13 = sshll.u32 %s4551_s7, 3 }
  0x3c   : > { %295 = vperm.xlu2 %4276, %v257_v47   ;;  %s4217_s14 = sshll.u32 %s4494_s19, 3  ;;  %s233_s11 = scalar_lea.vmem [#allocation6], %s4094_s13 }
  0x3d   : > { %793 = vmatpush.bf16.msrb.mxu2 %v4144_v32  ;;  %s7073_s29 = smov (!%p6161_p6, %s4095_s29), 3  ;;  %s3909_s9 = scalar_lea.hbm %s6818_s4, %s4217_s14 }
  0x3e   : > { %822 = vmatpush.bf16.msrb.mxu3 %v4148_v30  ;;  %1241 = vmatpush.bf16.msrb.mxu1 %v4176_v39  ;;  %s4096_s28 = sshll.u32 %s7073_s29, 2  ;;  %s3911_s12 = sshll.u32 %s233_s11, 4  ;;  %s3912_s12 = int_to_ptr.vmem [resolvable:$true] %s3911_s12 }
  0x3f   : > { %1212 = vmatpush.bf16.msrb.mxu0 %v4172_v40  ;;  %265 = vperm.xlu0 %4274, %v251_v41   ;;  %s6211_s10 = scalar_lea.vmem %s6815_s1, %s4096_s28  ;;  %s3913_s19 = sshll.u32 %s3909_s9, 4  ;;  %s3914_s19 = int_to_ptr.hbm [resolvable:$true] %s3913_s19 }
  0x40   : > { %270 = vperm.xlu1 %4275, %v252_v42   ;;  %s3898_s20 = scalar_lea.sflag [#allocation5], %s4551_s7  ;;  %s4390_s22 = sshra.s32 %s3914_s19, 4  ;;  %s4391_s22 = int_to_ptr.hbm [resolvable:$true] %s4390_s22 }
  0x41   : > { %s4392_s23 = scalar_lea.hbm %s4391_s22, 8  ;;  %s4396_s28 = scalar_lea.hbm %s6818_s4, 16 }
  0x42   : > { %p4393_p13 = scmp.ne.s32.totalorder %s4391_s22, %s4392_s23  ;;  %p4397_p4 = scmp.lt.s32.totalorder %s4391_s22, %s6818_s4 }
  0x43   : > { %p4398_p5 = scmp.lt.s32.totalorder %s4396_s28, %s4392_s23 }
  0x44   : > { %275 = vperm.xlu2 %4276, %v253_v48   ;;  %p4394_p0 = pnand %p4393_p13, %p4519_p11 }
  0x45   : > { %p4399_p7 = por %p4398_p5, %p4397_p4 }
  0x46   : > { %p4395_p3 = pneg %p4394_p0 }
  0x47   : > { %300 = vperm.xlu0 %4274, %v258_v45  }
  0x48   : > { %4130 = vmatmul.msk.bf16.gmra.mxu0 %vm343_vm0, %v4202_v43  ;;  %4132 = vmatmul.msk.bf16.gmra.mxu2 %vm343_vm0, %v4204_v44  ;;  %p4400_p8 = pnand %p4399_p7, %p4395_p3 }
  0x49   : > { %4134 = vmatmul.msk.bf16.gmra.mxu1 %vm343_vm0, %v4202_v43  ;;  %280 = vperm.xlu1 %4275, %v254_v46  }
  0x4b   : > { %4136 = vmatmul.msk.bf16.gmra.mxu3 %vm343_vm0, %v4204_v44 }
  0x58   : > { %4157 = vmatmul.msk.bf16.vlgmr.msrb.gmra.mxu2 %vm343_vm0, %v4201_v17  ;;  %4185 = vmatmul.msk.bf16.vlgmr.msrb.gmra.mxu0 %vm343_vm0, %v4201_v17 }
  0x59   : > { %4189 = vmatmul.msk.bf16.vlgmr.msrb.gmra.mxu1 %vm343_vm0, %v4201_v17 }
  0x5b   : > { %4161 = vmatmul.msk.bf16.vlgmr.msrb.gmra.mxu3 %vm343_vm0, %v4201_v17 }
  0x68   : > { %4158 = vmatmul.msk.bf16.gmra.mxu2 %vm343_vm0, %v4202_v43  ;;  %4186 = vmatmul.msk.bf16.gmra.mxu0 %vm343_vm0, %v4202_v43 }
  0x69   : > { %4190 = vmatmul.msk.bf16.gmra.mxu1 %vm343_vm0, %v4202_v43 }
  0x6b   : > { %4162 = vmatmul.msk.bf16.gmra.mxu3 %vm343_vm0, %v4202_v43 }
  0x78   : > { %4159 = vmatmul.msk.bf16.gmra.mxu2 %vm343_vm0, %v4579_v18  ;;  %4187 = vmatmul.msk.bf16.gmra.mxu0 %vm343_vm0, %v4579_v18 }
  0x79   : > { %4191 = vmatmul.msk.bf16.gmra.mxu1 %vm343_vm0, %v4579_v18 }
  0x7b   : > { %4163 = vmatmul.msk.bf16.gmra.mxu3 %vm343_vm0, %v4579_v18 }
  0x88   : > { %4160 = vmatmul.msk.bf16.gmra.mxu2 %vm343_vm0, %v4204_v44  ;;  %4188 = vmatmul.msk.bf16.gmra.mxu0 %vm343_vm0, %v4204_v44 }
  0x89   : > { %4192 = vmatmul.msk.bf16.gmra.mxu1 %vm343_vm0, %v4204_v44 }
  0x8b   : > { %4164 = vmatmul.msk.bf16.gmra.mxu3 %vm343_vm0, %v4204_v44 }
  0x96   : > { %v4727_v50 = vpop.permute.xlu2 %295 }
  0xa9   : > { %v4653_v49 = vpop.permute.xlu0 %285  ;;  %v4668_v1 = vpop.permute.xlu1 %290 }
  0xb1   : > { %v4715_v37 = vpop.permute.xlu0 %265 }
  0xb2   : > { %v4695_v24 = vpop.permute.xlu1 %270 }
  0xb5   : > { %v365_v15 = vpop.f32.mrf.mxu0 }
  0xb6   : > { %v394_v12 = vpop.f32.mrf.mxu1  ;;  %v366_v47 = vadd.f32 %v365_v15, %v4715_v37 }
  0xb7   : > { %v395_v39 = vadd.f32 %v394_v12, %v4715_v37 }
  0xb9   : > { %v430_v48 = vrot.slane %v395_v39, 7 }
  0xbb   : > { %v375_v51 = vpop.f32.mrf.mxu2  ;;  %v459_v12 = vsel %vm458_vm9, %v430_v48, %v366_v47 }
  0xbc   : > { %v376_v53 = vadd.f32 %v375_v51, %v4653_v49 }
  0xbd   : > { %v367_v34 = vpop.f32.mrf.mxu0 }
  0xbe   : > { %v404_v52 = vpop.f32.mrf.mxu3  ;;  %v396_v27 = vpop.f32.mrf.mxu1  ;;  %v368_v35 = vadd.f32 %v367_v34, %v4695_v24 }
  0xbf   : > { %v405_v54 = vadd.f32 %v404_v52, %v4653_v49  ;;  %v397_v31 = vadd.f32 %v396_v27, %v4695_v24 }
  0xc1   : > { %v434_v55 = vrot.slane %v405_v54, 7  ;;  %v431_v36 = vrot.slane %v397_v31, 7 }
  0xc3   : > { %v506_v57 = vsel %vm438_vm1, %v376_v53, %v434_v55  ;;  %v507_v58 = vsel %vm440_vm2, %v376_v53, %v434_v55  ;;  %v509_v59 = vsel %vm443_vm3, %v376_v53, %v434_v55  ;;  %v511_v60 = vsel %vm446_vm4, %v376_v53, %v434_v55  ;;  %v377_v11 = vpop.f32.mrf.mxu2 }
  0xc4   : > { %v508_v61 = vrot.slane %v507_v58, 1  ;;  %v510_v62 = vrot.slane %v509_v59, 2  ;;  %v512_v63 = vrot.slane %v511_v60, 3  ;;  %v513_v0 = vsel %vm449_vm5, %v376_v53, %v434_v55  ;;  %698 = vst.msk [vmem:[#allocation2 + $0x100] ss:$4 sm:$0x3] %vm4657_vm6, %v506_v57 }
  0xc5   : > { %v514_v2 = vrot.slane %v513_v0, 4  ;;  %v515_v3 = vsel %vm452_vm7, %v376_v53, %v434_v55  ;;  %v517_v4 = vsel %vm455_vm8, %v376_v53, %v434_v55  ;;  %v519_v5 = vsel %vm458_vm9, %v434_v55, %v376_v53 }
  0xc6   : > { %v516_v6 = vrot.slane %v515_v3, 5  ;;  %700 = vst.msk [vmem:[#allocation2 + $0x108] ss:$4 sm:$0x3] %vm4657_vm6, %v508_v61  ;;  %v406_v7 = vpop.f32.mrf.mxu3  ;;  %v518_v8 = vrot.slane %v517_v4, 6  ;;  %v520_v10 = vrot.slane %v519_v5, 7  ;;  %v378_v14 = vadd.f32 %v377_v11, %v4668_v1 }
  0xc7   : > { %702 = vst.msk [vmem:[#allocation2 + $0x110] ss:$4 sm:$0x3] %vm4657_vm6, %v510_v62  ;;  %v407_v9 = vadd.f32 %v406_v7, %v4668_v1  ;;  %v462_v38 = vsel %vm440_vm2, %v368_v35, %v431_v36  ;;  %v464_v40 = vsel %vm443_vm3, %v368_v35, %v431_v36  ;;  %v466_v41 = vsel %vm446_vm4, %v368_v35, %v431_v36 }
  0xc8   : > { %704 = vst.msk [vmem:[#allocation2 + $0x118] ss:$4 sm:$0x3] %vm4657_vm6, %v512_v63  ;;  %v461_v42 = vsel %vm438_vm1, %v368_v35, %v431_v36  ;;  %v463_v43 = vrot.slane %v462_v38, 1  ;;  %v468_v44 = vsel %vm449_vm5, %v368_v35, %v431_v36  ;;  %v465_v45 = vrot.slane %v464_v40, 2 }
  0xc9   : > { %706 = vst.msk [vmem:[#allocation2 + $0x120] ss:$4 sm:$0x3] %vm4657_vm6, %v514_v2  ;;  %v435_v13 = vrot.slane %v407_v9, 7  ;;  %v470_v46 = vsel %vm452_vm7, %v368_v35, %v431_v36  ;;  %v467_v51 = vrot.slane %v466_v41, 3  ;;  %v472_v52 = vsel %vm455_vm8, %v368_v35, %v431_v36 }
  0xca   : > { %708 = vst.msk [vmem:[#allocation2 + $0x128] ss:$4 sm:$0x3] %vm4657_vm6, %v516_v6  ;;  %v469_v54 = vrot.slane %v468_v44, 4  ;;  %v474_v55 = vsel %vm458_vm9, %v431_v36, %v368_v35  ;;  %v471_v57 = vrot.slane %v470_v46, 5  ;;  %v473_v58 = vrot.slane %v472_v52, 6 }
  0xcb   : > { %710 = vst.msk [vmem:[#allocation2 + $0x130] ss:$4 sm:$0x3] %vm4657_vm6, %v518_v8  ;;  %v522_v16 = vsel %vm440_vm2, %v378_v14, %v435_v13  ;;  %v524_v17 = vsel %vm443_vm3, %v378_v14, %v435_v13  ;;  %v526_v18 = vsel %vm446_vm4, %v378_v14, %v435_v13  ;;  %v521_v19 = vsel %vm438_vm1, %v378_v14, %v435_v13  ;;  %v380_v4 = vpop.f32.mrf.mxu2 }
  0xcc   : > { %712 = vst.msk [vmem:[#allocation2 + $0x138] ss:$4 sm:$0x3] %vm4657_vm6, %v520_v10  ;;  %v523_v20 = vrot.slane %v522_v16, 1  ;;  %v528_v21 = vsel %vm449_vm5, %v378_v14, %v435_v13  ;;  %v525_v22 = vrot.slane %v524_v17, 2  ;;  %v530_v23 = vsel %vm452_vm7, %v378_v14, %v435_v13  ;;  %v4764_v16 = vpop.f32.mrf.mxu1 }
  0xcd   : > { %v527_v25 = vrot.slane %v526_v18, 3  ;;  %v532_v26 = vsel %vm455_vm8, %v378_v14, %v435_v13  ;;  %v529_v28 = vrot.slane %v528_v21, 4  ;;  %v534_v29 = vsel %vm458_vm9, %v435_v13, %v378_v14  ;;  %714 = vst.msk [vmem:[#allocation2 + $0x140] ss:$4 sm:$0x3] %vm4657_vm6, %v521_v19 }
  0xce   : > { %v531_v30 = vrot.slane %v530_v23, 5  ;;  %716 = vst.msk [vmem:[#allocation2 + $0x148] ss:$4 sm:$0x3] %vm4657_vm6, %v523_v20  ;;  %v533_v32 = vrot.slane %v532_v26, 6  ;;  %v535_v33 = vrot.slane %v534_v29, 7  ;;  %v409_v53 = vpop.f32.mrf.mxu3  ;;  %v441_v59 = vsel %vm440_vm2, %v366_v47, %v430_v48  ;;  %v4779_v26 = vpop.permute.xlu0 %300 }
  0xcf   : > { %718 = vst.msk [vmem:[#allocation2 + $0x150] ss:$4 sm:$0x3] %vm4657_vm6, %v525_v22  ;;  %v410_v60 = vadd.f32 %v409_v53, %v4727_v50  ;;  %v475_v61 = vrot.slane %v474_v55, 7  ;;  %v444_v62 = vsel %vm443_vm3, %v366_v47, %v430_v48  ;;  %v447_v63 = vsel %vm446_vm4, %v366_v47, %v430_v48 }
  0xd0   : > { %720 = vst.msk [vmem:[#allocation2 + $0x158] ss:$4 sm:$0x3] %vm4657_vm6, %v527_v25  ;;  %v439_v0 = vsel %vm438_vm1, %v366_v47, %v430_v48  ;;  %v442_v2 = vrot.slane %v441_v59, 1  ;;  %v450_v3 = vsel %vm449_vm5, %v366_v47, %v430_v48  ;;  %v445_v5 = vrot.slane %v444_v62, 2 }
  0xd1   : > { %722 = vst.msk [vmem:[#allocation2 + $0x160] ss:$4 sm:$0x3] %vm4657_vm6, %v529_v28  ;;  %v453_v6 = vsel %vm452_vm7, %v366_v47, %v430_v48  ;;  %v381_v7 = vadd.f32 %v380_v4, %v4727_v50  ;;  %v436_v8 = vrot.slane %v410_v60, 7  ;;  %v448_v9 = vrot.slane %v447_v63, 3  ;;  %v370_v28 = vpop.f32.mrf.mxu0 }
  0xd2   : > { %724 = vst.msk [vmem:[#allocation2 + $0x168] ss:$4 sm:$0x3] %vm4657_vm6, %v531_v30  ;;  %v456_v10 = vsel %vm455_vm8, %v366_v47, %v430_v48  ;;  %v451_v11 = vrot.slane %v450_v3, 4  ;;  %v454_v13 = vrot.slane %v453_v6, 5  ;;  %v460_v17 = vrot.slane %v459_v12, 7  ;;  %v4829_v3 = vpop.permute.xlu2 %275 }
  0xd3   : > { %726 = vst.msk [vmem:[#allocation2 + $0x170] ss:$4 sm:$0x3] %vm4657_vm6, %v533_v32  ;;  %v457_v14 = vrot.slane %v456_v10, 6  ;;  %v537_v15 = vsel %vm440_vm2, %v381_v7, %v436_v8  ;;  %v539_v18 = vsel %vm443_vm3, %v381_v7, %v436_v8  ;;  %v541_v19 = vsel %vm446_vm4, %v381_v7, %v436_v8  ;;  %v382_v38 = vpop.f32.mrf.mxu2 }
  0xd4   : > { %728 = vst.msk [vmem:[#allocation2 + $0x178] ss:$4 sm:$0x3] %vm4657_vm6, %v535_v33  ;;  %v536_v20 = vsel %vm438_vm1, %v381_v7, %v436_v8  ;;  %v538_v21 = vrot.slane %v537_v15, 1  ;;  %v543_v22 = vsel %vm449_vm5, %v381_v7, %v436_v8  ;;  %v540_v23 = vrot.slane %v539_v18, 2  ;;  %v401_v39 = vpop.f32.mrf.mxu1  ;;  %v4843_v18 = vpop.permute.xlu1 %280 }
  0xd5   : > { %650 = vst.msk [vmem:[#allocation2 + $0x40] ss:$4 sm:$0x3] %vm4657_vm6, %v461_v42  ;;  %v545_v25 = vsel %vm452_vm7, %v381_v7, %v436_v8  ;;  %v542_v29 = vrot.slane %v541_v19, 3  ;;  %v547_v30 = vsel %vm455_vm8, %v381_v7, %v436_v8  ;;  %v544_v31 = vrot.slane %v543_v22, 4 }
  0xd6   : > { %652 = vst.msk [vmem:[#allocation2 + $0x48] ss:$4 sm:$0x3] %vm4657_vm6, %v463_v43  ;;  %v411_v27 = vpop.f32.mrf.mxu3  ;;  %v549_v32 = vsel %vm458_vm9, %v436_v8, %v381_v7  ;;  %v546_v33 = vrot.slane %v545_v25, 5  ;;  %v548_v35 = vrot.slane %v547_v30, 6  ;;  %v383_v41 = vadd.f32 %v382_v38, %v4779_v26 }
  0xd7   : > { %654 = vst.msk [vmem:[#allocation2 + $0x50] ss:$4 sm:$0x3] %vm4657_vm6, %v465_v45  ;;  %v412_v34 = vadd.f32 %v411_v27, %v4779_v26  ;;  %v550_v36 = vrot.slane %v549_v32, 7 }
  0xd8   : > { %656 = vst.msk [vmem:[#allocation2 + $0x58] ss:$4 sm:$0x3] %vm4657_vm6, %v467_v51 }
  0xd9   : > { %658 = vst.msk [vmem:[#allocation2 + $0x60] ss:$4 sm:$0x3] %vm4657_vm6, %v469_v54  ;;  %v437_v40 = vrot.slane %v412_v34, 7  ;;  %v4803_v42 = vpop.f32.mrf.mxu0 }
  0xda   : > { %660 = vst.msk [vmem:[#allocation2 + $0x68] ss:$4 sm:$0x3] %vm4657_vm6, %v471_v57  ;;  %v373_v34 = vadd.f32 %v4803_v42, %v4843_v18 }
  0xdb   : > { %662 = vst.msk [vmem:[#allocation2 + $0x70] ss:$4 sm:$0x3] %vm4657_vm6, %v473_v58  ;;  %v552_v43 = vsel %vm440_vm2, %v383_v41, %v437_v40  ;;  %v554_v44 = vsel %vm443_vm3, %v383_v41, %v437_v40  ;;  %v556_v45 = vsel %vm446_vm4, %v383_v41, %v437_v40  ;;  %v551_v46 = vsel %vm438_vm1, %v383_v41, %v437_v40 }
  0xdc   : > { %664 = vst.msk [vmem:[#allocation2 + $0x78] ss:$4 sm:$0x3] %vm4657_vm6, %v475_v61  ;;  %v553_v47 = vrot.slane %v552_v43, 1  ;;  %v558_v48 = vsel %vm449_vm5, %v383_v41, %v437_v40  ;;  %v555_v51 = vrot.slane %v554_v44, 2  ;;  %v560_v52 = vsel %vm452_vm7, %v383_v41, %v437_v40  ;;  %v1243_v58 = vpop.f32.mrf.mxu1 }
  0xdd   : > { %634 = vst.msk [vmem:[#allocation2] ss:$4 sm:$0x3] %vm4657_vm6, %v439_v0  ;;  %v557_v53 = vrot.slane %v556_v45, 3  ;;  %v562_v54 = vsel %vm455_vm8, %v383_v41, %v437_v40  ;;  %v559_v55 = vrot.slane %v558_v48, 4  ;;  %v564_v57 = vsel %vm458_vm9, %v437_v40, %v383_v41 }
  0xde   : > { %636 = vst.msk [vmem:[#allocation2 + $0x8] ss:$4 sm:$0x3] %vm4657_vm6, %v442_v2  ;;  %v561_v59 = vrot.slane %v560_v52, 5  ;;  %v1244_v60 = vadd.f32 %v1243_v58, %v4715_v37  ;;  %v563_v61 = vrot.slane %v562_v54, 6  ;;  %v565_v62 = vrot.slane %v564_v57, 7  ;;  %v795_v54 = vpop.f32.mrf.mxu2 }
  0xdf   : > { %638 = vst.msk [vmem:[#allocation2 + $0x10] ss:$4 sm:$0x3] %vm4657_vm6, %v445_v5  ;;  %v400_v5 = vadd.f32 %v4764_v16, %v4829_v3  ;;  %v796_v58 = vadd.f32 %v795_v54, %v4715_v37  ;;  %v1623_v54 = vld [vmem:[#allocation2 + $0x138] ss:$4 sm:$0x3] }
  0xe0   : > { %640 = vst.msk [vmem:[#allocation2 + $0x18] ss:$4 sm:$0x3] %vm4657_vm6, %v448_v9  ;;  %v1279_v2 = vrot.slane %v1244_v60, 7 }
  0xe1   : > { %642 = vst.msk [vmem:[#allocation2 + $0x20] ss:$4 sm:$0x3] %vm4657_vm6, %v451_v11  ;;  %v1214_v63 = vpop.f32.mrf.mxu0 }
  0xe2   : > { %644 = vst.msk [vmem:[#allocation2 + $0x28] ss:$4 sm:$0x3] %vm4657_vm6, %v454_v13  ;;  %v1215_v0 = vadd.f32 %v1214_v63, %v4715_v37  ;;  %v371_v13 = vadd.f32 %v370_v28, %v4829_v3 }
  0xe3   : > { %646 = vst.msk [vmem:[#allocation2 + $0x30] ss:$4 sm:$0x3] %vm4657_vm6, %v457_v14  ;;  %v432_v14 = vrot.slane %v400_v5, 7 }
  0xe4   : > { %648 = vst.msk [vmem:[#allocation2 + $0x38] ss:$4 sm:$0x3] %vm4657_vm6, %v460_v17  ;;  %v1288_v4 = vsel %vm440_vm2, %v1215_v0, %v1279_v2  ;;  %v1290_v6 = vsel %vm443_vm3, %v1215_v0, %v1279_v2  ;;  %v1292_v7 = vsel %vm446_vm4, %v1215_v0, %v1279_v2  ;;  %v1287_v8 = vsel %vm438_vm1, %v1215_v0, %v1279_v2 }
  0xe5   : > { %730 = vst.msk [vmem:[#allocation2 + $0x180] ss:$4 sm:$0x3] %vm4657_vm6, %v536_v20  ;;  %v1289_v9 = vrot.slane %v1288_v4, 1  ;;  %v1294_v10 = vsel %vm449_vm5, %v1215_v0, %v1279_v2  ;;  %v1291_v11 = vrot.slane %v1290_v6, 2  ;;  %v1296_v12 = vsel %vm452_vm7, %v1215_v0, %v1279_v2 }
  0xe6   : > { %732 = vst.msk [vmem:[#allocation2 + $0x188] ss:$4 sm:$0x3] %vm4657_vm6, %v538_v21  ;;  %v1293_v15 = vrot.slane %v1292_v7, 3  ;;  %v1298_v17 = vsel %vm455_vm8, %v1215_v0, %v1279_v2  ;;  %v1295_v16 = vrot.slane %v1294_v10, 4  ;;  %v1300_v19 = vsel %vm458_vm9, %v1279_v2, %v1215_v0  ;;  %v1245_v2 = vpop.f32.mrf.mxu1 }
  0xe7   : > { %734 = vst.msk [vmem:[#allocation2 + $0x190] ss:$4 sm:$0x3] %vm4657_vm6, %v540_v23  ;;  %v1297_v20 = vrot.slane %v1296_v12, 5  ;;  %v1299_v21 = vrot.slane %v1298_v17, 6  ;;  %v477_v22 = vsel %vm440_vm2, %v371_v13, %v432_v14  ;;  %v402_v23 = vadd.f32 %v401_v39, %v4843_v18  ;;  %v824_v39 = vpop.f32.mrf.mxu3 }
  0xe8   : > { %736 = vst.msk [vmem:[#allocation2 + $0x198] ss:$4 sm:$0x3] %vm4657_vm6, %v542_v29  ;;  %v1301_v25 = vrot.slane %v1300_v19, 7  ;;  %v479_v27 = vsel %vm443_vm3, %v371_v13, %v432_v14  ;;  %v481_v28 = vsel %vm446_vm4, %v371_v13, %v432_v14  ;;  %v476_v29 = vsel %vm438_vm1, %v371_v13, %v432_v14 }
  0xe9   : > { %738 = vst.msk [vmem:[#allocation2 + $0x1a0] ss:$4 sm:$0x3] %vm4657_vm6, %v544_v31  ;;  %v478_v30 = vrot.slane %v477_v22, 1  ;;  %v483_v31 = vsel %vm449_vm5, %v371_v13, %v432_v14  ;;  %v480_v32 = vrot.slane %v479_v27, 2  ;;  %v487_v38 = vsel %vm455_vm8, %v371_v13, %v432_v14  ;;  %v1216_v17 = vpop.f32.mrf.mxu0 }
  0xea   : > { %740 = vst.msk [vmem:[#allocation2 + $0x1a8] ss:$4 sm:$0x3] %vm4657_vm6, %v546_v33  ;;  %v485_v33 = vsel %vm452_vm7, %v371_v13, %v432_v14  ;;  %v484_v40 = vrot.slane %v483_v31, 4  ;;  %v489_v41 = vsel %vm458_vm9, %v432_v14, %v371_v13  ;;  %v488_v44 = vrot.slane %v487_v38, 6 }
  0xeb   : > { %742 = vst.msk [vmem:[#allocation2 + $0x1b0] ss:$4 sm:$0x3] %vm4657_vm6, %v548_v35  ;;  %v433_v35 = vrot.slane %v402_v23, 7  ;;  %v486_v43 = vrot.slane %v485_v33, 5  ;;  %v825_v45 = vadd.f32 %v824_v39, %v4715_v37  ;;  %v1246_v6 = vadd.f32 %v1245_v2, %v4695_v24 }
  0xec   : > { %744 = vst.msk [vmem:[#allocation2 + $0x1b8] ss:$4 sm:$0x3] %vm4657_vm6, %v550_v36  ;;  %v482_v36 = vrot.slane %v481_v28, 3 }
  0xed   : > { %746 = vst.msk [vmem:[#allocation2 + $0x1c0] ss:$4 sm:$0x3] %vm4657_vm6, %v551_v46  ;;  %v492_v42 = vsel %vm440_vm2, %v373_v34, %v433_v35  ;;  %v490_v46 = vrot.slane %v489_v41, 7  ;;  %v496_v48 = vsel %vm446_vm4, %v373_v34, %v433_v35  ;;  %v500_v57 = vsel %vm452_vm7, %v373_v34, %v433_v35 }
  0xee   : > { %748 = vst.msk [vmem:[#allocation2 + $0x1c8] ss:$4 sm:$0x3] %vm4657_vm6, %v553_v47  ;;  %v494_v47 = vsel %vm443_vm3, %v373_v34, %v433_v35  ;;  %v493_v52 = vrot.slane %v492_v42, 1  ;;  %v497_v60 = vrot.slane %v496_v48, 3  ;;  %v504_v63 = vsel %vm458_vm9, %v433_v35, %v373_v34 }
  0xef   : > { %750 = vst.msk [vmem:[#allocation2 + $0x1d0] ss:$4 sm:$0x3] %vm4657_vm6, %v555_v51  ;;  %v491_v51 = vsel %vm438_vm1, %v373_v34, %v433_v35  ;;  %v501_v0 = vrot.slane %v500_v57, 5 }
  0xf0   : > { %752 = vst.msk [vmem:[#allocation2 + $0x1d8] ss:$4 sm:$0x3] %vm4657_vm6, %v557_v53  ;;  %v498_v53 = vsel %vm449_vm5, %v373_v34, %v433_v35  ;;  %v1609_v4 = vld [vmem:[#allocation2 + $0x100] ss:$4 sm:$0x3] }
  0xf1   : > { %754 = vst.msk [vmem:[#allocation2 + $0x1e0] ss:$4 sm:$0x3] %vm4657_vm6, %v559_v55  ;;  %v495_v55 = vrot.slane %v494_v47, 2  ;;  %v1633_v22 = vperm.slane %v1609_v4, 1 }
  0xf2   : > { %756 = vst.msk [vmem:[#allocation2 + $0x1e8] ss:$4 sm:$0x3] %vm4657_vm6, %v561_v59  ;;  %v860_v59 = vrot.slane %v825_v45, 7 }
  0xf3   : > { %758 = vst.msk [vmem:[#allocation2 + $0x1f0] ss:$4 sm:$0x3] %vm4657_vm6, %v563_v61  ;;  %v502_v61 = vsel %vm455_vm8, %v373_v34, %v433_v35  ;;  %v1611_v7 = vld [vmem:[#allocation2 + $0x108] ss:$4 sm:$0x3] }
  0xf4   : > { %760 = vst.msk [vmem:[#allocation2 + $0x1f8] ss:$4 sm:$0x3] %vm4657_vm6, %v565_v62  ;;  %v499_v62 = vrot.slane %v498_v53, 4  ;;  %v503_v37 = vrot.slane %v502_v61, 6  ;;  %v869_v5 = vsel %vm440_vm2, %v796_v58, %v860_v59  ;;  %v868_v13 = vsel %vm438_vm1, %v796_v58, %v860_v59 }
  0xf5   : > { %1472 = vst.msk [vmem:[#allocation2 + $0x2] ss:$4 sm:$0x3] %vm4657_vm6, %v1287_v8  ;;  %v505_v8 = vrot.slane %v504_v63, 7  ;;  %v870_v14 = vrot.slane %v869_v5, 1  ;;  %v877_v19 = vsel %vm452_vm7, %v796_v58, %v860_v59  ;;  %v1635_v27 = vperm.slane %v1611_v7, 1 }
  0xf6   : > { %1474 = vst.msk [vmem:[#allocation2 + $0xa] ss:$4 sm:$0x3] %vm4657_vm6, %v1289_v9  ;;  %v871_v9 = vsel %vm443_vm3, %v796_v58, %v860_v59  ;;  %v1613_v10 = vld [vmem:[#allocation2 + $0x110] ss:$4 sm:$0x3] }
  0xf7   : > { %1476 = vst.msk [vmem:[#allocation2 + $0x12] ss:$4 sm:$0x3] %vm4657_vm6, %v1291_v11  ;;  %v873_v11 = vsel %vm446_vm4, %v796_v58, %v860_v59  ;;  %v4913_v12 = vld [vmem:[#allocation2 + $0x118] ss:$4 sm:$0x3] }
  0xf8   : > { %1478 = vst.msk [vmem:[#allocation2 + $0x1a] ss:$4 sm:$0x3] %vm4657_vm6, %v1293_v15  ;;  %v875_v15 = vsel %vm449_vm5, %v796_v58, %v860_v59  ;;  %v874_v23 = vrot.slane %v873_v11, 3  ;;  %v878_v31 = vrot.slane %v877_v19, 5  ;;  %v1648_v35 = vrot.slane %v1633_v22, 4 }
  0xf9   : > { %1480 = vst.msk [vmem:[#allocation2 + $0x22] ss:$4 sm:$0x3] %vm4657_vm6, %v1295_v16  ;;  %v872_v16 = vrot.slane %v871_v9, 2  ;;  %v876_v28 = vrot.slane %v875_v15, 4  ;;  %v1649_v39 = vrot.slane %v1635_v27, 4 }
  0xfa   : > { %1482 = vst.msk [vmem:[#allocation2 + $0x2a] ss:$4 sm:$0x3] %vm4657_vm6, %v1297_v20  ;;  %v4923_v20 = vadd.f32 %v1216_v17, %v4695_v24  ;;  %v4943_v38 = vld [vmem:[#allocation2 + $0x120] ss:$4 sm:$0x3] }
  0xfb   : > { %1484 = vst.msk [vmem:[#allocation2 + $0x32] ss:$4 sm:$0x3] %vm4657_vm6, %v1299_v21  ;;  %v4925_v21 = vrot.slane %v1246_v6, 7  ;;  %v1634_v45 = vperm.slane %v1611_v7, 0  ;;  %v1636_v48 = vperm.slane %v1613_v10, 0 }
  0xfc   : > { %1486 = vst.msk [vmem:[#allocation2 + $0x3a] ss:$4 sm:$0x3] %vm4657_vm6, %v1301_v25  ;;  %v879_v25 = vsel %vm455_vm8, %v796_v58, %v860_v59  ;;  %v1619_v42 = vld [vmem:[#allocation2 + $0x128] ss:$4 sm:$0x3] }
  0xfd   : > { %666 = vst.msk [vmem:[#allocation2 + $0x80] ss:$4 sm:$0x3] %vm4657_vm6, %v476_v29  ;;  %v881_v29 = vsel %vm458_vm9, %v860_v59, %v796_v58  ;;  %v880_v33 = vrot.slane %v879_v25, 6  ;;  %v1303_v34 = vsel %vm440_vm2, %v4923_v20, %v4925_v21  ;;  %v1305_v53 = vsel %vm443_vm3, %v4923_v20, %v4925_v21 }
  0xfe   : > { %668 = vst.msk [vmem:[#allocation2 + $0x88] ss:$4 sm:$0x3] %vm4657_vm6, %v478_v30  ;;  %v1637_v30 = vperm.slane %v1613_v10, 1  ;;  %v1658_v58 = vsel %vm1656_vm10, %v1634_v45, %v1649_v39  ;;  %v1641_v61 = vperm.slane %v4943_v38, 1  ;;  %v1309_v2 = vsel %vm449_vm5, %v4923_v20, %v4925_v21 }
  0xff   : > { %670 = vst.msk [vmem:[#allocation2 + $0x90] ss:$4 sm:$0x3] %vm4657_vm6, %v480_v32  ;;  %v1639_v32 = vperm.slane %v4913_v12, 1  ;;  %v1306_v6 = vrot.slane %v1305_v53, 2  ;;  %v1643_v7 = vperm.slane %v1619_v42, 1 }
 0x100   : > { %672 = vst.msk [vmem:[#allocation2 + $0x98] ss:$4 sm:$0x3] %vm4657_vm6, %v482_v36  ;;  %v882_v36 = vrot.slane %v881_v29, 7  ;;  %v1650_v41 = vrot.slane %v1637_v30, 4  ;;  %v1640_v10 = vperm.slane %v4943_v38, 0 }
 0x101   : > { %674 = vst.msk [vmem:[#allocation2 + $0xa0] ss:$4 sm:$0x3] %vm4657_vm6, %v484_v40  ;;  %v1632_v40 = vperm.slane %v1609_v4, 0  ;;  %v1647_v15 = vperm.slane %v1623_v54, 1  ;;  %v1652_v17 = vrot.slane %v1641_v61, 4 }
 0x102   : > { %676 = vst.msk [vmem:[#allocation2 + $0xa8] ss:$4 sm:$0x3] %vm4657_vm6, %v486_v43  ;;  %v1302_v43 = vsel %vm438_vm1, %v4923_v20, %v4925_v21  ;;  %v1621_v47 = vld [vmem:[#allocation2 + $0x130] ss:$4 sm:$0x3]  ;;  %v1659_v63 = vsel %vm1656_vm10, %v1636_v48, %v1650_v41  ;;  %v1313_v41 = vsel %vm455_vm8, %v4923_v20, %v4925_v21 }
 0x103   : > { %678 = vst.msk [vmem:[#allocation2 + $0xb0] ss:$4 sm:$0x3] %vm4657_vm6, %v488_v44  ;;  %v1304_v44 = vrot.slane %v1303_v34, 1  ;;  %v1645_v11 = vperm.slane %v1621_v47, 1  ;;  %v1653_v22 = vrot.slane %v1643_v7, 4 }
 0x104   : > { %680 = vst.msk [vmem:[#allocation2 + $0xb8] ss:$4 sm:$0x3] %vm4657_vm6, %v490_v46  ;;  %v1651_v46 = vrot.slane %v1639_v32, 4  ;;  %v1655_v29 = vrot.slane %v1647_v15, 4  ;;  %v1661_v32 = vsel %vm1656_vm10, %v1640_v10, %v1652_v17 }
 0x105   : > { %682 = vst.msk [vmem:[#allocation2 + $0xc0] ss:$4 sm:$0x3] %vm4657_vm6, %v491_v51  ;;  %v1654_v25 = vrot.slane %v1645_v11, 4  ;;  %v1219_v11 = vpop.f32.mrf.mxu0 }
 0x106   : > { %684 = vst.msk [vmem:[#allocation2 + $0xc8] ss:$4 sm:$0x3] %vm4657_vm6, %v493_v52  ;;  %v1657_v52 = vsel %vm1656_vm10, %v1632_v40, %v1648_v35  ;;  %v1311_v35 = vsel %vm452_vm7, %v4923_v20, %v4925_v21 }
 0x107   : > { %686 = vst.msk [vmem:[#allocation2 + $0xd0] ss:$4 sm:$0x3] %vm4657_vm6, %v495_v55  ;;  %v1638_v55 = vperm.slane %v4913_v12, 0  ;;  %v1310_v12 = vrot.slane %v1309_v2, 4 }
 0x108   : > { %688 = vst.msk [vmem:[#allocation2 + $0xd8] ss:$4 sm:$0x3] %vm4657_vm6, %v497_v60  ;;  %v1307_v60 = vsel %vm446_vm4, %v4923_v20, %v4925_v21 }
 0x109   : > { %690 = vst.msk [vmem:[#allocation2 + $0xe0] ss:$4 sm:$0x3] %vm4657_vm6, %v499_v62  ;;  %v1308_v9 = vrot.slane %v1307_v60, 3 }
 0x10a   : > { %692 = vst.msk [vmem:[#allocation2 + $0xe8] ss:$4 sm:$0x3] %vm4657_vm6, %v501_v0 }
 0x10b   : > { %694 = vst.msk [vmem:[#allocation2 + $0xf0] ss:$4 sm:$0x3] %vm4657_vm6, %v503_v37  ;;  %v1660_v37 = vsel %vm1656_vm10, %v1638_v55, %v1651_v46 }
 0x10c   : > { %696 = vst.msk [vmem:[#allocation2 + $0xf8] ss:$4 sm:$0x3] %vm4657_vm6, %v505_v8 }
 0x10d   : > { %1053 = vst.msk [vmem:[#allocation2 + $0x1] ss:$4 sm:$0x3] %vm4657_vm6, %v868_v13  ;;  %v1642_v13 = vperm.slane %v1619_v42, 0 }
 0x10e   : > { %1055 = vst.msk [vmem:[#allocation2 + $0x9] ss:$4 sm:$0x3] %vm4657_vm6, %v870_v14  ;;  %v1644_v14 = vperm.slane %v1621_v47, 0  ;;  %v1315_v47 = vsel %vm458_vm9, %v4925_v21, %v4923_v20 }
 0x10f   : > { %1057 = vst.msk [vmem:[#allocation2 + $0x11] ss:$4 sm:$0x3] %vm4657_vm6, %v872_v16  ;;  %v1646_v16 = vperm.slane %v1623_v54, 0  ;;  %v1312_v54 = vrot.slane %v1311_v35, 5  ;;  %v1316_v60 = vrot.slane %v1315_v47, 7 }
 0x110   : > { %1059 = vst.msk [vmem:[#allocation2 + $0x19] ss:$4 sm:$0x3] %vm4657_vm6, %v874_v23 }
 0x111   : > { %1061 = vst.msk [vmem:[#allocation2 + $0x21] ss:$4 sm:$0x3] %vm4657_vm6, %v876_v28  ;;  %v826_v28 = vpop.f32.mrf.mxu3  ;;  %v1664_v48 = vsel %vm1656_vm10, %v1646_v16, %v1655_v29 }
 0x112   : > { %1063 = vst.msk [vmem:[#allocation2 + $0x29] ss:$4 sm:$0x3] %vm4657_vm6, %v878_v31 }
 0x113   : > { %1065 = vst.msk [vmem:[#allocation2 + $0x31] ss:$4 sm:$0x3] %vm4657_vm6, %v880_v33 }
 0x114   : > { %1067 = vst.msk [vmem:[#allocation2 + $0x39] ss:$4 sm:$0x3] %vm4657_vm6, %v882_v36  ;;  %v4956_v51 = vld [vmem:[#allocation2] sm:$0x77]  ;;  %v1662_v36 = vsel %vm1656_vm10, %v1642_v13, %v1653_v22 }
 0x115   : > { %v4963_v57 = vld [vmem:[#allocation2 + $0x8] sm:$0x77]  ;;  %v1673_v59 = vmul.f32 %v1657_v52, %v4956_v51  ;;  %1488 = vst.msk [vmem:[#allocation2 + $0x42] ss:$4 sm:$0x3] %vm4657_vm6, %v1302_v43  ;;  %v827_v43 = vadd.f32 %v826_v28, %v4695_v24 }
 0x116   : > { %v4973_v62 = vld [vmem:[#allocation2 + $0x10] sm:$0x77]  ;;  %v1674_v0 = vmul.f32 %v1658_v58, %v4963_v57  ;;  %1490 = vst.msk [vmem:[#allocation2 + $0x4a] ss:$4 sm:$0x3] %vm4657_vm6, %v1304_v44  ;;  %v1663_v44 = vsel %vm1656_vm10, %v1644_v14, %v1654_v25  ;;  %v1314_v58 = vrot.slane %v1313_v41, 6  ;;  %v1220_v14 = vadd.f32 %v1219_v11, %v4829_v3 }
 0x117   : > { %v4982_v4 = vld [vmem:[#allocation2 + $0x18] sm:$0x77]  ;;  %v1675_v5 = vmul.f32 %v1659_v63, %v4973_v62  ;;  %1689 = vst [vmem:[#allocation1] ss:$2 sm:$0xff] %v1673_v59  ;;  %v797_v59 = vpop.f32.mrf.mxu2  ;;  %v861_v61 = vrot.slane %v827_v43, 7 }
 0x118   : > { %v1676_v8 = vmul.f32 %v1660_v37, %v4982_v4  ;;  %1693 = vst [vmem:[#allocation1 + $0x10] ss:$2 sm:$0xff] %v1674_v0  ;;  %v4988_v19 = vld [vmem:[#allocation2 + $0x20] sm:$0x77]  ;;  %v798_v20 = vadd.f32 %v797_v59, %v4695_v24  ;;  %v1248_v0 = vpop.f32.mrf.mxu1 }
 0x119   : > { %1697 = vst [vmem:[#allocation1 + $0x20] ss:$2 sm:$0xff] %v1675_v5  ;;  %v4992_v23 = vld [vmem:[#allocation2 + $0x28] sm:$0x77]  ;;  %v1677_v38 = vmul.f32 %v1661_v32, %v4988_v19  ;;  %v1249_v37 = vadd.f32 %v1248_v0, %v4829_v3  ;;  %v829_v16 = vpop.f32.mrf.mxu3 }
 0x11a   : > { %1701 = vst [vmem:[#allocation1 + $0x30] ss:$2 sm:$0xff] %v1676_v8  ;;  %v4996_v27 = vld [vmem:[#allocation2 + $0x30] sm:$0x77]  ;;  %v1678_v42 = vmul.f32 %v1662_v36, %v4992_v23  ;;  %v884_v21 = vsel %vm440_vm2, %v798_v20, %v861_v61  ;;  %v886_v63 = vsel %vm443_vm3, %v798_v20, %v861_v61  ;;  %v888_v2 = vsel %vm446_vm4, %v798_v20, %v861_v61 }
 0x11b   : > { %1492 = vst.msk [vmem:[#allocation2 + $0x52] ss:$4 sm:$0x3] %vm4657_vm6, %v1306_v6  ;;  %v5000_v30 = vld [vmem:[#allocation2 + $0x38] sm:$0x77]  ;;  %v1679_v52 = vmul.f32 %v1663_v44, %v4996_v27  ;;  %v883_v5 = vsel %vm438_vm1, %v798_v20, %v861_v61  ;;  %v885_v6 = vrot.slane %v884_v21, 1  ;;  %v890_v24 = vsel %vm449_vm5, %v798_v20, %v861_v61 }
 0x11c   : > { %1494 = vst.msk [vmem:[#allocation2 + $0x5a] ss:$4 sm:$0x3] %vm4657_vm6, %v1308_v9  ;;  %v1680_v55 = vmul.f32 %v1664_v48, %v5000_v30  ;;  %v887_v7 = vrot.slane %v886_v63, 2  ;;  %v892_v8 = vsel %vm452_vm7, %v798_v20, %v861_v61  ;;  %v889_v9 = vrot.slane %v888_v2, 3 }
 0x11d   : > { %1496 = vst.msk [vmem:[#allocation2 + $0x62] ss:$4 sm:$0x3] %vm4657_vm6, %v1310_v12  ;;  %v894_v10 = vsel %vm455_vm8, %v798_v20, %v861_v61  ;;  %v891_v12 = vrot.slane %v890_v24, 4  ;;  %v896_v13 = vsel %vm458_vm9, %v861_v61, %v798_v20  ;;  %v1281_v15 = vrot.slane %v1249_v37, 7 }
 0x11e   : > { %v5002_v31 = vld.sshfl [vmem:[#allocation1] sm:$0xff pattern:$0x75316420]  ;;  %v5005_v33 = vld.sshfl [vmem:[#allocation1 + $0x8] sm:$0xff pattern:$0x75316420]  ;;  %v830_v29 = vadd.f32 %v829_v16, %v4829_v3 }
 0x11f   : > { %v5007_v34 = vld.sshfl [vmem:[#allocation1 + $0x10] sm:$0xff pattern:$0x75316420]  ;;  %v5014_v39 = vld.sshfl [vmem:[#allocation1 + $0x18] sm:$0xff pattern:$0x75316420]  ;;  %v1318_v28 = vsel %vm440_vm2, %v1220_v14, %v1281_v15  ;;  %v1320_v32 = vsel %vm443_vm3, %v1220_v14, %v1281_v15  ;;  %v1322_v35 = vsel %vm446_vm4, %v1220_v14, %v1281_v15  ;;  %v1317_v36 = vsel %vm438_vm1, %v1220_v14, %v1281_v15  ;;  %v800_v43 = vpop.f32.mrf.mxu2 }
 0x120   : > { %v5016_v40 = vld.sshfl [vmem:[#allocation1 + $0x20] sm:$0xff pattern:$0x75316420]  ;;  %v5024_v45 = vld.sshfl [vmem:[#allocation1 + $0x28] sm:$0xff pattern:$0x75316420]  ;;  %v1324_v41 = vsel %vm449_vm5, %v1220_v14, %v1281_v15  ;;  %v801_v47 = vadd.f32 %v800_v43, %v4829_v3 }
 0x121   : > { %v5026_v46 = vld.sshfl [vmem:[#allocation1 + $0x30] sm:$0xff pattern:$0x75316420]  ;;  %v5033_v53 = vld.sshfl [vmem:[#allocation1 + $0x38] sm:$0xff pattern:$0x75316420] }
 0x122   : > { %1704 = vst [vmem:[#allocation1] ss:$2 sm:$0xff] %v1677_v38  ;;  %v893_v17 = vrot.slane %v892_v8, 5  ;;  %v895_v22 = vrot.slane %v894_v10, 6  ;;  %v897_v25 = vrot.slane %v896_v13, 7  ;;  %v1319_v38 = vrot.slane %v1318_v28, 1 }
 0x123   : > { %1707 = vst [vmem:[#allocation1 + $0x10] ss:$2 sm:$0xff] %v1678_v42  ;;  %v1321_v44 = vrot.slane %v1320_v32, 2  ;;  %v1326_v42 = vsel %vm452_vm7, %v1220_v14, %v1281_v15  ;;  %v862_v48 = vrot.slane %v830_v29, 7 }
 0x124   : > { %1710 = vst [vmem:[#allocation1 + $0x20] ss:$2 sm:$0xff] %v1679_v52  ;;  %v1323_v52 = vrot.slane %v1322_v35, 3  ;;  %v1327_v59 = vrot.slane %v1326_v42, 5 }
 0x125   : > { %1713 = vst [vmem:[#allocation1 + $0x30] ss:$2 sm:$0xff] %v1680_v55  ;;  %v1325_v55 = vrot.slane %v1324_v41, 4  ;;  %v899_v3 = vsel %vm440_vm2, %v801_v47, %v862_v48  ;;  %v901_v63 = vsel %vm443_vm3, %v801_v47, %v862_v48  ;;  %v903_v0 = vsel %vm446_vm4, %v801_v47, %v862_v48 }
 0x126   : > { %1498 = vst.msk [vmem:[#allocation2 + $0x6a] ss:$4 sm:$0x3] %vm4657_vm6, %v1312_v54  ;;  %v1328_v54 = vsel %vm455_vm8, %v1220_v14, %v1281_v15  ;;  %v898_v2 = vsel %vm438_vm1, %v801_v47, %v862_v48  ;;  %v900_v37 = vrot.slane %v899_v3, 1  ;;  %v902_v24 = vrot.slane %v901_v63, 2 }
 0x127   : > { %1500 = vst.msk [vmem:[#allocation2 + $0x72] ss:$4 sm:$0x3] %vm4657_vm6, %v1314_v58  ;;  %v1330_v58 = vsel %vm458_vm9, %v1281_v15, %v1220_v14  ;;  %v1329_v61 = vrot.slane %v1328_v54, 6  ;;  %v904_v10 = vrot.slane %v903_v0, 3  ;;  %v909_v11 = vsel %vm455_vm8, %v801_v47, %v862_v48 }
 0x128   : > { %1502 = vst.msk [vmem:[#allocation2 + $0x7a] ss:$4 sm:$0x3] %vm4657_vm6, %v1316_v60  ;;  %v1250_v60 = vpop.f32.mrf.mxu1  ;;  %v1331_v21 = vrot.slane %v1330_v58, 7  ;;  %v911_v14 = vsel %vm458_vm9, %v862_v48, %v801_v47 }
 0x129   : > { %1069 = vst.msk [vmem:[#allocation2 + $0x41] ss:$4 sm:$0x3] %vm4657_vm6, %v883_v5  ;;  %v1251_v20 = vadd.f32 %v1250_v60, %v4843_v18  ;;  %v905_v5 = vsel %vm449_vm5, %v801_v47, %v862_v48 }
 0x12a   : > { %1071 = vst.msk [vmem:[#allocation2 + $0x49] ss:$4 sm:$0x3] %vm4657_vm6, %v885_v6  ;;  %v1221_v6 = vpop.f32.mrf.mxu0  ;;  %v906_v13 = vrot.slane %v905_v5, 4 }
 0x12b   : > { %1073 = vst.msk [vmem:[#allocation2 + $0x51] ss:$4 sm:$0x3] %vm4657_vm6, %v887_v7  ;;  %v907_v7 = vsel %vm452_vm7, %v801_v47, %v862_v48  ;;  %v1222_v8 = vadd.f32 %v1221_v6, %v4843_v18 }
 0x12c   : > { %1075 = vst.msk [vmem:[#allocation2 + $0x59] ss:$4 sm:$0x3] %vm4657_vm6, %v889_v9  ;;  %v1282_v9 = vrot.slane %v1251_v20, 7  ;;  %v908_v15 = vrot.slane %v907_v7, 5 }
 0x12d   : > { %1077 = vst.msk [vmem:[#allocation2 + $0x61] ss:$4 sm:$0x3] %vm4657_vm6, %v891_v12  ;;  %v831_v12 = vpop.f32.mrf.mxu3 }
 0x12e   : > { %1079 = vst.msk [vmem:[#allocation2 + $0x69] ss:$4 sm:$0x3] %vm4657_vm6, %v893_v17  ;;  %v910_v17 = vrot.slane %v909_v11, 6  ;;  %v1333_v16 = vsel %vm440_vm2, %v1222_v8, %v1282_v9  ;;  %v1335_v28 = vsel %vm443_vm3, %v1222_v8, %v1282_v9  ;;  %v1337_v29 = vsel %vm446_vm4, %v1222_v8, %v1282_v9 }
 0x12f   : > { %1081 = vst.msk [vmem:[#allocation2 + $0x71] ss:$4 sm:$0x3] %vm4657_vm6, %v895_v22  ;;  %v832_v22 = vadd.f32 %v831_v12, %v4843_v18  ;;  %v1332_v32 = vsel %vm438_vm1, %v1222_v8, %v1282_v9  ;;  %v1334_v35 = vrot.slane %v1333_v16, 1  ;;  %v1336_v41 = vrot.slane %v1335_v28, 2 }
 0x130   : > { %1083 = vst.msk [vmem:[#allocation2 + $0x79] ss:$4 sm:$0x3] %vm4657_vm6, %v897_v25  ;;  %v912_v25 = vrot.slane %v911_v14, 7  ;;  %v1341_v43 = vsel %vm452_vm7, %v1222_v8, %v1282_v9  ;;  %v1338_v42 = vrot.slane %v1337_v29, 3  ;;  %v1343_v47 = vsel %vm455_vm8, %v1222_v8, %v1282_v9  ;;  %v1253_v48 = vpop.f32.mrf.mxu1 }
 0x131   : > { %1504 = vst.msk [vmem:[#allocation2 + $0x82] ss:$4 sm:$0x3] %vm4657_vm6, %v1317_v36  ;;  %v1339_v36 = vsel %vm449_vm5, %v1222_v8, %v1282_v9  ;;  %v1345_v54 = vsel %vm458_vm9, %v1282_v9, %v1222_v8  ;;  %v1342_v58 = vrot.slane %v1341_v43, 5 }
 0x132   : > { %1506 = vst.msk [vmem:[#allocation2 + $0x8a] ss:$4 sm:$0x3] %vm4657_vm6, %v1319_v38  ;;  %v802_v38 = vpop.f32.mrf.mxu2  ;;  %v1346_v3 = vrot.slane %v1345_v54, 7 }
 0x133   : > { %1508 = vst.msk [vmem:[#allocation2 + $0x92] ss:$4 sm:$0x3] %vm4657_vm6, %v1321_v44  ;;  %v863_v44 = vrot.slane %v832_v22, 7 }
 0x134   : > { %1510 = vst.msk [vmem:[#allocation2 + $0x9a] ss:$4 sm:$0x3] %vm4657_vm6, %v1323_v52  ;;  %v1340_v52 = vrot.slane %v1339_v36, 4 }
 0x135   : > { %1512 = vst.msk [vmem:[#allocation2 + $0xa2] ss:$4 sm:$0x3] %vm4657_vm6, %v1325_v55  ;;  %v803_v55 = vadd.f32 %v802_v38, %v4843_v18 }
 0x136   : > { %1514 = vst.msk [vmem:[#allocation2 + $0xaa] ss:$4 sm:$0x3] %vm4657_vm6, %v1327_v59  ;;  %v1344_v59 = vrot.slane %v1343_v47, 6 }
 0x137   : > { %1516 = vst.msk [vmem:[#allocation2 + $0xb2] ss:$4 sm:$0x3] %vm4657_vm6, %v1329_v61  ;;  %v914_v60 = vsel %vm440_vm2, %v803_v55, %v863_v44  ;;  %v1254_v61 = vadd.f32 %v1253_v48, %v4653_v49  ;;  %v916_v20 = vsel %vm443_vm3, %v803_v55, %v863_v44  ;;  %v918_v18 = vsel %vm446_vm4, %v803_v55, %v863_v44 }
 0x138   : > { %1518 = vst.msk [vmem:[#allocation2 + $0xba] ss:$4 sm:$0x3] %vm4657_vm6, %v1331_v21  ;;  %v913_v21 = vsel %vm438_vm1, %v803_v55, %v863_v44  ;;  %v915_v63 = vrot.slane %v914_v60, 1  ;;  %v920_v0 = vsel %vm449_vm5, %v803_v55, %v863_v44  ;;  %v922_v5 = vsel %vm452_vm7, %v803_v55, %v863_v44 }
 0x139   : > { %1085 = vst.msk [vmem:[#allocation2 + $0x81] ss:$4 sm:$0x3] %vm4657_vm6, %v898_v2  ;;  %v1224_v2 = vpop.f32.mrf.mxu0  ;;  %v1283_v6 = vrot.slane %v1254_v61, 7  ;;  %v924_v7 = vsel %vm455_vm8, %v803_v55, %v863_v44  ;;  %v921_v8 = vrot.slane %v920_v0, 4  ;;  %v926_v9 = vsel %vm458_vm9, %v863_v44, %v803_v55 }
 0x13a   : > { %1087 = vst.msk [vmem:[#allocation2 + $0x89] ss:$4 sm:$0x3] %vm4657_vm6, %v900_v37  ;;  %v917_v37 = vrot.slane %v916_v20, 2  ;;  %v923_v11 = vrot.slane %v922_v5, 5  ;;  %v925_v12 = vrot.slane %v924_v7, 6  ;;  %v805_v48 = vpop.f32.mrf.mxu2 }
 0x13b   : > { %1089 = vst.msk [vmem:[#allocation2 + $0x91] ss:$4 sm:$0x3] %vm4657_vm6, %v902_v24  ;;  %v919_v24 = vrot.slane %v918_v18, 3  ;;  %v927_v14 = vrot.slane %v926_v9, 7  ;;  %v806_v54 = vadd.f32 %v805_v48, %v4653_v49 }
 0x13c   : > { %1091 = vst.msk [vmem:[#allocation2 + $0x99] ss:$4 sm:$0x3] %vm4657_vm6, %v904_v10  ;;  %v1225_v10 = vadd.f32 %v1224_v2, %v4653_v49 }
 0x13d   : > { %1093 = vst.msk [vmem:[#allocation2 + $0xa1] ss:$4 sm:$0x3] %vm4657_vm6, %v906_v13 }
 0x13e   : > { %1095 = vst.msk [vmem:[#allocation2 + $0xa9] ss:$4 sm:$0x3] %vm4657_vm6, %v908_v15  ;;  %v1348_v13 = vsel %vm440_vm2, %v1225_v10, %v1283_v6  ;;  %v1350_v15 = vsel %vm443_vm3, %v1225_v10, %v1283_v6  ;;  %v1347_v16 = vsel %vm438_vm1, %v1225_v10, %v1283_v6  ;;  %v1356_v29 = vsel %vm452_vm7, %v1225_v10, %v1283_v6 }
 0x13f   : > { %1097 = vst.msk [vmem:[#allocation2 + $0xb1] ss:$4 sm:$0x3] %vm4657_vm6, %v910_v17  ;;  %v1352_v17 = vsel %vm446_vm4, %v1225_v10, %v1283_v6  ;;  %v1349_v22 = vrot.slane %v1348_v13, 1  ;;  %v1351_v28 = vrot.slane %v1350_v15, 2  ;;  %v1358_v36 = vsel %vm455_vm8, %v1225_v10, %v1283_v6 }
 0x140   : > { %1099 = vst.msk [vmem:[#allocation2 + $0xb9] ss:$4 sm:$0x3] %vm4657_vm6, %v912_v25  ;;  %v1354_v25 = vsel %vm449_vm5, %v1225_v10, %v1283_v6  ;;  %v1357_v43 = vrot.slane %v1356_v29, 5 }
 0x141   : > { %1520 = vst.msk [vmem:[#allocation2 + $0xc2] ss:$4 sm:$0x3] %vm4657_vm6, %v1332_v32  ;;  %v834_v32 = vpop.f32.mrf.mxu3  ;;  %v1355_v38 = vrot.slane %v1354_v25, 4  ;;  %v1226_v7 = vpop.f32.mrf.mxu0 }
 0x142   : > { %1522 = vst.msk [vmem:[#allocation2 + $0xca] ss:$4 sm:$0x3] %vm4657_vm6, %v1334_v35  ;;  %v1353_v35 = vrot.slane %v1352_v17, 3  ;;  %v835_v44 = vadd.f32 %v834_v32, %v4653_v49 }
 0x143   : > { %1524 = vst.msk [vmem:[#allocation2 + $0xd2] ss:$4 sm:$0x3] %vm4657_vm6, %v1336_v41  ;;  %v1360_v41 = vsel %vm458_vm9, %v1283_v6, %v1225_v10 }
 0x144   : > { %1526 = vst.msk [vmem:[#allocation2 + $0xda] ss:$4 sm:$0x3] %vm4657_vm6, %v1338_v42  ;;  %v1359_v42 = vrot.slane %v1358_v36, 6  ;;  %v1361_v47 = vrot.slane %v1360_v41, 7 }
 0x145   : > { %1528 = vst.msk [vmem:[#allocation2 + $0xe2] ss:$4 sm:$0x3] %vm4657_vm6, %v1340_v52  ;;  %v864_v52 = vrot.slane %v835_v44, 7 }
 0x146   : > { %1530 = vst.msk [vmem:[#allocation2 + $0xea] ss:$4 sm:$0x3] %vm4657_vm6, %v1342_v58 }
 0x147   : > { %1532 = vst.msk [vmem:[#allocation2 + $0xf2] ss:$4 sm:$0x3] %vm4657_vm6, %v1344_v59  ;;  %v929_v55 = vsel %vm440_vm2, %v806_v54, %v864_v52  ;;  %v931_v58 = vsel %vm443_vm3, %v806_v54, %v864_v52  ;;  %v933_v59 = vsel %vm446_vm4, %v806_v54, %v864_v52  ;;  %v928_v60 = vsel %vm438_vm1, %v806_v54, %v864_v52 }
 0x148   : > { %1534 = vst.msk [vmem:[#allocation2 + $0xfa] ss:$4 sm:$0x3] %vm4657_vm6, %v1346_v3  ;;  %v930_v61 = vrot.slane %v929_v55, 1  ;;  %v935_v3 = vsel %vm449_vm5, %v806_v54, %v864_v52  ;;  %v932_v20 = vrot.slane %v931_v58, 2  ;;  %v937_v18 = vsel %vm452_vm7, %v806_v54, %v864_v52 }
 0x149   : > { %1101 = vst.msk [vmem:[#allocation2 + $0xc1] ss:$4 sm:$0x3] %vm4657_vm6, %v913_v21  ;;  %v1255_v21 = vpop.f32.mrf.mxu1  ;;  %v939_v0 = vsel %vm455_vm8, %v806_v54, %v864_v52  ;;  %v936_v2 = vrot.slane %v935_v3, 4  ;;  %v941_v49 = vsel %vm458_vm9, %v864_v52, %v806_v54 }
 0x14a   : > { %1103 = vst.msk [vmem:[#allocation2 + $0xc9] ss:$4 sm:$0x3] %vm4657_vm6, %v915_v63  ;;  %v934_v63 = vrot.slane %v933_v59, 3  ;;  %v1256_v5 = vadd.f32 %v1255_v21, %v4668_v1  ;;  %v940_v6 = vrot.slane %v939_v0, 6 }
 0x14b   : > { %1105 = vst.msk [vmem:[#allocation2 + $0xd1] ss:$4 sm:$0x3] %vm4657_vm6, %v917_v37  ;;  %v938_v37 = vrot.slane %v937_v18, 5 }
 0x14c   : > { %1107 = vst.msk [vmem:[#allocation2 + $0xd9] ss:$4 sm:$0x3] %vm4657_vm6, %v919_v24  ;;  %v942_v24 = vrot.slane %v941_v49, 7  ;;  %v5223_v9 = vrot.slane %v1256_v5, 7 }
 0x14d   : > { %1109 = vst.msk [vmem:[#allocation2 + $0xe1] ss:$4 sm:$0x3] %vm4657_vm6, %v921_v8  ;;  %v5221_v8 = vadd.f32 %v1226_v7, %v4668_v1  ;;  %v5254_v21 = vld.sshfl [vmem:[#allocation1 + $0x10] sm:$0xff pattern:$0x75316420] }
 0x14e   : > { %1111 = vst.msk [vmem:[#allocation2 + $0xe9] ss:$4 sm:$0x3] %vm4657_vm6, %v923_v11  ;;  %v5265_v5 = vld.sshfl [vmem:[#allocation1 + $0x20] sm:$0xff pattern:$0x75316420] }
 0x14f   : > { %1113 = vst.msk [vmem:[#allocation2 + $0xf1] ss:$4 sm:$0x3] %vm4657_vm6, %v925_v12  ;;  %v1363_v15 = vsel %vm440_vm2, %v5221_v8, %v5223_v9  ;;  %v1365_v17 = vsel %vm443_vm3, %v5221_v8, %v5223_v9  ;;  %v1367_v18 = vsel %vm446_vm4, %v5221_v8, %v5223_v9 }
 0x150   : > { %1115 = vst.msk [vmem:[#allocation2 + $0xf9] ss:$4 sm:$0x3] %vm4657_vm6, %v927_v14  ;;  %v1364_v44 = vrot.slane %v1363_v15, 1  ;;  %v1368_v15 = vrot.slane %v1367_v18, 3 }
 0x151   : > { %1536 = vst.msk [vmem:[#allocation2 + $0x102] ss:$4 sm:$0x3] %vm4657_vm6, %v1347_v16 }
 0x152   : > { %1538 = vst.msk [vmem:[#allocation2 + $0x10a] ss:$4 sm:$0x3] %vm4657_vm6, %v1349_v22 }
 0x153   : > { %1540 = vst.msk [vmem:[#allocation2 + $0x112] ss:$4 sm:$0x3] %vm4657_vm6, %v1351_v28 }
 0x154   : > { %1542 = vst.msk [vmem:[#allocation2 + $0x11a] ss:$4 sm:$0x3] %vm4657_vm6, %v1353_v35 }
 0x155   : > { %1544 = vst.msk [vmem:[#allocation2 + $0x122] ss:$4 sm:$0x3] %vm4657_vm6, %v1355_v38  ;;  %v1362_v38 = vsel %vm438_vm1, %v5221_v8, %v5223_v9 }
 0x156   : > { %1546 = vst.msk [vmem:[#allocation2 + $0x12a] ss:$4 sm:$0x3] %vm4657_vm6, %v1357_v43 }
 0x157   : > { %1548 = vst.msk [vmem:[#allocation2 + $0x132] ss:$4 sm:$0x3] %vm4657_vm6, %v1359_v42  ;;  %v1366_v42 = vrot.slane %v1365_v17, 2  ;;  %v836_v17 = vpop.f32.mrf.mxu3 }
 0x158   : > { %1550 = vst.msk [vmem:[#allocation2 + $0x13a] ss:$4 sm:$0x3] %vm4657_vm6, %v1361_v47 }
 0x159   : > { %1117 = vst.msk [vmem:[#allocation2 + $0x101] ss:$4 sm:$0x3] %vm4657_vm6, %v928_v60  ;;  %v5244_v60 = vld.sshfl [vmem:[#allocation1] sm:$0xff pattern:$0x75316420] }
 0x15a   : > { %1119 = vst.msk [vmem:[#allocation2 + $0x109] ss:$4 sm:$0x3] %vm4657_vm6, %v930_v61  ;;  %v5246_v61 = vld.sshfl [vmem:[#allocation1 + $0x8] sm:$0xff pattern:$0x75316420] }
 0x15b   : > { %1121 = vst.msk [vmem:[#allocation2 + $0x111] ss:$4 sm:$0x3] %vm4657_vm6, %v932_v20 }
 0x15c   : > { %1123 = vst.msk [vmem:[#allocation2 + $0x119] ss:$4 sm:$0x3] %vm4657_vm6, %v934_v63  ;;  %v5256_v63 = vld.sshfl [vmem:[#allocation1 + $0x18] sm:$0xff pattern:$0x75316420] }
 0x15d   : > { %1125 = vst.msk [vmem:[#allocation2 + $0x121] ss:$4 sm:$0x3] %vm4657_vm6, %v936_v2 }
 0x15e   : > { %1127 = vst.msk [vmem:[#allocation2 + $0x129] ss:$4 sm:$0x3] %vm4657_vm6, %v938_v37  ;;  %v1369_v37 = vsel %vm449_vm5, %v5221_v8, %v5223_v9 }
 0x15f   : > { %1129 = vst.msk [vmem:[#allocation2 + $0x131] ss:$4 sm:$0x3] %vm4657_vm6, %v940_v6  ;;  %v5267_v6 = vld.sshfl [vmem:[#allocation1 + $0x28] sm:$0xff pattern:$0x75316420] }
 0x160   : > { %1131 = vst.msk [vmem:[#allocation2 + $0x139] ss:$4 sm:$0x3] %vm4657_vm6, %v942_v24  ;;  %v1766_v10 = vld [vmem:[#allocation2 + $0x101] ss:$4 sm:$0x3] }
 0x161   : > { %v1768_v11 = vld [vmem:[#allocation2 + $0x109] ss:$4 sm:$0x3]  ;;  %v1790_v12 = vperm.slane %v1766_v10, 1  ;;  %v1789_v22 = vperm.slane %v1766_v10, 0  ;;  %6829 = vst [vmem:[#allocation10_spill] sm:$0xff] %v5265_v5 }
 0x162   : > { %v1770_v13 = vld [vmem:[#allocation2 + $0x111] ss:$4 sm:$0x3]  ;;  %v1792_v14 = vperm.slane %v1768_v11, 1  ;;  %v1791_v32 = vperm.slane %v1768_v11, 0  ;;  %6830 = vst [vmem:[#allocation11_spill] sm:$0xff] %v5267_v6  ;;  %v1371_v11 = vsel %vm452_vm7, %v5221_v8, %v5223_v9 }
 0x163   : > { %v1772_v16 = vld [vmem:[#allocation2 + $0x119] ss:$4 sm:$0x3]  ;;  %v1794_v25 = vperm.slane %v1770_v13, 1  ;;  %v1805_v28 = vrot.slane %v1790_v12, 4  ;;  %v1793_v41 = vperm.slane %v1770_v13, 0 }
 0x164   : > { %v5235_v29 = vld [vmem:[#allocation2 + $0x121] ss:$4 sm:$0x3]  ;;  %v1796_v35 = vperm.slane %v1772_v16, 1  ;;  %v1806_v36 = vrot.slane %v1792_v14, 4  ;;  %v1795_v47 = vperm.slane %v1772_v16, 0 }
 0x165   : > { %v1807_v43 = vrot.slane %v1794_v25, 4  ;;  %v1813_v52 = vsel %vm1656_vm10, %v1789_v22, %v1805_v28  ;;  %v1776_v55 = vld [vmem:[#allocation2 + $0x129] ss:$4 sm:$0x3]  ;;  %v1798_v58 = vperm.slane %v5235_v29, 1  ;;  %v1370_v28 = vrot.slane %v1369_v37, 4 }
 0x166   : > { %v1808_v48 = vrot.slane %v1796_v35, 4  ;;  %v1814_v54 = vsel %vm1656_vm10, %v1791_v32, %v1806_v36  ;;  %v1778_v3 = vld [vmem:[#allocation2 + $0x131] ss:$4 sm:$0x3]  ;;  %v1829_v2 = vmul.f32 %v1813_v52, %v4956_v51  ;;  %v1800_v24 = vperm.slane %v1776_v55, 1 }
 0x167   : > { %v1815_v59 = vsel %vm1656_vm10, %v1793_v41, %v1807_v43  ;;  %1552 = vst.msk [vmem:[#allocation2 + $0x142] ss:$4 sm:$0x3] %vm4657_vm6, %v1362_v38  ;;  %v1780_v0 = vld [vmem:[#allocation2 + $0x139] ss:$4 sm:$0x3]  ;;  %v1830_v49 = vmul.f32 %v1814_v54, %v4963_v57  ;;  %v837_v41 = vadd.f32 %v836_v17, %v4668_v1 }
 0x168   : > { %v1816_v20 = vsel %vm1656_vm10, %v1795_v47, %v1808_v48  ;;  %1554 = vst.msk [vmem:[#allocation2 + $0x14a] ss:$4 sm:$0x3] %vm4657_vm6, %v1364_v44  ;;  %v1831_v7 = vmul.f32 %v1815_v59, %v4973_v62  ;;  %v5276_v12 = vld.sshfl [vmem:[#allocation1 + $0x30] sm:$0xff pattern:$0x75316420] }
 0x169   : > { %v1832_v10 = vmul.f32 %v1816_v20, %v4982_v4  ;;  %1556 = vst.msk [vmem:[#allocation2 + $0x152] ss:$4 sm:$0x3] %vm4657_vm6, %v1366_v42  ;;  %v5278_v13 = vld.sshfl [vmem:[#allocation1 + $0x38] sm:$0xff pattern:$0x75316420] }
 0x16a   : > { %6831 = vst [vmem:[#allocation12_spill] sm:$0xff] %v5276_v12  ;;  %v1802_v14 = vperm.slane %v1778_v3, 1  ;;  %v5280_v16 = vld [vmem:[#allocation2 + $0x102] ss:$4 sm:$0x3]  ;;  %v1804_v25 = vperm.slane %v1780_v0, 1 }
 0x16b   : > { %6832 = vst [vmem:[#allocation13_spill] sm:$0xff] %v5278_v13  ;;  %v5282_v22 = vld [vmem:[#allocation2 + $0x10a] ss:$4 sm:$0x3]  ;;  %v1809_v32 = vrot.slane %v1798_v58, 4  ;;  %v1372_v35 = vrot.slane %v1371_v11, 5 }
 0x16c   : > { %1845 = vst [vmem:[#allocation1] ss:$2 sm:$0xff] %v1829_v2  ;;  %v5284_v36 = vld [vmem:[#allocation2 + $0x112] ss:$4 sm:$0x3]  ;;  %v1810_v38 = vrot.slane %v1800_v24, 4  ;;  %v1373_v24 = vsel %vm455_vm8, %v5221_v8, %v5223_v9 }
 0x16d   : > { %1849 = vst [vmem:[#allocation1 + $0x10] ss:$2 sm:$0xff] %v1830_v49  ;;  %v1797_v43 = vperm.slane %v5235_v29, 0  ;;  %v1811_v44 = vrot.slane %v1802_v14, 4  ;;  %v1799_v42 = vperm.slane %v1776_v55, 0  ;;  %v1812_v47 = vrot.slane %v1804_v25, 4 }
 0x16e   : > { %1853 = vst [vmem:[#allocation1 + $0x20] ss:$2 sm:$0xff] %v1831_v7  ;;  %v1945_v48 = vperm.slane %v5280_v16, 1  ;;  %v1947_v52 = vperm.slane %v5282_v22, 1  ;;  %v1801_v54 = vperm.slane %v1778_v3, 0  ;;  %v1949_v59 = vperm.slane %v5284_v36, 1 }
 0x16f   : > { %1857 = vst [vmem:[#allocation1 + $0x30] ss:$2 sm:$0xff] %v1832_v10  ;;  %v1817_v58 = vsel %vm1656_vm10, %v1797_v43, %v1809_v32  ;;  %v1927_v29 = vld [vmem:[#allocation2 + $0x11a] ss:$4 sm:$0x3]  ;;  %v1803_v20 = vperm.slane %v1780_v0, 0  ;;  %v1818_v55 = vsel %vm1656_vm10, %v1799_v42, %v1810_v38  ;;  %v1375_v14 = vsel %vm458_vm9, %v5223_v9, %v5221_v8 }
 0x170   : > { %1558 = vst.msk [vmem:[#allocation2 + $0x15a] ss:$4 sm:$0x3] %vm4657_vm6, %v1368_v15  ;;  %v5301_v2 = vrot.slane %v837_v41, 7  ;;  %v1819_v49 = vsel %vm1656_vm10, %v1801_v54, %v1811_v44  ;;  %v1833_v0 = vmul.f32 %v1817_v58, %v4988_v19  ;;  %v807_v15 = vpop.f32.mrf.mxu2  ;;  %v1834_v17 = vmul.f32 %v1818_v55, %v4992_v23 }
 0x171   : > { %1560 = vst.msk [vmem:[#allocation2 + $0x162] ss:$4 sm:$0x3] %vm4657_vm6, %v1370_v28  ;;  %v1820_v7 = vsel %vm1656_vm10, %v1803_v20, %v1812_v47  ;;  %v1835_v32 = vmul.f32 %v1819_v49, %v4996_v27  ;;  %v1374_v38 = vrot.slane %v1373_v24, 6  ;;  %v1951_v41 = vperm.slane %v1927_v29, 1 }
 0x172   : > { %1562 = vst.msk [vmem:[#allocation2 + $0x16a] ss:$4 sm:$0x3] %vm4657_vm6, %v1372_v35  ;;  %v1836_v43 = vmul.f32 %v1820_v7, %v5000_v30  ;;  %v1376_v44 = vrot.slane %v1375_v14, 7  ;;  %v5330_v8 = vadd.f32 %v807_v15, %v4668_v1  ;;  %v1960_v9 = vrot.slane %v1945_v48, 4 }
 0x173   : > { %v5299_v18 = vld.sshfl [vmem:[#allocation1] sm:$0xff pattern:$0x75316420]  ;;  %v5304_v37 = vld.sshfl [vmem:[#allocation1 + $0x8] sm:$0xff pattern:$0x75316420] }
 0x174   : > { %v5306_v3 = vld.sshfl [vmem:[#allocation1 + $0x10] sm:$0xff pattern:$0x75316420]  ;;  %v5313_v10 = vld.sshfl [vmem:[#allocation1 + $0x18] sm:$0xff pattern:$0x75316420]  ;;  %v943_v54 = vsel %vm438_vm1, %v5330_v8, %v5301_v2 }
 0x175   : > { %v5315_v11 = vld.sshfl [vmem:[#allocation1 + $0x20] sm:$0xff pattern:$0x75316420]  ;;  %v5321_v25 = vld.sshfl [vmem:[#allocation1 + $0x28] sm:$0xff pattern:$0x75316420] }
 0x176   : > { %6833 = vst [vmem:[#allocation14_spill] sm:$0xff] %v5321_v25  ;;  %v5323_v28 = vld.sshfl [vmem:[#allocation1 + $0x30] sm:$0xff pattern:$0x75316420]  ;;  %v1961_v47 = vrot.slane %v1947_v52, 4  ;;  %v1944_v58 = vperm.slane %v5280_v16, 0 }
 0x177   : > { %v5326_v35 = vld.sshfl [vmem:[#allocation1 + $0x38] sm:$0xff pattern:$0x75316420]  ;;  %1860 = vst [vmem:[#allocation1] ss:$2 sm:$0xff] %v1833_v0  ;;  %v1962_v20 = vrot.slane %v1949_v59, 4 }
 0x178   : > { %6834 = vst [vmem:[#allocation15_spill] sm:$0xff] %v5326_v35  ;;  %v1929_v42 = vld [vmem:[#allocation2 + $0x122] ss:$4 sm:$0x3]  ;;  %v1946_v55 = vperm.slane %v5282_v22, 0  ;;  %v1963_v49 = vrot.slane %v1951_v41, 4  ;;  %v1968_v7 = vsel %vm1656_vm10, %v1944_v58, %v1960_v9 }
 0x179   : > { %1863 = vst [vmem:[#allocation1 + $0x10] ss:$2 sm:$0xff] %v1834_v17  ;;  %v1931_v1 = vld [vmem:[#allocation2 + $0x12a] ss:$4 sm:$0x3]  ;;  %v1948_v48 = vperm.slane %v5284_v36, 0 }
 0x17a   : > { %1866 = vst [vmem:[#allocation1 + $0x20] ss:$2 sm:$0xff] %v1835_v32  ;;  %v1950_v52 = vperm.slane %v1927_v29, 0  ;;  %v1953_v24 = vperm.slane %v1929_v42, 1  ;;  %v1969_v59 = vsel %vm1656_vm10, %v1946_v55, %v1961_v47  ;;  %v1984_v29 = vmul.f32 %v1968_v7, %v4956_v51 }
 0x17b   : > { %1869 = vst [vmem:[#allocation1 + $0x30] ss:$2 sm:$0xff] %v1836_v43  ;;  %v1933_v16 = vld [vmem:[#allocation2 + $0x132] ss:$4 sm:$0x3]  ;;  %v1970_v14 = vsel %vm1656_vm10, %v1948_v48, %v1962_v20  ;;  %v1985_v41 = vmul.f32 %v1969_v59, %v4963_v57  ;;  %v1955_v9 = vperm.slane %v1931_v1, 1 }
 0x17c   : > { %1564 = vst.msk [vmem:[#allocation2 + $0x172] ss:$4 sm:$0x3] %vm4657_vm6, %v1374_v38  ;;  %v1935_v22 = vld [vmem:[#allocation2 + $0x13a] ss:$4 sm:$0x3]  ;;  %v1971_v36 = vsel %vm1656_vm10, %v1950_v52, %v1963_v49  ;;  %v1986_v47 = vmul.f32 %v1970_v14, %v4973_v62 }
 0x17d   : > { %1566 = vst.msk [vmem:[#allocation2 + $0x17a] ss:$4 sm:$0x3] %vm4657_vm6, %v1376_v44  ;;  %v1957_v58 = vperm.slane %v1933_v16, 1  ;;  %v1987_v20 = vmul.f32 %v1971_v36, %v4982_v4  ;;  %v1959_v51 = vperm.slane %v1935_v22, 1  ;;  %v1964_v55 = vrot.slane %v1953_v24, 4 }
 0x17e   : > { %1133 = vst.msk [vmem:[#allocation2 + $0x141] ss:$4 sm:$0x3] %vm4657_vm6, %v943_v54  ;;  %v5346_v0 = vld.sshfl [vmem:[#allocation1] sm:$0xff pattern:$0x75316420] }
 0x17f   : > { %v5349_v15 = vld.sshfl [vmem:[#allocation1 + $0x8] sm:$0xff pattern:$0x75316420]  ;;  %v1965_v49 = vrot.slane %v1955_v9, 4  ;;  %v1952_v57 = vperm.slane %v1929_v42, 0  ;;  %v1966_v48 = vrot.slane %v1957_v58, 4 }
 0x180   : > { %6835 = vst [vmem:[#allocation16_spill] sm:$0xff] %v5349_v15  ;;  %v5351_v17 = vld.sshfl [vmem:[#allocation1 + $0x10] sm:$0xff pattern:$0x75316420]  ;;  %v1954_v52 = vperm.slane %v1931_v1, 0  ;;  %v1967_v7 = vrot.slane %v1959_v51, 4 }
 0x181   : > { %6836 = vst [vmem:[#allocation17_spill] sm:$0xff] %v5351_v17  ;;  %v5355_v32 = vld.sshfl [vmem:[#allocation1 + $0x18] sm:$0xff pattern:$0x75316420]  ;;  %v1972_v62 = vsel %vm1656_vm10, %v1952_v57, %v1964_v55 }
 0x182   : > { %6837 = vst [vmem:[#allocation18_spill] sm:$0xff] %v5355_v32  ;;  %v5357_v38 = vld.sshfl [vmem:[#allocation1 + $0x20] sm:$0xff pattern:$0x75316420] }
 0x183   : > { %6838 = vst [vmem:[#allocation19_spill] sm:$0xff] %v5357_v38  ;;  %v5360_v43 = vld.sshfl [vmem:[#allocation1 + $0x28] sm:$0xff pattern:$0x75316420] }
 0x184   : > { %6839 = vst [vmem:[#allocation20_spill] sm:$0xff] %v5360_v43  ;;  %v5362_v44 = vld.sshfl [vmem:[#allocation1 + $0x30] sm:$0xff pattern:$0x75316420]  ;;  %v1956_v43 = vperm.slane %v1933_v16, 0  ;;  %v1988_v16 = vmul.f32 %v1972_v62, %v4988_v19 }
 0x185   : > { %6840 = vst [vmem:[#allocation21_spill] sm:$0xff] %v5362_v44  ;;  %v5365_v54 = vld.sshfl [vmem:[#allocation1 + $0x38] sm:$0xff pattern:$0x75316420]  ;;  %v1973_v44 = vsel %vm1656_vm10, %v1954_v52, %v1965_v49 }
 0x186   : > { %6841 = vst [vmem:[#allocation22_spill] sm:$0xff] %v5365_v54  ;;  %v2085_v59 = vld [vmem:[#allocation2 + $0x140] ss:$4 sm:$0x3]  ;;  %v1974_v36 = vsel %vm1656_vm10, %v1956_v43, %v1966_v48 }
 0x187   : > { %2000 = vst [vmem:[#allocation1] ss:$2 sm:$0xff] %v1984_v29  ;;  %v2087_v14 = vld [vmem:[#allocation2 + $0x148] ss:$4 sm:$0x3]  ;;  %v1958_v29 = vperm.slane %v1935_v22, 0  ;;  %v1989_v22 = vmul.f32 %v1973_v44, %v4992_v23  ;;  %v1990_v51 = vmul.f32 %v1974_v36, %v4996_v27 }
 0x188   : > { %2004 = vst [vmem:[#allocation1 + $0x10] ss:$2 sm:$0xff] %v1985_v41  ;;  %v2089_v54 = vld [vmem:[#allocation2 + $0x150] ss:$4 sm:$0x3]  ;;  %v2109_v43 = vperm.slane %v2085_v59, 1 }
 0x189   : > { %2008 = vst [vmem:[#allocation1 + $0x20] ss:$2 sm:$0xff] %v1986_v47  ;;  %v2091_v42 = vld [vmem:[#allocation2 + $0x158] ss:$4 sm:$0x3]  ;;  %v1975_v1 = vsel %vm1656_vm10, %v1958_v29, %v1967_v7  ;;  %v2111_v49 = vperm.slane %v2087_v14, 1 }
 0x18a   : > { %2012 = vst [vmem:[#allocation1 + $0x30] ss:$2 sm:$0xff] %v1987_v20  ;;  %v2113_v57 = vperm.slane %v2089_v54, 1  ;;  %v1991_v19 = vmul.f32 %v1975_v1, %v5000_v30  ;;  %v2115_v48 = vperm.slane %v2091_v42, 1  ;;  %v2108_v52 = vperm.slane %v2085_v59, 0 }
 0x18b   : > { %v2110_v23 = vperm.slane %v2087_v14, 0  ;;  %v2124_v44 = vrot.slane %v2109_v43, 4  ;;  %v2112_v7 = vperm.slane %v2089_v54, 0  ;;  %v2114_v62 = vperm.slane %v2091_v42, 0  ;;  %v5392_v27 = vld [vmem:[#allocation2 + $0x40] sm:$0x77] }
 0x18c   : > { %v2125_v29 = vrot.slane %v2111_v49, 4  ;;  %v2126_v32 = vrot.slane %v2113_v57, 4  ;;  %v5394_v36 = vld [vmem:[#allocation2 + $0x48] sm:$0x77]  ;;  %v2127_v30 = vrot.slane %v2115_v48, 4 }
 0x18d   : > { %v5398_v1 = vld [vmem:[#allocation2 + $0x58] sm:$0x77]  ;;  %v2097_v59 = vld [vmem:[#allocation2 + $0x170] ss:$4 sm:$0x3]  ;;  %v2132_v54 = vsel %vm1656_vm10, %v2108_v52, %v2124_v44  ;;  %v944_v52 = vsel %vm440_vm2, %v5330_v8, %v5301_v2 }
 0x18e   : > { %v5370_v4 = vld.sshfl [vmem:[#allocation1] sm:$0xff pattern:$0x75316420]  ;;  %v5373_v24 = vld.sshfl [vmem:[#allocation1 + $0x8] sm:$0xff pattern:$0x75316420]  ;;  %v2148_v49 = vmul.f32 %v2132_v54, %v5392_v27  ;;  %v2134_v48 = vsel %vm1656_vm10, %v2112_v7, %v2126_v32  ;;  %v948_v7 = vsel %vm446_vm4, %v5330_v8, %v5301_v2 }
 0x18f   : > { %6842 = vst [vmem:[#allocation23_spill] sm:$0xff] %v5370_v4  ;;  %v5375_v41 = vld.sshfl [vmem:[#allocation1 + $0x10] sm:$0xff pattern:$0x75316420] }
 0x190   : > { %6843 = vst [vmem:[#allocation24_spill] sm:$0xff] %v5373_v24  ;;  %v5379_v9 = vld.sshfl [vmem:[#allocation1 + $0x18] sm:$0xff pattern:$0x75316420] }
 0x191   : > { %6844 = vst [vmem:[#allocation25_spill] sm:$0xff] %v5379_v9  ;;  %v5381_v47 = vld.sshfl [vmem:[#allocation1 + $0x20] sm:$0xff pattern:$0x75316420] }
 0x192   : > { %6845 = vst [vmem:[#allocation26_spill] sm:$0xff] %v5381_v47  ;;  %v5384_v58 = vld.sshfl [vmem:[#allocation1 + $0x28] sm:$0xff pattern:$0x75316420] }
 0x193   : > { %6846 = vst [vmem:[#allocation27_spill] sm:$0xff] %v5384_v58  ;;  %v5386_v20 = vld.sshfl [vmem:[#allocation1 + $0x30] sm:$0xff pattern:$0x75316420] }
 0x194   : > { %6847 = vst [vmem:[#allocation28_spill] sm:$0xff] %v5386_v20  ;;  %v5389_v55 = vld.sshfl [vmem:[#allocation1 + $0x38] sm:$0xff pattern:$0x75316420] }
 0x195   : > { %6848 = vst [vmem:[#allocation29_spill] sm:$0xff] %v5389_v55  ;;  %v2093_v20 = vld [vmem:[#allocation2 + $0x160] ss:$4 sm:$0x3] }
 0x196   : > { %2015 = vst [vmem:[#allocation1] ss:$2 sm:$0xff] %v1988_v16  ;;  %v5396_v16 = vld [vmem:[#allocation2 + $0x50] sm:$0x77]  ;;  %v2117_v44 = vperm.slane %v2093_v20, 1 }
 0x197   : > { %2018 = vst [vmem:[#allocation1 + $0x10] ss:$2 sm:$0xff] %v1989_v22  ;;  %v2095_v55 = vld [vmem:[#allocation2 + $0x168] ss:$4 sm:$0x3]  ;;  %v2150_v54 = vmul.f32 %v2134_v48, %v5396_v16  ;;  %v949_v48 = vrot.slane %v948_v7, 3 }
 0x198   : > { %2021 = vst [vmem:[#allocation1 + $0x20] ss:$2 sm:$0xff] %v1990_v51  ;;  %v5402_v14 = vld [vmem:[#allocation2 + $0x178] ss:$4 sm:$0x3]  ;;  %v2133_v51 = vsel %vm1656_vm10, %v2110_v23, %v2125_v29  ;;  %v946_v23 = vsel %vm443_vm3, %v5330_v8, %v5301_v2  ;;  %v2135_v29 = vsel %vm1656_vm10, %v2114_v62, %v2127_v30  ;;  %v2116_v62 = vperm.slane %v2093_v20, 0 }
 0x199   : > { %2024 = vst [vmem:[#allocation1 + $0x30] ss:$2 sm:$0xff] %v1991_v19  ;;  %v2118_v30 = vperm.slane %v2095_v55, 0  ;;  %v5443_v20 = vld [vmem:[#allocation2 + $0x60] sm:$0x77] }
 0x19a   : > { %1139 = vst.msk [vmem:[#allocation2 + $0x159] ss:$4 sm:$0x3] %vm4657_vm6, %v949_v48  ;;  %v5551_v24 = vld [vmem:[#allocation2 + $0x15a] ss:$4 sm:$0x3] }
 0x19d   : > { %v5400_v22 = vld.sshfl [vmem:[#allocation1] sm:$0xff pattern:$0x75316420]  ;;  %v5405_v42 = vld.sshfl [vmem:[#allocation1 + $0x8] sm:$0xff pattern:$0x75316420] }
 0x19e   : > { %6849 = vst [vmem:[#allocation30_spill] sm:$0xff] %v5400_v22  ;;  %v5407_v43 = vld.sshfl [vmem:[#allocation1 + $0x10] sm:$0xff pattern:$0x75316420]  ;;  %v2149_v22 = vmul.f32 %v2133_v51, %v5394_v36  ;;  %v2119_v51 = vperm.slane %v2095_v55, 1 }
 0x19f   : > { %6850 = vst [vmem:[#allocation31_spill] sm:$0xff] %v5405_v42  ;;  %v5411_v57 = vld.sshfl [vmem:[#allocation1 + $0x18] sm:$0xff pattern:$0x75316420]  ;;  %v2128_v42 = vrot.slane %v2117_v44, 4 }
 0x1a0   : > { %6851 = vst [vmem:[#allocation32_spill] sm:$0xff] %v5407_v43  ;;  %v5413_v19 = vld.sshfl [vmem:[#allocation1 + $0x20] sm:$0xff pattern:$0x75316420]  ;;  %v947_v43 = vrot.slane %v946_v23, 2 }
 0x1a1   : > { %6852 = vst [vmem:[#allocation33_spill] sm:$0xff] %v5411_v57  ;;  %v5417_v38 = vld.sshfl [vmem:[#allocation1 + $0x28] sm:$0xff pattern:$0x75316420]  ;;  %v945_v57 = vrot.slane %v944_v52, 1 }
 0x1a2   : > { %6853 = vst [vmem:[#allocation34_spill] sm:$0xff] %v5413_v19  ;;  %v5419_v13 = vld.sshfl [vmem:[#allocation1 + $0x30] sm:$0xff pattern:$0x75316420]  ;;  %v2123_v19 = vperm.slane %v5402_v14, 1 }
 0x1a3   : > { %6854 = vst [vmem:[#allocation35_spill] sm:$0xff] %v5417_v38  ;;  %v5429_v32 = vld.sshfl [vmem:[#allocation1 + $0x38] sm:$0xff pattern:$0x75316420]  ;;  %v2151_v38 = vmul.f32 %v2135_v29, %v5398_v1  ;;  %v2129_v29 = vrot.slane %v2119_v51, 4 }
 0x1a4   : > { %6855 = vst [vmem:[#allocation36_spill] sm:$0xff] %v5419_v13  ;;  %v2121_v13 = vperm.slane %v2097_v59, 1  ;;  %v5447_v55 = vld [vmem:[#allocation2 + $0x70] sm:$0x77] }
 0x1a5   : > { %6856 = vst [vmem:[#allocation37_spill] sm:$0xff] %v5429_v32  ;;  %v2120_v32 = vperm.slane %v2097_v59, 0  ;;  %v5449_v59 = vld [vmem:[#allocation2 + $0x78] sm:$0x77]  ;;  %v2137_v23 = vsel %vm1656_vm10, %v2118_v30, %v2129_v29  ;;  %v954_v30 = vsel %vm455_vm8, %v5330_v8, %v5301_v2 }
 0x1a6   : > { %2164 = vst [vmem:[#allocation1] ss:$2 sm:$0xff] %v2148_v49  ;;  %v2122_v49 = vperm.slane %v5402_v14, 0  ;;  %v2130_v12 = vrot.slane %v2121_v13, 4 }
 0x1a7   : > { %2168 = vst [vmem:[#allocation1 + $0x10] ss:$2 sm:$0xff] %v2149_v22  ;;  %v2240_v22 = vld [vmem:[#allocation2 + $0x141] ss:$4 sm:$0x3] }
 0x1a8   : > { %2172 = vst [vmem:[#allocation1 + $0x20] ss:$2 sm:$0xff] %v2150_v54  ;;  %v2131_v54 = vrot.slane %v2123_v19, 4  ;;  %v950_v19 = vsel %vm449_vm5, %v5330_v8, %v5301_v2  ;;  %v2138_v48 = vsel %vm1656_vm10, %v2120_v32, %v2130_v12 }
 0x1a9   : > { %2176 = vst [vmem:[#allocation1 + $0x30] ss:$2 sm:$0xff] %v2151_v38  ;;  %v5445_v38 = vld [vmem:[#allocation2 + $0x68] sm:$0x77] }
 0x1aa   : > { %1135 = vst.msk [vmem:[#allocation2 + $0x149] ss:$4 sm:$0x3] %vm4657_vm6, %v945_v57  ;;  %v2264_v57 = vperm.slane %v2240_v22, 1  ;;  %v2139_v29 = vsel %vm1656_vm10, %v2122_v49, %v2131_v54  ;;  %v956_v49 = vsel %vm458_vm9, %v5301_v2, %v5330_v8  ;;  %v2263_v54 = vperm.slane %v2240_v22, 0 }
 0x1ab   : > { %1137 = vst.msk [vmem:[#allocation2 + $0x151] ss:$4 sm:$0x3] %vm4657_vm6, %v947_v43  ;;  %v2136_v43 = vsel %vm1656_vm10, %v2116_v62, %v2128_v42  ;;  %v952_v42 = vsel %vm452_vm7, %v5330_v8, %v5301_v2  ;;  %v1258_v62 = vpop.f32.mrf.mxu1  ;;  %v2155_v12 = vmul.f32 %v2139_v29, %v5449_v59  ;;  %v957_v2 = vrot.slane %v956_v49, 7 }
 0x1ac   : > { %v2152_v44 = vmul.f32 %v2136_v43, %v5443_v20  ;;  %v2154_v43 = vmul.f32 %v2138_v48, %v5447_v55  ;;  %v953_v32 = vrot.slane %v952_v42, 5  ;;  %v2246_v29 = vld [vmem:[#allocation2 + $0x159] ss:$4 sm:$0x3] }
 0x1ad   : > { %v5451_v14 = vld.sshfl [vmem:[#allocation1] sm:$0xff pattern:$0x75316420]  ;;  %v5454_v52 = vld.sshfl [vmem:[#allocation1 + $0x8] sm:$0xff pattern:$0x75316420] }
 0x1ae   : > { %6857 = vst [vmem:[#allocation38_spill] sm:$0xff] %v5451_v14  ;;  %v5456_v13 = vld.sshfl [vmem:[#allocation1 + $0x10] sm:$0xff pattern:$0x75316420] }
 0x1af   : > { %6858 = vst [vmem:[#allocation39_spill] sm:$0xff] %v5454_v52  ;;  %v5463_v7 = vld.sshfl [vmem:[#allocation1 + $0x18] sm:$0xff pattern:$0x75316420]  ;;  %v2153_v52 = vmul.f32 %v2137_v23, %v5445_v38  ;;  %v1259_v23 = vadd.f32 %v1258_v62, %v4727_v50 }
 0x1b0   : > { %6859 = vst [vmem:[#allocation40_spill] sm:$0xff] %v5456_v13  ;;  %v5465_v51 = vld.sshfl [vmem:[#allocation1 + $0x20] sm:$0xff pattern:$0x75316420] }
 0x1b1   : > { %6860 = vst [vmem:[#allocation41_spill] sm:$0xff] %v5463_v7  ;;  %v5472_v14 = vld.sshfl [vmem:[#allocation1 + $0x28] sm:$0xff pattern:$0x75316420] }
 0x1b2   : > { %6861 = vst [vmem:[#allocation42_spill] sm:$0xff] %v5465_v51  ;;  %v5474_v15 = vld.sshfl [vmem:[#allocation1 + $0x30] sm:$0xff pattern:$0x75316420]  ;;  %v951_v51 = vrot.slane %v950_v19, 4  ;;  %v5495_v19 = vrot.slane %v1259_v23, 7 }
 0x1b3   : > { %6862 = vst [vmem:[#allocation43_spill] sm:$0xff] %v5472_v14  ;;  %v5481_v7 = vld.sshfl [vmem:[#allocation1 + $0x38] sm:$0xff pattern:$0x75316420]  ;;  %v955_v14 = vrot.slane %v954_v30, 6 }
 0x1b4   : > { %6863 = vst [vmem:[#allocation44_spill] sm:$0xff] %v5474_v15  ;;  %v2279_v15 = vrot.slane %v2264_v57, 4  ;;  %v2242_v57 = vld [vmem:[#allocation2 + $0x149] ss:$4 sm:$0x3] }
 0x1b5   : > { %6864 = vst [vmem:[#allocation45_spill] sm:$0xff] %v5481_v7  ;;  %v2244_v8 = vld [vmem:[#allocation2 + $0x151] ss:$4 sm:$0x3] }
 0x1b6   : > { %2179 = vst [vmem:[#allocation1] ss:$2 sm:$0xff] %v2152_v44  ;;  %v1229_v44 = vpop.f32.mrf.mxu0  ;;  %v2287_v42 = vsel %vm1656_vm10, %v2263_v54, %v2279_v15  ;;  %v2267_v7 = vperm.slane %v2244_v8, 0 }
 0x1b7   : > { %2182 = vst [vmem:[#allocation1 + $0x10] ss:$2 sm:$0xff] %v2153_v52  ;;  %v5493_v52 = vadd.f32 %v1229_v44, %v4727_v50  ;;  %v2303_v48 = vmul.f32 %v2287_v42, %v5392_v27  ;;  %v2265_v44 = vperm.slane %v2242_v57, 0 }
 0x1b8   : > { %2185 = vst [vmem:[#allocation1 + $0x20] ss:$2 sm:$0xff] %v2154_v43  ;;  %v2268_v43 = vperm.slane %v2244_v8, 1 }
 0x1b9   : > { %2188 = vst [vmem:[#allocation1 + $0x30] ss:$2 sm:$0xff] %v2155_v12  ;;  %v1378_v30 = vsel %vm440_vm2, %v5493_v52, %v5495_v19  ;;  %v1377_v15 = vsel %vm438_vm1, %v5493_v52, %v5495_v19 }
 0x1ba   : > { %1141 = vst.msk [vmem:[#allocation2 + $0x161] ss:$4 sm:$0x3] %vm4657_vm6, %v951_v51  ;;  %v2266_v51 = vperm.slane %v2242_v57, 1  ;;  %v2281_v54 = vrot.slane %v2268_v43, 4 }
 0x1bb   : > { %1143 = vst.msk [vmem:[#allocation2 + $0x169] ss:$4 sm:$0x3] %vm4657_vm6, %v953_v32  ;;  %v2270_v32 = vperm.slane %v2246_v29, 1 }
 0x1bc   : > { %1145 = vst.msk [vmem:[#allocation2 + $0x171] ss:$4 sm:$0x3] %vm4657_vm6, %v955_v14  ;;  %v1379_v14 = vrot.slane %v1378_v30, 1  ;;  %v2280_v23 = vrot.slane %v2266_v51, 4  ;;  %v2269_v51 = vperm.slane %v2246_v29, 0  ;;  %v1380_v29 = vsel %vm443_vm3, %v5493_v52, %v5495_v19 }
 0x1bd   : > { %v5500_v62 = vld.sshfl [vmem:[#allocation1] sm:$0xff pattern:$0x75316420]  ;;  %v5502_v22 = vld.sshfl [vmem:[#allocation1 + $0x8] sm:$0xff pattern:$0x75316420] }
 0x1be   : > { %6865 = vst [vmem:[#allocation46_spill] sm:$0xff] %v5500_v62  ;;  %v2282_v13 = vrot.slane %v2270_v32, 4  ;;  %v2288_v57 = vsel %vm1656_vm10, %v2265_v44, %v2280_v23 }
 0x1bf   : > { %6866 = vst [vmem:[#allocation47_spill] sm:$0xff] %v5502_v22  ;;  %v5515_v22 = vld.sshfl [vmem:[#allocation1 + $0x10] sm:$0xff pattern:$0x75316420] }
 0x1c0   : > { %2319 = vst [vmem:[#allocation1] ss:$2 sm:$0xff] %v2303_v48  ;;  %v5517_v48 = vld.sshfl [vmem:[#allocation1 + $0x18] sm:$0xff pattern:$0x75316420]  ;;  %v2290_v17 = vsel %vm1656_vm10, %v2269_v51, %v2282_v13 }
 0x1c1   : > { %1147 = vst.msk [vmem:[#allocation2 + $0x179] ss:$4 sm:$0x3] %vm4657_vm6, %v957_v2  ;;  %v2248_v12 = vld [vmem:[#allocation2 + $0x161] ss:$4 sm:$0x3] }
 0x1c2   : > { %v2250_v49 = vld [vmem:[#allocation2 + $0x169] ss:$4 sm:$0x3]  ;;  %v2272_v42 = vperm.slane %v2248_v12, 1  ;;  %6867 = vst [vmem:[#allocation48_spill] sm:$0xff] %v5515_v22  ;;  %v2271_v47 = vperm.slane %v2248_v12, 0 }
 0x1c3   : > { %1568 = vst.msk [vmem:[#allocation2 + $0x182] ss:$4 sm:$0x3] %vm4657_vm6, %v1377_v15  ;;  %v5519_v2 = vld [vmem:[#allocation2 + $0x142] ss:$4 sm:$0x3] }
 0x1c4   : > { %6868 = vst [vmem:[#allocation49_spill] sm:$0xff] %v5517_v48  ;;  %v2274_v62 = vperm.slane %v2250_v49, 1  ;;  %v2252_v30 = vld [vmem:[#allocation2 + $0x171] ss:$4 sm:$0x3]  ;;  %v2283_v43 = vrot.slane %v2272_v42, 4  ;;  %v2289_v48 = vsel %vm1656_vm10, %v2267_v7, %v2281_v54  ;;  %v1382_v7 = vsel %vm446_vm4, %v5493_v52, %v5495_v19 }
 0x1c5   : > { %1570 = vst.msk [vmem:[#allocation2 + $0x18a] ss:$4 sm:$0x3] %vm4657_vm6, %v1379_v14  ;;  %v5524_v58 = vld.sshfl [vmem:[#allocation1 + $0x20] sm:$0xff pattern:$0x75316420]  ;;  %v2304_v14 = vmul.f32 %v2288_v57, %v5394_v36  ;;  %v2305_v51 = vmul.f32 %v2289_v48, %v5396_v16  ;;  %v2306_v57 = vmul.f32 %v2290_v17, %v5398_v1 }
 0x1c6   : > { %6869 = vst [vmem:[#allocation50_spill] sm:$0xff] %v5524_v58  ;;  %v5526_v15 = vld.sshfl [vmem:[#allocation1 + $0x28] sm:$0xff pattern:$0x75316420]  ;;  %v2276_v23 = vperm.slane %v2252_v30, 1  ;;  %v2284_v44 = vrot.slane %v2274_v62, 4  ;;  %v2291_v42 = vsel %vm1656_vm10, %v2271_v47, %v2283_v43 }
 0x1c7   : > { %6870 = vst [vmem:[#allocation51_spill] sm:$0xff] %v5526_v15  ;;  %v2397_v22 = vld [vmem:[#allocation2 + $0x14a] ss:$4 sm:$0x3]  ;;  %v2419_v12 = vperm.slane %v5519_v2, 1  ;;  %v2273_v54 = vperm.slane %v2250_v49, 0  ;;  %v2307_v47 = vmul.f32 %v2291_v42, %v5443_v20 }
 0x1c8   : > { %v5529_v35 = vld.sshfl [vmem:[#allocation1 + $0x30] sm:$0xff pattern:$0x75316420]  ;;  %v2254_v8 = vld [vmem:[#allocation2 + $0x179] ss:$4 sm:$0x3] }
 0x1c9   : > { %6871 = vst [vmem:[#allocation52_spill] sm:$0xff] %v5529_v35  ;;  %v5536_v32 = vld.sshfl [vmem:[#allocation1 + $0x38] sm:$0xff pattern:$0x75316420]  ;;  %v2278_v13 = vperm.slane %v2254_v8, 1  ;;  %v2421_v62 = vperm.slane %v2397_v22, 1  ;;  %v2292_v49 = vsel %vm1656_vm10, %v2273_v54, %v2284_v44 }
 0x1ca   : > { %6872 = vst [vmem:[#allocation53_spill] sm:$0xff] %v5536_v32  ;;  %v5545_v15 = vld.sshfl [vmem:[#allocation1] sm:$0xff pattern:$0x75316420]  ;;  %v1381_v43 = vrot.slane %v1380_v29, 2  ;;  %v1383_v35 = vrot.slane %v1382_v7, 3  ;;  %v2308_v7 = vmul.f32 %v2292_v49, %v5445_v38 }
 0x1cb   : > { %2323 = vst [vmem:[#allocation1 + $0x10] ss:$2 sm:$0xff] %v2304_v14  ;;  %v5547_v32 = vld.sshfl [vmem:[#allocation1 + $0x8] sm:$0xff pattern:$0x75316420]  ;;  %v2285_v6 = vrot.slane %v2276_v23, 4 }
 0x1cc   : > { %6873 = vst [vmem:[#allocation54_spill] sm:$0xff] %v5545_v15  ;;  %v2399_v58 = vld [vmem:[#allocation2 + $0x152] ss:$4 sm:$0x3]  ;;  %v2286_v48 = vrot.slane %v2278_v13, 4  ;;  %v2418_v17 = vperm.slane %v5519_v2, 0 }
 0x1cd   : > { %6874 = vst [vmem:[#allocation55_spill] sm:$0xff] %v5547_v32  ;;  %v2434_v14 = vrot.slane %v2419_v12, 4  ;;  %v2275_v15 = vperm.slane %v2252_v30, 0  ;;  %v2420_v42 = vperm.slane %v2397_v22, 0  ;;  %v2277_v29 = vperm.slane %v2254_v8, 0 }
 0x1ce   : > { %2327 = vst [vmem:[#allocation1 + $0x20] ss:$2 sm:$0xff] %v2305_v51  ;;  %v2435_v51 = vrot.slane %v2421_v62, 4  ;;  %v2403_v23 = vld [vmem:[#allocation2 + $0x162] ss:$4 sm:$0x3] }
 0x1cf   : > { %2331 = vst [vmem:[#allocation1 + $0x30] ss:$2 sm:$0xff] %v2306_v57  ;;  %v2293_v44 = vsel %vm1656_vm10, %v2275_v15, %v2285_v6  ;;  %v2405_v2 = vld [vmem:[#allocation2 + $0x16a] ss:$4 sm:$0x3]  ;;  %v2423_v30 = vperm.slane %v2399_v58, 1  ;;  %v2294_v22 = vsel %vm1656_vm10, %v2277_v29, %v2286_v48  ;;  %v2442_v8 = vsel %vm1656_vm10, %v2418_v17, %v2434_v14 }
 0x1d0   : > { %2334 = vst [vmem:[#allocation1] ss:$2 sm:$0xff] %v2307_v47  ;;  %v2425_v12 = vperm.slane %v5551_v24, 1  ;;  %v1384_v47 = vsel %vm449_vm5, %v5493_v52, %v5495_v19  ;;  %v2443_v49 = vsel %vm1656_vm10, %v2420_v42, %v2435_v51  ;;  %v2310_v48 = vmul.f32 %v2294_v22, %v5449_v59  ;;  %v5593_v32 = vld [vmem:[#allocation2 + $0x17a] ss:$4 sm:$0x3] }
 0x1d1   : > { %1572 = vst.msk [vmem:[#allocation2 + $0x192] ss:$4 sm:$0x3] %vm4657_vm6, %v1381_v43  ;;  %v2407_v43 = vld [vmem:[#allocation2 + $0x172] ss:$4 sm:$0x3]  ;;  %v1386_v29 = vsel %vm452_vm7, %v5493_v52, %v5495_v19 }
 0x1d2   : > { %1574 = vst.msk [vmem:[#allocation2 + $0x19a] ss:$4 sm:$0x3] %vm4657_vm6, %v1383_v35  ;;  %v5560_v54 = vld.sshfl [vmem:[#allocation1 + $0x10] sm:$0xff pattern:$0x75316420]  ;;  %v2309_v35 = vmul.f32 %v2293_v44, %v5447_v55 }
 0x1d3   : > { %6875 = vst [vmem:[#allocation56_spill] sm:$0xff] %v5560_v54  ;;  %v5562_v13 = vld.sshfl [vmem:[#allocation1 + $0x18] sm:$0xff pattern:$0x75316420]  ;;  %v2427_v44 = vperm.slane %v2403_v23, 1  ;;  %v1385_v42 = vrot.slane %v1384_v47, 4 }
 0x1d4   : > { %6876 = vst [vmem:[#allocation57_spill] sm:$0xff] %v5562_v13  ;;  %v2424_v51 = vperm.slane %v5551_v24, 0  ;;  %v2437_v22 = vrot.slane %v2425_v12, 4  ;;  %v2428_v47 = vperm.slane %v2405_v2, 0  ;;  %v1388_v12 = vsel %vm455_vm8, %v5493_v52, %v5495_v19 }
 0x1d5   : > { %2337 = vst [vmem:[#allocation1 + $0x10] ss:$2 sm:$0xff] %v2308_v7  ;;  %v5567_v57 = vld.sshfl [vmem:[#allocation1 + $0x20] sm:$0xff pattern:$0x75316420]  ;;  %v2422_v7 = vperm.slane %v2399_v58, 0 }
 0x1d6   : > { %6877 = vst [vmem:[#allocation58_spill] sm:$0xff] %v5567_v57  ;;  %v5569_v62 = vld.sshfl [vmem:[#allocation1 + $0x28] sm:$0xff pattern:$0x75316420]  ;;  %v2429_v57 = vperm.slane %v2405_v2, 1 }
 0x1d7   : > { %6878 = vst [vmem:[#allocation59_spill] sm:$0xff] %v5569_v62  ;;  %v5572_v6 = vld.sshfl [vmem:[#allocation1 + $0x30] sm:$0xff pattern:$0x75316420] }
 0x1d8   : > { %6879 = vst [vmem:[#allocation60_spill] sm:$0xff] %v5572_v6  ;;  %v5574_v15 = vld.sshfl [vmem:[#allocation1 + $0x38] sm:$0xff pattern:$0x75316420]  ;;  %v2458_v6 = vmul.f32 %v2442_v8, %v5392_v27  ;;  %v2426_v27 = vperm.slane %v2403_v23, 0  ;;  %v2431_v8 = vperm.slane %v2407_v43, 1 }
 0x1d9   : > { %6880 = vst [vmem:[#allocation61_spill] sm:$0xff] %v5574_v15  ;;  %v5581_v17 = vld.sshfl [vmem:[#allocation1] sm:$0xff pattern:$0x75316420]  ;;  %v2436_v15 = vrot.slane %v2423_v30, 4 }
 0x1da   : > { %6881 = vst [vmem:[#allocation62_spill] sm:$0xff] %v5581_v17  ;;  %v5583_v14 = vld.sshfl [vmem:[#allocation1 + $0x8] sm:$0xff pattern:$0x75316420]  ;;  %v1387_v17 = vrot.slane %v1386_v29, 5  ;;  %v2440_v29 = vrot.slane %v2431_v8, 4 }
 0x1db   : > { %6882 = vst [vmem:[#allocation63_spill] sm:$0xff] %v5583_v14  ;;  %v5589_v62 = vld [vmem:[#allocation2 + $0x180] ss:$4 sm:$0x3]  ;;  %v2459_v14 = vmul.f32 %v2443_v49, %v5394_v36  ;;  %v2444_v13 = vsel %vm1656_vm10, %v2422_v7, %v2436_v15 }
 0x1dc   : > { %2340 = vst [vmem:[#allocation1 + $0x20] ss:$2 sm:$0xff] %v2309_v35  ;;  %v5595_v58 = vld.sshfl [vmem:[#allocation1 + $0x10] sm:$0xff pattern:$0x75316420]  ;;  %v2438_v35 = vrot.slane %v2427_v44, 4  ;;  %v2460_v2 = vmul.f32 %v2444_v13, %v5396_v16 }
 0x1dd   : > { %2343 = vst [vmem:[#allocation1 + $0x30] ss:$2 sm:$0xff] %v2310_v48  ;;  %v5597_v30 = vld.sshfl [vmem:[#allocation1 + $0x18] sm:$0xff pattern:$0x75316420]  ;;  %v2439_v48 = vrot.slane %v2429_v57, 4 }
 0x1de   : > { %2474 = vst [vmem:[#allocation1] ss:$2 sm:$0xff] %v2458_v6  ;;  %v2582_v24 = vperm.slane %v5589_v62, 0  ;;  %v2583_v36 = vperm.slane %v5589_v62, 1  ;;  %v2445_v6 = vsel %vm1656_vm10, %v2424_v51, %v2437_v22  ;;  %v2430_v62 = vperm.slane %v2407_v43, 0 }
 0x1df   : > { %6883 = vst [vmem:[#allocation64_spill] sm:$0xff] %v5595_v58  ;;  %v5609_v23 = vld [vmem:[#allocation2 + $0x188] ss:$4 sm:$0x3]  ;;  %v2446_v7 = vsel %vm1656_vm10, %v2426_v27, %v2438_v35  ;;  %v1389_v16 = vrot.slane %v1388_v12, 6  ;;  %v2461_v13 = vmul.f32 %v2445_v6, %v5398_v1  ;;  %v1390_v27 = vsel %vm458_vm9, %v5495_v19, %v5493_v52 }
 0x1e0   : > { %6884 = vst [vmem:[#allocation65_spill] sm:$0xff] %v5597_v30  ;;  %v5617_v49 = vld [vmem:[#allocation2 + $0x190] ss:$4 sm:$0x3]  ;;  %v2462_v43 = vmul.f32 %v2446_v7, %v5443_v20  ;;  %v2448_v1 = vsel %vm1656_vm10, %v2430_v62, %v2440_v29  ;;  %v2585_v12 = vperm.slane %v5609_v23, 1  ;;  %v2432_v6 = vperm.slane %v5593_v32, 0 }
 0x1e1   : > { %2478 = vst [vmem:[#allocation1 + $0x10] ss:$2 sm:$0xff] %v2459_v14  ;;  %v2433_v14 = vperm.slane %v5593_v32, 1  ;;  %v5639_v35 = vld [vmem:[#allocation2 + $0x198] ss:$4 sm:$0x3]  ;;  %v2464_v62 = vmul.f32 %v2448_v1, %v5447_v55 }
 0x1e2   : > { %1576 = vst.msk [vmem:[#allocation2 + $0x1a2] ss:$4 sm:$0x3] %vm4657_vm6, %v1385_v42  ;;  %v2587_v20 = vperm.slane %v5617_v49, 1  ;;  %v1391_v52 = vrot.slane %v1390_v27, 7  ;;  %v2586_v19 = vperm.slane %v5617_v49, 0 }
 0x1e3   : > { %1578 = vst.msk [vmem:[#allocation2 + $0x1aa] ss:$4 sm:$0x3] %vm4657_vm6, %v1387_v17  ;;  %v5613_v57 = vld.sshfl [vmem:[#allocation1 + $0x20] sm:$0xff pattern:$0x75316420]  ;;  %v2447_v17 = vsel %vm1656_vm10, %v2428_v47, %v2439_v48 }
 0x1e4   : > { %6885 = vst [vmem:[#allocation66_spill] sm:$0xff] %v5613_v57  ;;  %v5615_v15 = vld.sshfl [vmem:[#allocation1 + $0x28] sm:$0xff pattern:$0x75316420]  ;;  %v2584_v47 = vperm.slane %v5609_v23, 0  ;;  %v2463_v48 = vmul.f32 %v2447_v17, %v5445_v38 }
 0x1e5   : > { %6886 = vst [vmem:[#allocation67_spill] sm:$0xff] %v5615_v15  ;;  %v5621_v44 = vld.sshfl [vmem:[#allocation1 + $0x30] sm:$0xff pattern:$0x75316420]  ;;  %v5656_v17 = vld [vmem:[#allocation2 + $0x80] sm:$0x77] }
 0x1e6   : > { %6887 = vst [vmem:[#allocation68_spill] sm:$0xff] %v5621_v44  ;;  %v5624_v42 = vld.sshfl [vmem:[#allocation1 + $0x38] sm:$0xff pattern:$0x75316420]  ;;  %v2598_v44 = vrot.slane %v2583_v36, 4 }
 0x1e7   : > { %6888 = vst [vmem:[#allocation69_spill] sm:$0xff] %v5624_v42  ;;  %v5627_v51 = vld.sshfl [vmem:[#allocation1] sm:$0xff pattern:$0x75316420]  ;;  %v2589_v42 = vperm.slane %v5639_v35, 1 }
 0x1e8   : > { %2482 = vst [vmem:[#allocation1 + $0x20] ss:$2 sm:$0xff] %v2460_v2  ;;  %v5629_v22 = vld.sshfl [vmem:[#allocation1 + $0x8] sm:$0xff pattern:$0x75316420]  ;;  %v2441_v2 = vrot.slane %v2433_v14, 4  ;;  %v2606_v27 = vsel %vm1656_vm10, %v2582_v24, %v2598_v44 }
 0x1e9   : > { %6889 = vst [vmem:[#allocation70_spill] sm:$0xff] %v5627_v51  ;;  %v5632_v15 = vld.sshfl [vmem:[#allocation1 + $0x10] sm:$0xff pattern:$0x75316420]  ;;  %v2599_v14 = vrot.slane %v2585_v12, 4 }
 0x1ea   : > { %6890 = vst [vmem:[#allocation71_spill] sm:$0xff] %v5629_v22  ;;  %v5634_v8 = vld.sshfl [vmem:[#allocation1 + $0x18] sm:$0xff pattern:$0x75316420]  ;;  %v5659_v36 = vld [vmem:[#allocation2 + $0x88] sm:$0x77] }
 0x1eb   : > { %6891 = vst [vmem:[#allocation72_spill] sm:$0xff] %v5632_v15  ;;  %v2567_v7 = vld [vmem:[#allocation2 + $0x1a0] ss:$4 sm:$0x3]  ;;  %v2607_v57 = vsel %vm1656_vm10, %v2584_v47, %v2599_v14  ;;  %v5689_v14 = vld [vmem:[#allocation2 + $0x98] sm:$0x77] }
 0x1ec   : > { %6892 = vst [vmem:[#allocation73_spill] sm:$0xff] %v5634_v8  ;;  %v2569_v38 = vld [vmem:[#allocation2 + $0x1a8] ss:$4 sm:$0x3]  ;;  %v2591_v32 = vperm.slane %v2567_v7, 1 }
 0x1ed   : > { %2486 = vst [vmem:[#allocation1 + $0x30] ss:$2 sm:$0xff] %v2461_v13  ;;  %v2449_v13 = vsel %vm1656_vm10, %v2432_v6, %v2441_v2  ;;  %v2571_v49 = vld [vmem:[#allocation2 + $0x1b0] ss:$4 sm:$0x3]  ;;  %v2593_v6 = vperm.slane %v2569_v38, 1 }
 0x1ee   : > { %2489 = vst [vmem:[#allocation1] ss:$2 sm:$0xff] %v2462_v43  ;;  %v2600_v43 = vrot.slane %v2587_v20, 4  ;;  %v2465_v1 = vmul.f32 %v2449_v13, %v5449_v59  ;;  %v5673_v2 = vld [vmem:[#allocation2 + $0x90] sm:$0x77]  ;;  %v2622_v20 = vmul.f32 %v2606_v27, %v5656_v17  ;;  %v2595_v44 = vperm.slane %v2571_v49, 1 }
 0x1ef   : > { %2492 = vst [vmem:[#allocation1 + $0x10] ss:$2 sm:$0xff] %v2463_v48  ;;  %v5652_v23 = vld.sshfl [vmem:[#allocation1 + $0x20] sm:$0xff pattern:$0x75316420]  ;;  %v2623_v13 = vmul.f32 %v2607_v57, %v5659_v36  ;;  %v2602_v47 = vrot.slane %v2591_v32, 4 }
 0x1f0   : > { %1580 = vst.msk [vmem:[#allocation2 + $0x1b2] ss:$4 sm:$0x3] %vm4657_vm6, %v1389_v16  ;;  %v5654_v29 = vld.sshfl [vmem:[#allocation1 + $0x28] sm:$0xff pattern:$0x75316420]  ;;  %v2608_v59 = vsel %vm1656_vm10, %v2586_v19, %v2600_v43 }
 0x1f1   : > { %6893 = vst [vmem:[#allocation74_spill] sm:$0xff] %v5652_v23  ;;  %v2573_v24 = vld [vmem:[#allocation2 + $0x1b8] ss:$4 sm:$0x3]  ;;  %v2603_v19 = vrot.slane %v2593_v6, 4  ;;  %v2604_v43 = vrot.slane %v2595_v44, 4 }
 0x1f2   : > { %6894 = vst [vmem:[#allocation75_spill] sm:$0xff] %v5654_v29  ;;  %v5691_v57 = vld [vmem:[#allocation2 + $0xa0] sm:$0x77]  ;;  %v2594_v32 = vperm.slane %v2571_v49, 0  ;;  %v2596_v49 = vperm.slane %v2573_v24, 0 }
 0x1f3   : > { %2495 = vst [vmem:[#allocation1 + $0x20] ss:$2 sm:$0xff] %v2464_v62  ;;  %v5804_v23 = vld [vmem:[#allocation2 + $0x192] ss:$4 sm:$0x3] }
 0x1f4   : > { %1582 = vst.msk [vmem:[#allocation2 + $0x1ba] ss:$4 sm:$0x3] %vm4657_vm6, %v1391_v52  ;;  %v5663_v55 = vld.sshfl [vmem:[#allocation1 + $0x30] sm:$0xff pattern:$0x75316420] }
 0x1f5   : > { %6895 = vst [vmem:[#allocation76_spill] sm:$0xff] %v5663_v55  ;;  %v5665_v16 = vld.sshfl [vmem:[#allocation1 + $0x38] sm:$0xff pattern:$0x75316420]  ;;  %v2601_v52 = vrot.slane %v2589_v42, 4  ;;  %v2588_v42 = vperm.slane %v5639_v35, 0 }
 0x1f6   : > { %6896 = vst [vmem:[#allocation77_spill] sm:$0xff] %v5665_v16  ;;  %v5669_v48 = vld.sshfl [vmem:[#allocation1] sm:$0xff pattern:$0x75316420] }
 0x1f7   : > { %6897 = vst [vmem:[#allocation78_spill] sm:$0xff] %v5669_v48  ;;  %v5671_v12 = vld.sshfl [vmem:[#allocation1 + $0x8] sm:$0xff pattern:$0x75316420] }
 0x1f8   : > { %6898 = vst [vmem:[#allocation79_spill] sm:$0xff] %v5671_v12  ;;  %v5676_v62 = vld.sshfl [vmem:[#allocation1 + $0x10] sm:$0xff pattern:$0x75316420]  ;;  %v2624_v12 = vmul.f32 %v2608_v59, %v5673_v2  ;;  %v2609_v59 = vsel %vm1656_vm10, %v2588_v42, %v2601_v52 }
 0x1f9   : > { %6899 = vst [vmem:[#allocation80_spill] sm:$0xff] %v5676_v62  ;;  %v5679_v30 = vld.sshfl [vmem:[#allocation1 + $0x18] sm:$0xff pattern:$0x75316420]  ;;  %v2597_v62 = vperm.slane %v2573_v24, 1 }
 0x1fa   : > { %6900 = vst [vmem:[#allocation81_spill] sm:$0xff] %v5679_v30  ;;  %v5684_v16 = vld.sshfl [vmem:[#allocation1 + $0x20] sm:$0xff pattern:$0x75316420]  ;;  %v2592_v30 = vperm.slane %v2569_v38, 0 }
 0x1fb   : > { %2498 = vst [vmem:[#allocation1 + $0x30] ss:$2 sm:$0xff] %v2465_v1  ;;  %v5686_v27 = vld.sshfl [vmem:[#allocation1 + $0x28] sm:$0xff pattern:$0x75316420]  ;;  %v2590_v1 = vperm.slane %v2567_v7, 0 }
 0x1fc   : > { %2638 = vst [vmem:[#allocation1] ss:$2 sm:$0xff] %v2622_v20  ;;  %v5693_v20 = vld [vmem:[#allocation2 + $0xa8] sm:$0x77]  ;;  %v2605_v6 = vrot.slane %v2597_v62, 4  ;;  %v2611_v52 = vsel %vm1656_vm10, %v2592_v30, %v2603_v19  ;;  %v810_v19 = vpop.f32.mrf.mxu2 }
 0x1fd   : > { %6901 = vst [vmem:[#allocation82_spill] sm:$0xff] %v5684_v16  ;;  %v5701_v16 = vld [vmem:[#allocation2 + $0xb0] sm:$0x77]  ;;  %v2610_v7 = vsel %vm1656_vm10, %v2590_v1, %v2602_v47  ;;  %v2612_v47 = vsel %vm1656_vm10, %v2594_v32, %v2604_v43  ;;  %v2627_v1 = vmul.f32 %v2611_v52, %v5693_v20 }
 0x1fe   : > { %6902 = vst [vmem:[#allocation83_spill] sm:$0xff] %v5686_v27  ;;  %v2625_v27 = vmul.f32 %v2609_v59, %v5689_v14  ;;  %v2626_v44 = vmul.f32 %v2610_v7, %v5691_v57  ;;  %v2628_v7 = vmul.f32 %v2612_v47, %v5701_v16  ;;  %v2613_v30 = vsel %vm1656_vm10, %v2596_v49, %v2605_v6  ;;  %v5855_v15 = vld [vmem:[#allocation2 + $0x1d0] ss:$4 sm:$0x3] }
 0x1ff   : > { %2642 = vst [vmem:[#allocation1 + $0x10] ss:$2 sm:$0xff] %v2623_v13 }
 0x200   : > { %2646 = vst [vmem:[#allocation1 + $0x20] ss:$2 sm:$0xff] %v2624_v12  ;;  %v839_v12 = vpop.f32.mrf.mxu3 }
 0x201   : > { %v840_v62 = vadd.f32 %v839_v12, %v4727_v50  ;;  %v811_v12 = vadd.f32 %v810_v19, %v4727_v50 }
 0x202   : > { %v5697_v13 = vld.sshfl [vmem:[#allocation1 + $0x30] sm:$0xff pattern:$0x75316420]  ;;  %v5699_v35 = vld.sshfl [vmem:[#allocation1 + $0x38] sm:$0xff pattern:$0x75316420] }
 0x203   : > { %6903 = vst [vmem:[#allocation84_spill] sm:$0xff] %v5697_v13  ;;  %v5704_v38 = vld.sshfl [vmem:[#allocation1] sm:$0xff pattern:$0x75316420] }
 0x204   : > { %6904 = vst [vmem:[#allocation85_spill] sm:$0xff] %v5699_v35  ;;  %v5707_v48 = vld.sshfl [vmem:[#allocation1 + $0x8] sm:$0xff pattern:$0x75316420]  ;;  %v5714_v35 = vld [vmem:[#allocation2 + $0xb8] sm:$0x77] }
 0x205   : > { %6905 = vst [vmem:[#allocation86_spill] sm:$0xff] %v5704_v38  ;;  %v2629_v24 = vmul.f32 %v2613_v30, %v5714_v35 }
 0x206   : > { %6906 = vst [vmem:[#allocation87_spill] sm:$0xff] %v5707_v48  ;;  %v5710_v42 = vld.sshfl [vmem:[#allocation1 + $0x10] sm:$0xff pattern:$0x75316420]  ;;  %v866_v48 = vrot.slane %v840_v62, 7 }
 0x207   : > { %2650 = vst [vmem:[#allocation1 + $0x30] ss:$2 sm:$0xff] %v2625_v27  ;;  %v5712_v59 = vld.sshfl [vmem:[#allocation1 + $0x18] sm:$0xff pattern:$0x75316420] }
 0x208   : > { %6907 = vst [vmem:[#allocation88_spill] sm:$0xff] %v5710_v42  ;;  %v5720_v13 = vld.sshfl [vmem:[#allocation1 + $0x20] sm:$0xff pattern:$0x75316420]  ;;  %v959_v52 = vsel %vm440_vm2, %v811_v12, %v866_v48  ;;  %v961_v47 = vsel %vm443_vm3, %v811_v12, %v866_v48  ;;  %v965_v62 = vsel %vm449_vm5, %v811_v12, %v866_v48  ;;  %v967_v30 = vsel %vm452_vm7, %v811_v12, %v866_v48 }
 0x209   : > { %6908 = vst [vmem:[#allocation89_spill] sm:$0xff] %v5712_v59  ;;  %v5722_v27 = vld.sshfl [vmem:[#allocation1 + $0x28] sm:$0xff pattern:$0x75316420]  ;;  %v960_v6 = vrot.slane %v959_v52, 1  ;;  %v962_v49 = vrot.slane %v961_v47, 2  ;;  %v969_v50 = vsel %vm455_vm8, %v811_v12, %v866_v48  ;;  %v971_v52 = vsel %vm458_vm9, %v866_v48, %v811_v12 }
 0x20a   : > { %2653 = vst [vmem:[#allocation1] ss:$2 sm:$0xff] %v2626_v44  ;;  %v958_v44 = vsel %vm438_vm1, %v811_v12, %v866_v48  ;;  %v968_v47 = vrot.slane %v967_v30, 5 }
 0x20b   : > { %6909 = vst [vmem:[#allocation90_spill] sm:$0xff] %v5720_v13 }
 0x20c   : > { %6910 = vst [vmem:[#allocation91_spill] sm:$0xff] %v5722_v27  ;;  %v972_v27 = vrot.slane %v971_v52, 7 }
 0x20d   : > { %2656 = vst [vmem:[#allocation1 + $0x10] ss:$2 sm:$0xff] %v2627_v1  ;;  %v1260_v1 = vpop.f32.mrf.mxu1 }
 0x20e   : > { %2659 = vst [vmem:[#allocation1 + $0x20] ss:$2 sm:$0xff] %v2628_v7  ;;  %v5726_v43 = vld.sshfl [vmem:[#allocation1 + $0x30] sm:$0xff pattern:$0x75316420]  ;;  %v963_v7 = vsel %vm446_vm4, %v811_v12, %v866_v48 }
 0x20f   : > { %6911 = vst [vmem:[#allocation92_spill] sm:$0xff] %v5726_v43  ;;  %v5728_v32 = vld.sshfl [vmem:[#allocation1 + $0x38] sm:$0xff pattern:$0x75316420]  ;;  %v964_v19 = vrot.slane %v963_v7, 3  ;;  %v970_v43 = vrot.slane %v969_v50, 6 }
 0x210   : > { %6912 = vst [vmem:[#allocation93_spill] sm:$0xff] %v5728_v32  ;;  %v966_v32 = vrot.slane %v965_v62, 4 }
 0x211   : > { %2662 = vst [vmem:[#allocation1 + $0x30] ss:$2 sm:$0xff] %v2629_v24  ;;  %v1261_v24 = vadd.f32 %v1260_v1, %v4779_v26 }
 0x212   : > { %1149 = vst.msk [vmem:[#allocation2 + $0x181] ss:$4 sm:$0x3] %vm4657_vm6, %v958_v44  ;;  %v1231_v44 = vpop.f32.mrf.mxu0 }
 0x213   : > { %1151 = vst.msk [vmem:[#allocation2 + $0x189] ss:$4 sm:$0x3] %vm4657_vm6, %v960_v6  ;;  %v5748_v13 = vrot.slane %v1261_v24, 7  ;;  %v5755_v6 = vadd.f32 %v1231_v44, %v4779_v26 }
 0x214   : > { %1153 = vst.msk [vmem:[#allocation2 + $0x191] ss:$4 sm:$0x3] %vm4657_vm6, %v962_v49  ;;  %v5764_v44 = vld.sshfl [vmem:[#allocation1] sm:$0xff pattern:$0x75316420] }
 0x215   : > { %1155 = vst.msk [vmem:[#allocation2 + $0x199] ss:$4 sm:$0x3] %vm4657_vm6, %v964_v19 }
 0x216   : > { %1157 = vst.msk [vmem:[#allocation2 + $0x1a1] ss:$4 sm:$0x3] %vm4657_vm6, %v966_v32  ;;  %v1392_v32 = vsel %vm438_vm1, %v5755_v6, %v5748_v13 }
 0x217   : > { %1159 = vst.msk [vmem:[#allocation2 + $0x1a9] ss:$4 sm:$0x3] %vm4657_vm6, %v968_v47 }
 0x218   : > { %1161 = vst.msk [vmem:[#allocation2 + $0x1b1] ss:$4 sm:$0x3] %vm4657_vm6, %v970_v43 }
 0x219   : > { %v2714_v1 = vld [vmem:[#allocation2 + $0x181] ss:$4 sm:$0x3]  ;;  %1163 = vst.msk [vmem:[#allocation2 + $0x1b9] ss:$4 sm:$0x3] %vm4657_vm6, %v972_v27 }
 0x21a   : > { %v2737_v48 = vperm.slane %v2714_v1, 0  ;;  %v2738_v12 = vperm.slane %v2714_v1, 1  ;;  %v2716_v49 = vld [vmem:[#allocation2 + $0x189] ss:$4 sm:$0x3]  ;;  %6913 = vst [vmem:[#allocation94_spill] sm:$0xff] %v5764_v44 }
 0x21b   : > { %v2739_v7 = vperm.slane %v2716_v49, 0  ;;  %v2740_v62 = vperm.slane %v2716_v49, 1  ;;  %v2718_v50 = vld [vmem:[#allocation2 + $0x191] ss:$4 sm:$0x3] }
 0x21c   : > { %v2753_v30 = vrot.slane %v2738_v12, 4  ;;  %v2720_v24 = vld [vmem:[#allocation2 + $0x199] ss:$4 sm:$0x3]  ;;  %v2741_v19 = vperm.slane %v2718_v50, 0  ;;  %v2742_v52 = vperm.slane %v2718_v50, 1 }
 0x21d   : > { %v2754_v47 = vrot.slane %v2740_v62, 4  ;;  %v5766_v1 = vld.sshfl [vmem:[#allocation1 + $0x8] sm:$0xff pattern:$0x75316420]  ;;  %v2743_v43 = vperm.slane %v2720_v24, 0  ;;  %v2744_v38 = vperm.slane %v2720_v24, 1 }
 0x21e   : > { %6914 = vst [vmem:[#allocation95_spill] sm:$0xff] %v5766_v1  ;;  %v2761_v27 = vsel %vm1656_vm10, %v2737_v48, %v2753_v30  ;;  %v5771_v12 = vld.sshfl [vmem:[#allocation1 + $0x10] sm:$0xff pattern:$0x75316420]  ;;  %v2755_v59 = vrot.slane %v2742_v52, 4  ;;  %v1393_v48 = vsel %vm440_vm2, %v5755_v6, %v5748_v13 }
 0x21f   : > { %1584 = vst.msk [vmem:[#allocation2 + $0x1c2] ss:$4 sm:$0x3] %vm4657_vm6, %v1392_v32  ;;  %v5773_v49 = vld.sshfl [vmem:[#allocation1 + $0x18] sm:$0xff pattern:$0x75316420]  ;;  %v2762_v50 = vsel %vm1656_vm10, %v2739_v7, %v2754_v47  ;;  %v2777_v47 = vmul.f32 %v2761_v27, %v5656_v17 }
 0x220   : > { %6915 = vst [vmem:[#allocation96_spill] sm:$0xff] %v5771_v12  ;;  %v2722_v58 = vld [vmem:[#allocation2 + $0x1a1] ss:$4 sm:$0x3]  ;;  %v2756_v42 = vrot.slane %v2744_v38, 4  ;;  %v2763_v7 = vsel %vm1656_vm10, %v2741_v19, %v2755_v59  ;;  %v1395_v38 = vsel %vm443_vm3, %v5755_v6, %v5748_v13  ;;  %v1394_v19 = vrot.slane %v1393_v48, 1 }
 0x221   : > { %6916 = vst [vmem:[#allocation97_spill] sm:$0xff] %v5773_v49  ;;  %v5776_v62 = vld.sshfl [vmem:[#allocation1 + $0x20] sm:$0xff pattern:$0x75316420]  ;;  %v2746_v52 = vperm.slane %v2722_v58, 1  ;;  %v2779_v59 = vmul.f32 %v2763_v7, %v5673_v2 }
 0x222   : > { %6917 = vst [vmem:[#allocation98_spill] sm:$0xff] %v5776_v62  ;;  %v5778_v44 = vld.sshfl [vmem:[#allocation1 + $0x28] sm:$0xff pattern:$0x75316420]  ;;  %v2764_v55 = vsel %vm1656_vm10, %v2743_v43, %v2756_v42  ;;  %v1396_v42 = vrot.slane %v1395_v38, 2  ;;  %v2745_v43 = vperm.slane %v2722_v58, 0 }
 0x223   : > { %6918 = vst [vmem:[#allocation99_spill] sm:$0xff] %v5778_v44  ;;  %v2724_v1 = vld [vmem:[#allocation2 + $0x1a9] ss:$4 sm:$0x3]  ;;  %v2780_v8 = vmul.f32 %v2764_v55, %v5689_v14 }
 0x224   : > { %v5783_v30 = vld [vmem:[#allocation2 + $0x1c0] ss:$4 sm:$0x3]  ;;  %v5785_v32 = vld.sshfl [vmem:[#allocation1 + $0x30] sm:$0xff pattern:$0x75316420] }
 0x225   : > { %6919 = vst [vmem:[#allocation100_spill] sm:$0xff] %v5785_v32  ;;  %v5787_v24 = vld.sshfl [vmem:[#allocation1 + $0x38] sm:$0xff pattern:$0x75316420]  ;;  %v2748_v12 = vperm.slane %v2724_v1, 1  ;;  %v2778_v32 = vmul.f32 %v2762_v50, %v5659_v36  ;;  %v2757_v50 = vrot.slane %v2746_v52, 4  ;;  %v1399_v52 = vsel %vm449_vm5, %v5755_v6, %v5748_v13 }
 0x226   : > { %6920 = vst [vmem:[#allocation101_spill] sm:$0xff] %v5787_v24  ;;  %v2726_v49 = vld [vmem:[#allocation2 + $0x1b1] ss:$4 sm:$0x3]  ;;  %v1397_v24 = vsel %vm446_vm4, %v5755_v6, %v5748_v13  ;;  %v2747_v54 = vperm.slane %v2724_v1, 0 }
 0x227   : > { %v5794_v44 = vld [vmem:[#allocation2 + $0x182] ss:$4 sm:$0x3]  ;;  %v2728_v62 = vld [vmem:[#allocation2 + $0x1b9] ss:$4 sm:$0x3] }
 0x228   : > { %v2750_v29 = vperm.slane %v2726_v49, 1  ;;  %2793 = vst [vmem:[#allocation1] ss:$2 sm:$0xff] %v2777_v47  ;;  %v5802_v27 = vld [vmem:[#allocation2 + $0x18a] ss:$4 sm:$0x3] }
 0x229   : > { %v2752_v22 = vperm.slane %v2728_v62, 1  ;;  %2797 = vst [vmem:[#allocation1 + $0x10] ss:$2 sm:$0xff] %v2778_v32  ;;  %v1398_v51 = vrot.slane %v1397_v24, 3  ;;  %v2758_v4 = vrot.slane %v2748_v12, 4  ;;  %v2893_v48 = vperm.slane %v5794_v44, 1 }
 0x22a   : > { %2801 = vst [vmem:[#allocation1 + $0x20] ss:$2 sm:$0xff] %v2779_v59  ;;  %v2749_v7 = vperm.slane %v2726_v49, 0  ;;  %v2759_v47 = vrot.slane %v2750_v29, 4  ;;  %v2892_v55 = vperm.slane %v5794_v44, 0  ;;  %v2751_v32 = vperm.slane %v2728_v62, 0 }
 0x22b   : > { %2805 = vst [vmem:[#allocation1 + $0x30] ss:$2 sm:$0xff] %v2780_v8  ;;  %v2760_v38 = vrot.slane %v2752_v22, 4  ;;  %v2894_v58 = vperm.slane %v5802_v27, 0  ;;  %v2895_v1 = vperm.slane %v5802_v27, 1  ;;  %v2897_v8 = vperm.slane %v5804_v23, 1 }
 0x22c   : > { %1586 = vst.msk [vmem:[#allocation2 + $0x1ca] ss:$4 sm:$0x3] %vm4657_vm6, %v1394_v19  ;;  %v2765_v12 = vsel %vm1656_vm10, %v2745_v43, %v2757_v50  ;;  %v5820_v29 = vld [vmem:[#allocation2 + $0x19a] ss:$4 sm:$0x3]  ;;  %v2766_v44 = vsel %vm1656_vm10, %v2747_v54, %v2758_v4  ;;  %v2767_v22 = vsel %vm1656_vm10, %v2749_v7, %v2759_v47  ;;  %v1401_v4 = vsel %vm452_vm7, %v5755_v6, %v5748_v13  ;;  %v841_v7 = vpop.f32.mrf.mxu3 }
 0x22d   : > { %1588 = vst.msk [vmem:[#allocation2 + $0x1d2] ss:$4 sm:$0x3] %vm4657_vm6, %v1396_v42  ;;  %v2768_v59 = vsel %vm1656_vm10, %v2751_v32, %v2760_v38  ;;  %v2782_v54 = vmul.f32 %v2766_v44, %v5693_v20  ;;  %v1403_v50 = vsel %vm455_vm8, %v5755_v6, %v5748_v13  ;;  %v5850_v47 = vld [vmem:[#allocation2 + $0x1c8] ss:$4 sm:$0x3]  ;;  %v2783_v32 = vmul.f32 %v2767_v22, %v5701_v16 }
 0x22e   : > { %1590 = vst.msk [vmem:[#allocation2 + $0x1da] ss:$4 sm:$0x3] %vm4657_vm6, %v1398_v51  ;;  %v2781_v51 = vmul.f32 %v2765_v12, %v5691_v57  ;;  %v1400_v12 = vrot.slane %v1399_v52, 4  ;;  %v2899_v44 = vperm.slane %v5820_v29, 1  ;;  %v3057_v52 = vperm.slane %v5783_v30, 1 }
 0x22f   : > { %v5823_v49 = vld.sshfl [vmem:[#allocation1] sm:$0xff pattern:$0x75316420]  ;;  %v5826_v62 = vld.sshfl [vmem:[#allocation1 + $0x8] sm:$0xff pattern:$0x75316420] }
 0x230   : > { %6921 = vst [vmem:[#allocation102_spill] sm:$0xff] %v5823_v49  ;;  %v5828_v24 = vld.sshfl [vmem:[#allocation1 + $0x10] sm:$0xff pattern:$0x75316420]  ;;  %v1404_v49 = vrot.slane %v1403_v50, 6 }
 0x231   : > { %6922 = vst [vmem:[#allocation103_spill] sm:$0xff] %v5826_v62  ;;  %v5835_v19 = vld.sshfl [vmem:[#allocation1 + $0x18] sm:$0xff pattern:$0x75316420] }
 0x232   : > { %6923 = vst [vmem:[#allocation104_spill] sm:$0xff] %v5828_v24  ;;  %v5837_v27 = vld.sshfl [vmem:[#allocation1 + $0x20] sm:$0xff pattern:$0x75316420]  ;;  %v2910_v24 = vrot.slane %v2897_v8, 4 }
 0x233   : > { %6924 = vst [vmem:[#allocation105_spill] sm:$0xff] %v5835_v19  ;;  %v5843_v42 = vld.sshfl [vmem:[#allocation1 + $0x28] sm:$0xff pattern:$0x75316420]  ;;  %v842_v19 = vadd.f32 %v841_v7, %v4779_v26 }
 0x234   : > { %6925 = vst [vmem:[#allocation106_spill] sm:$0xff] %v5837_v27  ;;  %v5845_v43 = vld.sshfl [vmem:[#allocation1 + $0x30] sm:$0xff pattern:$0x75316420]  ;;  %v1402_v27 = vrot.slane %v1401_v4, 5  ;;  %v2911_v4 = vrot.slane %v2899_v44, 4 }
 0x235   : > { %6926 = vst [vmem:[#allocation107_spill] sm:$0xff] %v5843_v42  ;;  %v5853_v38 = vld.sshfl [vmem:[#allocation1 + $0x38] sm:$0xff pattern:$0x75316420]  ;;  %v2908_v42 = vrot.slane %v2893_v48, 4 }
 0x236   : > { %6927 = vst [vmem:[#allocation108_spill] sm:$0xff] %v5845_v43  ;;  %v2784_v43 = vmul.f32 %v2768_v59, %v5714_v35  ;;  %v5859_v62 = vld [vmem:[#allocation2 + $0x1a2] ss:$4 sm:$0x3]  ;;  %v2898_v59 = vperm.slane %v5820_v29, 0 }
 0x237   : > { %6928 = vst [vmem:[#allocation109_spill] sm:$0xff] %v5853_v38  ;;  %v5862_v22 = vld [vmem:[#allocation2 + $0x1aa] ss:$4 sm:$0x3]  ;;  %v2909_v38 = vrot.slane %v2895_v1, 4  ;;  %v3059_v1 = vperm.slane %v5850_v47, 1  ;;  %v2916_v50 = vsel %vm1656_vm10, %v2892_v55, %v2908_v42 }
 0x238   : > { %2808 = vst [vmem:[#allocation1] ss:$2 sm:$0xff] %v2781_v51  ;;  %v2896_v51 = vperm.slane %v5804_v23, 0  ;;  %v5877_v23 = vrot.slane %v842_v19, 7  ;;  %v2901_v29 = vperm.slane %v5859_v62, 1  ;;  %v1405_v19 = vsel %vm458_vm9, %v5748_v13, %v5755_v6 }
 0x239   : > { %2811 = vst [vmem:[#allocation1 + $0x10] ss:$2 sm:$0xff] %v2782_v54  ;;  %v812_v54 = vpop.f32.mrf.mxu2  ;;  %v5880_v7 = vld [vmem:[#allocation2 + $0x1b2] ss:$4 sm:$0x3] }
 0x23a   : > { %2814 = vst [vmem:[#allocation1 + $0x20] ss:$2 sm:$0xff] %v2783_v32  ;;  %v2917_v32 = vsel %vm1656_vm10, %v2894_v58, %v2909_v38  ;;  %v2883_v44 = vld [vmem:[#allocation2 + $0x1ba] ss:$4 sm:$0x3]  ;;  %v2918_v55 = vsel %vm1656_vm10, %v2896_v51, %v2910_v24  ;;  %v2919_v58 = vsel %vm1656_vm10, %v2898_v59, %v2911_v4  ;;  %v2932_v38 = vmul.f32 %v2916_v50, %v5656_v17 }
 0x23b   : > { %2817 = vst [vmem:[#allocation1 + $0x30] ss:$2 sm:$0xff] %v2784_v43  ;;  %v5896_v43 = vadd.f32 %v812_v54, %v4779_v26  ;;  %v5898_v48 = vld [vmem:[#allocation2 + $0x1d8] ss:$4 sm:$0x3]  ;;  %v2933_v51 = vmul.f32 %v2917_v32, %v5659_v36  ;;  %v2934_v6 = vmul.f32 %v2918_v55, %v5673_v2  ;;  %v1406_v17 = vrot.slane %v1405_v19, 7 }
 0x23c   : > { %1592 = vst.msk [vmem:[#allocation2 + $0x1e2] ss:$4 sm:$0x3] %vm4657_vm6, %v1400_v12  ;;  %v5914_v13 = vld [vmem:[#allocation2 + $0x1e0] ss:$4 sm:$0x3]  ;;  %v2935_v54 = vmul.f32 %v2919_v58, %v5689_v14 }
 0x23d   : > { %1594 = vst.msk [vmem:[#allocation2 + $0x1ea] ss:$4 sm:$0x3] %vm4657_vm6, %v1402_v27  ;;  %v2903_v27 = vperm.slane %v5862_v22, 1  ;;  %v974_v26 = vsel %vm440_vm2, %v5896_v43, %v5877_v23  ;;  %v2905_v36 = vperm.slane %v5880_v7, 1  ;;  %v973_v2 = vsel %vm438_vm1, %v5896_v43, %v5877_v23 }
 0x23e   : > { %1596 = vst.msk [vmem:[#allocation2 + $0x1f2] ss:$4 sm:$0x3] %vm4657_vm6, %v1404_v49  ;;  %v5919_v4 = vld [vmem:[#allocation2 + $0x1e8] ss:$4 sm:$0x3] }
 0x23f   : > { %v5885_v12 = vld.sshfl [vmem:[#allocation1] sm:$0xff pattern:$0x75316420]  ;;  %v5888_v42 = vld.sshfl [vmem:[#allocation1 + $0x8] sm:$0xff pattern:$0x75316420] }
 0x240   : > { %6929 = vst [vmem:[#allocation110_spill] sm:$0xff] %v5885_v12  ;;  %v5890_v49 = vld.sshfl [vmem:[#allocation1 + $0x10] sm:$0xff pattern:$0x75316420]  ;;  %v975_v55 = vrot.slane %v974_v26, 1  ;;  %v2900_v14 = vperm.slane %v5859_v62, 0 }
 0x241   : > { %6930 = vst [vmem:[#allocation111_spill] sm:$0xff] %v5888_v42  ;;  %v5902_v8 = vld.sshfl [vmem:[#allocation1 + $0x18] sm:$0xff pattern:$0x75316420]  ;;  %v2912_v58 = vrot.slane %v2901_v29, 4  ;;  %v2904_v26 = vperm.slane %v5880_v7, 0 }
 0x242   : > { %6931 = vst [vmem:[#allocation112_spill] sm:$0xff] %v5890_v49  ;;  %v5904_v24 = vld.sshfl [vmem:[#allocation1 + $0x20] sm:$0xff pattern:$0x75316420]  ;;  %v3067_v62 = vperm.slane %v5919_v4, 1  ;;  %v2906_v29 = vperm.slane %v2883_v44, 0 }
 0x243   : > { %6932 = vst [vmem:[#allocation113_spill] sm:$0xff] %v5902_v8  ;;  %v5907_v49 = vld.sshfl [vmem:[#allocation1 + $0x28] sm:$0xff pattern:$0x75316420] }
 0x244   : > { %6933 = vst [vmem:[#allocation114_spill] sm:$0xff] %v5904_v24  ;;  %v5909_v42 = vld.sshfl [vmem:[#allocation1 + $0x30] sm:$0xff pattern:$0x75316420]  ;;  %v2914_v24 = vrot.slane %v2905_v36, 4 }
 0x245   : > { %6934 = vst [vmem:[#allocation115_spill] sm:$0xff] %v5907_v49  ;;  %v5917_v59 = vld.sshfl [vmem:[#allocation1 + $0x38] sm:$0xff pattern:$0x75316420]  ;;  %v2907_v49 = vperm.slane %v2883_v44, 1 }
 0x246   : > { %6935 = vst [vmem:[#allocation116_spill] sm:$0xff] %v5909_v42  ;;  %v5923_v50 = vld [vmem:[#allocation2 + $0x1f0] ss:$4 sm:$0x3]  ;;  %v5927_v42 = vrot.slane %v3057_v52, 4  ;;  %v2902_v52 = vperm.slane %v5862_v22, 0 }
 0x247   : > { %6936 = vst [vmem:[#allocation117_spill] sm:$0xff] %v5917_v59  ;;  %v5925_v32 = vld [vmem:[#allocation2 + $0x1f8] ss:$4 sm:$0x3]  ;;  %v2913_v59 = vrot.slane %v2903_v27, 4  ;;  %v3069_v22 = vperm.slane %v5923_v50, 1  ;;  %v2920_v27 = vsel %vm1656_vm10, %v2900_v14, %v2912_v58 }
 0x248   : > { %2948 = vst [vmem:[#allocation1] ss:$2 sm:$0xff] %v2932_v38  ;;  %v3063_v38 = vperm.slane %v5898_v48, 1 }
 0x249   : > { %2952 = vst [vmem:[#allocation1 + $0x10] ss:$2 sm:$0xff] %v2933_v51  ;;  %v5935_v51 = vrot.slane %v3059_v1, 4  ;;  %v3071_v1 = vperm.slane %v5925_v32, 1  ;;  %v2921_v7 = vsel %vm1656_vm10, %v2902_v52, %v2913_v59 }
 0x24a   : > { %2956 = vst [vmem:[#allocation1 + $0x20] ss:$2 sm:$0xff] %v2934_v6  ;;  %v3065_v6 = vperm.slane %v5914_v13, 1  ;;  %v2937_v14 = vmul.f32 %v2921_v7, %v5693_v20 }
 0x24b   : > { %2960 = vst [vmem:[#allocation1 + $0x30] ss:$2 sm:$0xff] %v2935_v54  ;;  %v2915_v54 = vrot.slane %v2907_v49, 4 }
 0x24c   : > { %1598 = vst.msk [vmem:[#allocation2 + $0x1fa] ss:$4 sm:$0x3] %vm4657_vm6, %v1406_v17  ;;  %v5966_v7 = vrot.slane %v3065_v6, 4  ;;  %v5983_v6 = vsel %vm1732_vm11, %v5007_v34, 0.0 }
 0x24d   : > { %1165 = vst.msk [vmem:[#allocation2 + $0x1c1] ss:$4 sm:$0x3] %vm4657_vm6, %v973_v2  ;;  %v2922_v2 = vsel %vm1656_vm10, %v2904_v26, %v2914_v24  ;;  %v2923_v49 = vsel %vm1656_vm10, %v2906_v29, %v2915_v54  ;;  %v3064_v29 = vperm.slane %v5914_v13, 0 }
 0x24e   : > { %1167 = vst.msk [vmem:[#allocation2 + $0x1c9] ss:$4 sm:$0x3] %vm4657_vm6, %v975_v55  ;;  %v2936_v55 = vmul.f32 %v2920_v27, %v5691_v57  ;;  %v2938_v59 = vmul.f32 %v2922_v2, %v5701_v16  ;;  %v6937_v57 = vperm.slane %v5855_v15, 1  ;;  %v2939_v27 = vmul.f32 %v2923_v49, %v5714_v35 }
 0x24f   : > { %v2949_v17 = vld.sshfl [vmem:[#allocation1] sm:$0xff pattern:$0x75316420]  ;;  %v2950_v36 = vld.sshfl [vmem:[#allocation1 + $0x8] sm:$0xff pattern:$0x75316420] }
 0x250   : > { %v2953_v19 = vld.sshfl [vmem:[#allocation1 + $0x10] sm:$0xff pattern:$0x75316420]  ;;  %v2954_v8 = vld.sshfl [vmem:[#allocation1 + $0x18] sm:$0xff pattern:$0x75316420] }
 0x251   : > { %v2957_v44 = vld.sshfl [vmem:[#allocation1 + $0x20] sm:$0xff pattern:$0x75316420]  ;;  %v2958_v12 = vld.sshfl [vmem:[#allocation1 + $0x28] sm:$0xff pattern:$0x75316420] }
 0x252   : > { %v2991_v25 = vsel %vm1732_vm11, %v2949_v17, 0.0  ;;  %v2992_v5 = vsel %vm1732_vm11, %v2953_v19, 0.0  ;;  %v2961_v58 = vld.sshfl [vmem:[#allocation1 + $0x30] sm:$0xff pattern:$0x75316420]  ;;  %v3006_v24 = vsel %vm1732_vm11, %v2950_v36, 0.0 }
 0x253   : > { %v2962_v9 = vld.sshfl [vmem:[#allocation1 + $0x38] sm:$0xff pattern:$0x75316420]  ;;  %2963 = vst [vmem:[#allocation1] ss:$2 sm:$0xff] %v2936_v55  ;;  %v2993_v52 = vadd.f32 %v2992_v5, %v2991_v25  ;;  %v3007_v26 = vsel %vm1732_vm11, %v2954_v8, 0.0 }
 0x254   : > { %v3074_v54 = vrot.slane %v6937_v57, 4  ;;  %2966 = vst [vmem:[#allocation1 + $0x10] ss:$2 sm:$0xff] %v2937_v14  ;;  %v3008_v19 = vadd.f32 %v3007_v26, %v3006_v24  ;;  %v3075_v16 = vrot.slane %v3063_v38, 4  ;;  %v5969_v25 = vrot.slane %v3067_v62, 4 }
 0x255   : > { %2969 = vst [vmem:[#allocation1 + $0x20] ss:$2 sm:$0xff] %v2938_v59  ;;  %v5971_v8 = vrot.slane %v3069_v22, 4  ;;  %v2994_v36 = vsel %vm1732_vm11, %v2957_v44, 0.0  ;;  %v5974_v35 = vrot.slane %v3071_v1, 4  ;;  %v5978_v2 = vsel %vm1732_vm11, %v5002_v31, 0.0 }
 0x256   : > { %2972 = vst [vmem:[#allocation1 + $0x30] ss:$2 sm:$0xff] %v2939_v27  ;;  %v2995_v49 = vadd.f32 %v2994_v36, %v2993_v52  ;;  %v3009_v38 = vsel %vm1732_vm11, %v2958_v12, 0.0  ;;  %v5987_v62 = vsel %vm1732_vm11, %v5016_v40, 0.0  ;;  %v5991_v22 = vsel %vm1732_vm11, %v5026_v46, 0.0 }
 0x257   : > { %v5993_v1 = vld [vmem:[#allocation2 + $0xc0] sm:$0x77]  ;;  %v3010_v44 = vadd.f32 %v3009_v38, %v3008_v19  ;;  %v5995_v31 = vld [vmem:[#allocation2 + $0xc8] sm:$0x77]  ;;  %v5997_v55 = vld [vmem:[#allocation2 + $0xd0] sm:$0x77]  ;;  %v976_v27 = vsel %vm443_vm3, %v5896_v43, %v5877_v23 }
 0x258   : > { %v2996_v12 = vsel %vm1732_vm11, %v2961_v58, 0.0  ;;  %v3011_v34 = vsel %vm1732_vm11, %v2962_v9, 0.0  ;;  %v6001_v14 = vld [vmem:[#allocation2 + $0xd8] sm:$0x77]  ;;  %v6938_v52 = vperm.slane %v5783_v30, 0  ;;  %v6939_v58 = vperm.slane %v5850_v47, 0 }
 0x259   : > { %v2997_v57 = vadd.f32 %v2996_v12, %v2995_v49  ;;  %v6940_v19 = vperm.slane %v5855_v15, 0  ;;  %v6941_v49 = vperm.slane %v5898_v48, 0  ;;  %v978_v47 = vsel %vm446_vm4, %v5896_v43, %v5877_v23 }
 0x25a   : > { %v2964_v59 = vld.sshfl [vmem:[#allocation1] sm:$0xff pattern:$0x75316420]  ;;  %v2965_v40 = vld.sshfl [vmem:[#allocation1 + $0x8] sm:$0xff pattern:$0x75316420]  ;;  %v3080_v46 = vsel %vm1656_vm10, %v6938_v52, %v5927_v42  ;;  %v3081_v9 = vsel %vm1656_vm10, %v6939_v58, %v5935_v51  ;;  %v3012_v52 = vadd.f32 %v3011_v34, %v3010_v44  ;;  %v980_v15 = vsel %vm449_vm5, %v5896_v43, %v5877_v23 }
 0x25b   : > { %v2967_v24 = vld.sshfl [vmem:[#allocation1 + $0x10] sm:$0xff pattern:$0x75316420]  ;;  %v2968_v26 = vld.sshfl [vmem:[#allocation1 + $0x18] sm:$0xff pattern:$0x75316420]  ;;  %v3082_v36 = vsel %vm1656_vm10, %v6940_v19, %v3074_v54  ;;  %v3096_v30 = vmul.f32 %v3080_v46, %v5993_v1  ;;  %v3083_v12 = vsel %vm1656_vm10, %v6941_v49, %v3075_v16  ;;  %v3097_v5 = vmul.f32 %v3081_v9, %v5995_v31 }
 0x25c   : > { %v2970_v38 = vld.sshfl [vmem:[#allocation1 + $0x20] sm:$0xff pattern:$0x75316420]  ;;  %v2971_v42 = vld.sshfl [vmem:[#allocation1 + $0x28] sm:$0xff pattern:$0x75316420]  ;;  %v3098_v51 = vmul.f32 %v3082_v36, %v5997_v55  ;;  %v3099_v44 = vmul.f32 %v3083_v12, %v6001_v14 }
 0x25d   : > { %v2973_v17 = vld.sshfl [vmem:[#allocation1 + $0x30] sm:$0xff pattern:$0x75316420]  ;;  %v2974_v20 = vld.sshfl [vmem:[#allocation1 + $0x38] sm:$0xff pattern:$0x75316420] }
 0x25e   : > { %v2998_v54 = vsel %vm1732_vm11, %v2964_v59, 0.0  ;;  %v3000_v48 = vsel %vm1732_vm11, %v2967_v24, 0.0  ;;  %3112 = vst [vmem:[#allocation1] ss:$2 sm:$0xff] %v3096_v30  ;;  %v977_v16 = vrot.slane %v976_v27, 2  ;;  %v3013_v46 = vsel %vm1732_vm11, %v2965_v40, 0.0 }
 0x25f   : > { %v2999_v34 = vadd.f32 %v2998_v54, %v2997_v57  ;;  %v3015_v58 = vsel %vm1732_vm11, %v2968_v26, 0.0  ;;  %3116 = vst [vmem:[#allocation1 + $0x10] ss:$2 sm:$0xff] %v3097_v5  ;;  %v6036_v9 = vsel %vm1732_vm11, %v5005_v33, 0.0  ;;  %v3014_v19 = vadd.f32 %v3013_v46, %v3012_v52  ;;  %v6068_v52 = vld [vmem:[#allocation2 + $0xe8] sm:$0x77] }
 0x260   : > { %3120 = vst [vmem:[#allocation1 + $0x20] ss:$2 sm:$0xff] %v3098_v51  ;;  %v979_v36 = vrot.slane %v978_v47, 3  ;;  %v981_v59 = vrot.slane %v980_v15, 4  ;;  %v6040_v24 = vsel %vm1732_vm11, %v5014_v39, 0.0  ;;  %v6044_v57 = vsel %vm1732_vm11, %v5024_v45, 0.0 }
 0x261   : > { %v6048_v40 = vsel %vm1732_vm11, %v5033_v53, 0.0  ;;  %v3001_v5 = vadd.f32 %v3000_v48, %v2999_v34  ;;  %3124 = vst [vmem:[#allocation1 + $0x30] ss:$2 sm:$0xff] %v3099_v44  ;;  %v6052_v33 = vsel %vm1732_vm11, %v5244_v60, 0.0  ;;  %v6056_v26 = vsel %vm1732_vm11, %v5254_v21, 0.0 }
 0x262   : > { %v3002_v39 = vsel %vm1732_vm11, %v2970_v38, 0.0  ;;  %v3016_v27 = vadd.f32 %v3015_v58, %v3014_v19  ;;  %1169 = vst.msk [vmem:[#allocation2 + $0x1d1] ss:$4 sm:$0x3] %vm4657_vm6, %v977_v16  ;;  %v6061_v45 = vld [vmem:[#allocation2 + $0xe0] sm:$0x77]  ;;  %v3084_v51 = vsel %vm1656_vm10, %v3064_v29, %v5966_v7 }
 0x263   : > { %v3003_v53 = vadd.f32 %v3002_v39, %v3001_v5  ;;  %v3017_v30 = vsel %vm1732_vm11, %v2971_v42, 0.0  ;;  %1171 = vst.msk [vmem:[#allocation2 + $0x1d9] ss:$4 sm:$0x3] %vm4657_vm6, %v979_v36  ;;  %v6070_v21 = vld [vmem:[#allocation2 + $0xf0] sm:$0x77]  ;;  %v3100_v29 = vmul.f32 %v3084_v51, %v6061_v45 }
 0x264   : > { %v6066_v60 = vld [vmem:[#allocation2 + $0x1c1] ss:$4 sm:$0x3]  ;;  %v3004_v38 = vsel %vm1732_vm11, %v2973_v17, 0.0  ;;  %v3018_v49 = vadd.f32 %v3017_v30, %v3016_v27  ;;  %v6075_v12 = vld [vmem:[#allocation2 + $0xf8] sm:$0x77] }
 0x265   : > { %1173 = vst.msk [vmem:[#allocation2 + $0x1e1] ss:$4 sm:$0x3] %vm4657_vm6, %v981_v59  ;;  %v6077_v47 = vadd.f32 %v3004_v38, %v3003_v53  ;;  %v3019_v42 = vsel %vm1732_vm11, %v2974_v20, 0.0  ;;  %v6943_v54 = vperm.slane %v5919_v4, 0  ;;  %v6944_v48 = vperm.slane %v5923_v50, 0 }
 0x266   : > { %v3113_v15 = vld.sshfl [vmem:[#allocation1] sm:$0xff pattern:$0x75316420]  ;;  %v6092_v44 = vadd.f32 %v3019_v42, %v3018_v49  ;;  %v3114_v34 = vld.sshfl [vmem:[#allocation1 + $0x8] sm:$0xff pattern:$0x75316420]  ;;  %v984_v50 = vsel %vm455_vm8, %v5896_v43, %v5877_v23 }
 0x267   : > { %6942 = vst [vmem:[#allocation118_spill] sm:$0xff] %v6077_v47  ;;  %v3085_v17 = vsel %vm1656_vm10, %v6943_v54, %v5969_v25  ;;  %v3086_v16 = vsel %vm1656_vm10, %v6944_v48, %v5971_v8  ;;  %v3117_v20 = vld.sshfl [vmem:[#allocation1 + $0x10] sm:$0xff pattern:$0x75316420]  ;;  %v6946_v46 = vperm.slane %v5925_v32, 0  ;;  %v982_v25 = vsel %vm452_vm7, %v5896_v43, %v5877_v23 }
 0x268   : > { %6945 = vst [vmem:[#allocation119_spill] sm:$0xff] %v6092_v44  ;;  %v3118_v7 = vld.sshfl [vmem:[#allocation1 + $0x18] sm:$0xff pattern:$0x75316420]  ;;  %v3155_v19 = vsel %vm1732_vm11, %v3113_v15, 0.0  ;;  %v3156_v32 = vsel %vm1732_vm11, %v3117_v20, 0.0  ;;  %v3101_v59 = vmul.f32 %v3085_v17, %v6068_v52  ;;  %v3102_v5 = vmul.f32 %v3086_v16, %v6070_v21 }
 0x269   : > { %v3087_v13 = vsel %vm1656_vm10, %v6946_v46, %v5974_v35  ;;  %v3121_v4 = vld.sshfl [vmem:[#allocation1 + $0x20] sm:$0xff pattern:$0x75316420]  ;;  %v3190_v8 = vld [vmem:[#allocation2 + $0x1c9] ss:$4 sm:$0x3]  ;;  %v986_v35 = vsel %vm458_vm9, %v5877_v23, %v5896_v43  ;;  %v3157_v30 = vadd.f32 %v3156_v32, %v3155_v19 }
 0x26a   : > { %v3122_v58 = vld.sshfl [vmem:[#allocation1 + $0x28] sm:$0xff pattern:$0x75316420]  ;;  %v3212_v36 = vperm.slane %v6066_v60, 1  ;;  %v3103_v39 = vmul.f32 %v3087_v13, %v6075_v12  ;;  %3127 = vst [vmem:[#allocation1] ss:$2 sm:$0xff] %v3100_v29 }
 0x26b   : > { %v3125_v27 = vld.sshfl [vmem:[#allocation1 + $0x30] sm:$0xff pattern:$0x75316420]  ;;  %v3126_v53 = vld.sshfl [vmem:[#allocation1 + $0x38] sm:$0xff pattern:$0x75316420] }
 0x26c   : > { %v6114_v38 = vld [vmem:[#allocation2 + $0x1c2] ss:$4 sm:$0x3]  ;;  %v3158_v49 = vsel %vm1732_vm11, %v3121_v4, 0.0  ;;  %v3170_v42 = vsel %vm1732_vm11, %v3114_v34, 0.0  ;;  %v3171_v43 = vsel %vm1732_vm11, %v3118_v7, 0.0 }
 0x26d   : > { %v983_v23 = vrot.slane %v982_v25, 5  ;;  %3130 = vst [vmem:[#allocation1 + $0x10] ss:$2 sm:$0xff] %v3101_v59  ;;  %v3159_v15 = vadd.f32 %v3158_v49, %v3157_v30  ;;  %v3172_v51 = vadd.f32 %v3171_v43, %v3170_v42  ;;  %v985_v54 = vrot.slane %v984_v50, 6 }
 0x26e   : > { %v987_v17 = vrot.slane %v986_v35, 7  ;;  %3133 = vst [vmem:[#allocation1 + $0x20] ss:$2 sm:$0xff] %v3102_v5  ;;  %v3160_v48 = vsel %vm1732_vm11, %v3125_v27, 0.0  ;;  %v3173_v16 = vsel %vm1732_vm11, %v3122_v58, 0.0  ;;  %v3214_v20 = vperm.slane %v3190_v8, 1 }
 0x26f   : > { %v3227_v46 = vrot.slane %v3212_v36, 4  ;;  %v6123_v13 = vsel %vm1732_vm11, %v5299_v18, 0.0  ;;  %v6127_v34 = vsel %vm1732_vm11, %v5306_v3, 0.0  ;;  %3136 = vst [vmem:[#allocation1 + $0x30] ss:$2 sm:$0xff] %v3103_v39  ;;  %v3161_v29 = vadd.f32 %v3160_v48, %v3159_v15 }
 0x270   : > { %v3174_v7 = vadd.f32 %v3173_v16, %v3172_v51  ;;  %v3175_v4 = vsel %vm1732_vm11, %v3126_v53, 0.0  ;;  %v6131_v25 = vld [vmem:[#allocation2 + $0x1ca] ss:$4 sm:$0x3]  ;;  %v3367_v50 = vperm.slane %v6114_v38, 1  ;;  %v3211_v18 = vperm.slane %v6066_v60, 0 }
 0x271   : > { %1175 = vst.msk [vmem:[#allocation2 + $0x1e9] ss:$4 sm:$0x3] %vm4657_vm6, %v983_v23  ;;  %v3192_v3 = vld [vmem:[#allocation2 + $0x1d1] ss:$4 sm:$0x3] }
 0x272   : > { %v3176_v58 = vadd.f32 %v3175_v4, %v3174_v7  ;;  %1177 = vst.msk [vmem:[#allocation2 + $0x1f1] ss:$4 sm:$0x3] %vm4657_vm6, %v985_v54  ;;  %v3194_v32 = vld [vmem:[#allocation2 + $0x1d9] ss:$4 sm:$0x3]  ;;  %v3235_v59 = vsel %vm1656_vm10, %v3211_v18, %v3227_v46 }
 0x273   : > { %1179 = vst.msk [vmem:[#allocation2 + $0x1f9] ss:$4 sm:$0x3] %vm4657_vm6, %v987_v17  ;;  %v3213_v35 = vperm.slane %v3190_v8, 0  ;;  %v3228_v36 = vrot.slane %v3214_v20, 4  ;;  %v6146_v42 = vrot.slane %v3367_v50, 4  ;;  %v3251_v23 = vmul.f32 %v3235_v59, %v5993_v1 }
 0x274   : > { %v3128_v5 = vld.sshfl [vmem:[#allocation1] sm:$0xff pattern:$0x75316420]  ;;  %v3196_v39 = vld [vmem:[#allocation2 + $0x1e1] ss:$4 sm:$0x3] }
 0x275   : > { %v3129_v27 = vld.sshfl [vmem:[#allocation1 + $0x8] sm:$0xff pattern:$0x75316420]  ;;  %v3131_v53 = vld.sshfl [vmem:[#allocation1 + $0x10] sm:$0xff pattern:$0x75316420]  ;;  %v3236_v8 = vsel %vm1656_vm10, %v3213_v35, %v3228_v36 }
 0x276   : > { %v6143_v60 = vld [vmem:[#allocation2 + $0x1d2] ss:$4 sm:$0x3]  ;;  %v3216_v43 = vperm.slane %v3192_v3, 1  ;;  %v3162_v54 = vsel %vm1732_vm11, %v3128_v5, 0.0  ;;  %v3164_v17 = vsel %vm1732_vm11, %v3131_v53, 0.0  ;;  %v3252_v53 = vmul.f32 %v3236_v8, %v5995_v31 }
 0x277   : > { %v3132_v30 = vld.sshfl [vmem:[#allocation1 + $0x18] sm:$0xff pattern:$0x75316420]  ;;  %v3134_v15 = vld.sshfl [vmem:[#allocation1 + $0x20] sm:$0xff pattern:$0x75316420]  ;;  %v3163_v46 = vadd.f32 %v3162_v54, %v3161_v29 }
 0x278   : > { %v3135_v51 = vld.sshfl [vmem:[#allocation1 + $0x28] sm:$0xff pattern:$0x75316420]  ;;  %v3218_v16 = vperm.slane %v3194_v32, 1  ;;  %3267 = vst [vmem:[#allocation1] ss:$2 sm:$0xff] %v3251_v23 }
 0x279   : > { %v3137_v20 = vld.sshfl [vmem:[#allocation1 + $0x30] sm:$0xff pattern:$0x75316420]  ;;  %v3177_v7 = vsel %vm1732_vm11, %v3129_v27, 0.0  ;;  %v3179_v4 = vsel %vm1732_vm11, %v3132_v30, 0.0  ;;  %v3220_v18 = vperm.slane %v3196_v39, 1  ;;  %v3165_v19 = vadd.f32 %v3164_v17, %v3163_v46 }
 0x27a   : > { %v3198_v50 = vld [vmem:[#allocation2 + $0x1e9] ss:$4 sm:$0x3]  ;;  %v3178_v59 = vadd.f32 %v3177_v7, %v3176_v58  ;;  %v3200_v36 = vld [vmem:[#allocation2 + $0x1f1] ss:$4 sm:$0x3] }
 0x27b   : > { %v3222_v5 = vperm.slane %v3198_v50, 1  ;;  %v3138_v49 = vld.sshfl [vmem:[#allocation1 + $0x38] sm:$0xff pattern:$0x75316420]  ;;  %v3215_v48 = vperm.slane %v3192_v3, 0  ;;  %v3217_v23 = vperm.slane %v3194_v32, 0 }
 0x27c   : > { %v3229_v56 = vrot.slane %v3216_v43, 4  ;;  %v3166_v29 = vsel %vm1732_vm11, %v3134_v15, 0.0  ;;  %v3180_v27 = vadd.f32 %v3179_v4, %v3178_v59  ;;  %v3181_v30 = vsel %vm1732_vm11, %v3135_v51, 0.0  ;;  %3271 = vst [vmem:[#allocation1 + $0x10] ss:$2 sm:$0xff] %v3252_v53 }
 0x27d   : > { %v3230_v58 = vrot.slane %v3218_v16, 4  ;;  %v3167_v54 = vadd.f32 %v3166_v29, %v3165_v19  ;;  %v6165_v8 = vld [vmem:[#allocation2 + $0x1da] ss:$4 sm:$0x3]  ;;  %v3224_v3 = vperm.slane %v3200_v36, 1  ;;  %v3231_v32 = vrot.slane %v3220_v18, 4 }
 0x27e   : > { %v3232_v43 = vrot.slane %v3222_v5, 4  ;;  %v3168_v15 = vsel %vm1732_vm11, %v3137_v20, 0.0  ;;  %v3182_v17 = vadd.f32 %v3181_v30, %v3180_v27  ;;  %v3202_v46 = vld [vmem:[#allocation2 + $0x1f9] ss:$4 sm:$0x3]  ;;  %v3219_v51 = vperm.slane %v3196_v39, 0 }
 0x27f   : > { %v3237_v7 = vsel %vm1656_vm10, %v3215_v48, %v3229_v56  ;;  %v6169_v4 = vadd.f32 %v3168_v15, %v3167_v54  ;;  %v3183_v16 = vsel %vm1732_vm11, %v3138_v49, 0.0  ;;  %v3221_v59 = vperm.slane %v3198_v50, 0  ;;  %v6184_v39 = vld [vmem:[#allocation2 + $0x1e2] ss:$4 sm:$0x3] }
 0x280   : > { %v3238_v19 = vsel %vm1656_vm10, %v3217_v23, %v3230_v58  ;;  %v6173_v53 = vadd.f32 %v3183_v16, %v3182_v17  ;;  %v3371_v29 = vperm.slane %v6143_v60, 1  ;;  %v3239_v20 = vsel %vm1656_vm10, %v3219_v51, %v3231_v32  ;;  %v3268_v5 = vld.sshfl [vmem:[#allocation1] sm:$0xff pattern:$0x75316420] }
 0x281   : > { %v3253_v56 = vmul.f32 %v3237_v7, %v5997_v55  ;;  %v3226_v48 = vperm.slane %v3202_v46, 1  ;;  %v3233_v50 = vrot.slane %v3224_v3, 4  ;;  %v3240_v18 = vsel %vm1656_vm10, %v3221_v59, %v3232_v43  ;;  %v3269_v30 = vld.sshfl [vmem:[#allocation1 + $0x8] sm:$0xff pattern:$0x75316420] }
 0x282   : > { %v3223_v23 = vperm.slane %v3200_v36, 0  ;;  %v3254_v27 = vmul.f32 %v3238_v19, %v6001_v14  ;;  %v3255_v58 = vmul.f32 %v3239_v20, %v6061_v45  ;;  %v3373_v15 = vperm.slane %v6165_v8, 1  ;;  %v6195_v51 = vld [vmem:[#allocation2 + $0x1ea] ss:$4 sm:$0x3] }
 0x283   : > { %3275 = vst [vmem:[#allocation1 + $0x20] ss:$2 sm:$0xff] %v3253_v56  ;;  %v3272_v54 = vld.sshfl [vmem:[#allocation1 + $0x10] sm:$0xff pattern:$0x75316420]  ;;  %v3256_v17 = vmul.f32 %v3240_v18, %v6068_v52  ;;  %v3234_v36 = vrot.slane %v3226_v48, 4 }
 0x284   : > { %v3273_v32 = vld.sshfl [vmem:[#allocation1 + $0x18] sm:$0xff pattern:$0x75316420]  ;;  %3279 = vst [vmem:[#allocation1 + $0x30] ss:$2 sm:$0xff] %v3254_v27  ;;  %v3311_v3 = vsel %vm1732_vm11, %v3272_v54, 0.0  ;;  %v3241_v7 = vsel %vm1656_vm10, %v3223_v23, %v3233_v50 }
 0x285   : > { %v3326_v43 = vsel %vm1732_vm11, %v3273_v32, 0.0  ;;  %3282 = vst [vmem:[#allocation1] ss:$2 sm:$0xff] %v3255_v58  ;;  %v6948_v59 = vperm.slane %v6131_v25, 1  ;;  %v3310_v20 = vsel %vm1732_vm11, %v3268_v5, 0.0  ;;  %v3325_v56 = vsel %vm1732_vm11, %v3269_v30, 0.0 }
 0x286   : > { %3285 = vst [vmem:[#allocation1 + $0x10] ss:$2 sm:$0xff] %v3256_v17  ;;  %v6203_v18 = vld [vmem:[#allocation2 + $0x1f2] ss:$4 sm:$0x3]  ;;  %v3375_v27 = vperm.slane %v6184_v39, 1  ;;  %v3312_v32 = vadd.f32 %v3311_v3, %v3310_v20  ;;  %v3327_v48 = vadd.f32 %v3326_v43, %v3325_v56  ;;  %v3257_v5 = vmul.f32 %v3241_v7, %v6070_v21 }
 0x287   : > { %v3383_v19 = vrot.slane %v6948_v59, 4  ;;  %v3225_v54 = vperm.slane %v3202_v46, 0  ;;  %v3377_v23 = vperm.slane %v6195_v51, 1  ;;  %v3384_v58 = vrot.slane %v3371_v29, 4  ;;  %v6226_v50 = vld [vmem:[%s6211_s10] sm:$0x77] }
 0x288   : > { %v6949_v30 = vperm.slane %v6114_v38, 0  ;;  %v3379_v59 = vperm.slane %v6203_v18, 1  ;;  %v6950_v29 = vperm.slane %v6131_v25, 0  ;;  %v6229_v35 = vld [vmem:[#allocation2 + $0x1fa] ss:$4 sm:$0x3] }
 0x289   : > { %v3242_v17 = vsel %vm1656_vm10, %v3225_v54, %v3234_v36  ;;  %v6951_v25 = vperm.slane %v6143_v60, 0  ;;  %v3385_v44 = vrot.slane %v3373_v15, 4  ;;  %v3500_v15 = vperm.slane %v6226_v50, 4 }
 0x28a   : > { %v3390_v46 = vsel %vm1656_vm10, %v6949_v30, %v6146_v42  ;;  %v3276_v3 = vld.sshfl [vmem:[#allocation1 + $0x20] sm:$0xff pattern:$0x75316420]  ;;  %v3277_v43 = vld.sshfl [vmem:[#allocation1 + $0x28] sm:$0xff pattern:$0x75316420]  ;;  %v3391_v20 = vsel %vm1656_vm10, %v6950_v29, %v3383_v19  ;;  %v3258_v36 = vmul.f32 %v3242_v17, %v6075_v12 }
 0x28b   : > { %3288 = vst [vmem:[#allocation1 + $0x20] ss:$2 sm:$0xff] %v3257_v5  ;;  %v3313_v56 = vsel %vm1732_vm11, %v3276_v3, 0.0  ;;  %v3328_v7 = vsel %vm1732_vm11, %v3277_v43, 0.0  ;;  %v3392_v19 = vsel %vm1656_vm10, %v6951_v25, %v3384_v58  ;;  %v3406_v5 = vmul.f32 %v3390_v46, %v5993_v1 }
 0x28c   : > { %v3280_v38 = vld.sshfl [vmem:[#allocation1 + $0x30] sm:$0xff pattern:$0x75316420]  ;;  %v3281_v16 = vld.sshfl [vmem:[#allocation1 + $0x38] sm:$0xff pattern:$0x75316420]  ;;  %v3314_v42 = vadd.f32 %v3313_v56, %v3312_v32  ;;  %v3329_v30 = vadd.f32 %v3328_v7, %v3327_v48  ;;  %v3407_v3 = vmul.f32 %v3391_v20, %v5995_v31  ;;  %v3408_v1 = vmul.f32 %v3392_v19, %v5997_v55 }
 0x28d   : > { %v3283_v54 = vld.sshfl [vmem:[#allocation1] sm:$0xff pattern:$0x75316420]  ;;  %v3284_v49 = vld.sshfl [vmem:[#allocation1 + $0x8] sm:$0xff pattern:$0x75316420]  ;;  %v1735_v46 = vadd.f32 %v5983_v6, %v5978_v2 }
 0x28e   : > { %v3286_v43 = vld.sshfl [vmem:[#allocation1 + $0x10] sm:$0xff pattern:$0x75316420]  ;;  %v3287_v29 = vld.sshfl [vmem:[#allocation1 + $0x18] sm:$0xff pattern:$0x75316420] }
 0x28f   : > { %3291 = vst [vmem:[#allocation1 + $0x30] ss:$2 sm:$0xff] %v3258_v36  ;;  %v3315_v32 = vsel %vm1732_vm11, %v3280_v38, 0.0  ;;  %v3317_v48 = vsel %vm1732_vm11, %v3283_v54, 0.0  ;;  %v3330_v17 = vsel %vm1732_vm11, %v3281_v16, 0.0  ;;  %v3386_v56 = vrot.slane %v3375_v27, 4 }
 0x290   : > { %v3316_v7 = vadd.f32 %v3315_v32, %v3314_v42  ;;  %v3331_v47 = vadd.f32 %v3330_v17, %v3329_v30  ;;  %v3332_v60 = vsel %vm1732_vm11, %v3284_v49, 0.0  ;;  %3422 = vst [vmem:[#allocation1] ss:$2 sm:$0xff] %v3406_v5  ;;  %v3319_v31 = vsel %vm1732_vm11, %v3286_v43, 0.0 }
 0x291   : > { %v3334_v58 = vsel %vm1732_vm11, %v3287_v29, 0.0  ;;  %3426 = vst [vmem:[#allocation1 + $0x10] ss:$2 sm:$0xff] %v3407_v3  ;;  %v1750_v16 = vadd.f32 %v6040_v24, %v6036_v9  ;;  %v3378_v42 = vperm.slane %v6203_v18, 0  ;;  %v3381_v55 = vperm.slane %v6229_v35, 1 }
 0x292   : > { %v3289_v27 = vld.sshfl [vmem:[#allocation1 + $0x20] sm:$0xff pattern:$0x75316420]  ;;  %v3290_v20 = vld.sshfl [vmem:[#allocation1 + $0x28] sm:$0xff pattern:$0x75316420]  ;;  %v3318_v38 = vadd.f32 %v3317_v48, %v3316_v7  ;;  %v3333_v49 = vadd.f32 %v3332_v60, %v3331_v47 }
 0x293   : > { %v3387_v30 = vrot.slane %v3377_v23, 4  ;;  %v3388_v36 = vrot.slane %v3379_v59, 4  ;;  %3430 = vst [vmem:[#allocation1 + $0x20] ss:$2 sm:$0xff] %v3408_v1  ;;  %v6952_v54 = vperm.slane %v6165_v8, 0  ;;  %v6953_v2 = vperm.slane %v6184_v39, 0 }
 0x294   : > { %v3320_v9 = vadd.f32 %v3319_v31, %v3318_v38  ;;  %v3335_v24 = vadd.f32 %v3334_v58, %v3333_v49  ;;  %v3321_v19 = vsel %vm1732_vm11, %v3289_v27, 0.0  ;;  %v3336_v47 = vsel %vm1732_vm11, %v3290_v20, 0.0 }
 0x295   : > { %v3393_v25 = vsel %vm1656_vm10, %v6952_v54, %v3385_v44  ;;  %v3394_v6 = vsel %vm1656_vm10, %v6953_v2, %v3386_v56  ;;  %v3499_v18 = vperm.slane %v6226_v50, 0  ;;  %v3504_v5 = vperm.slane %v3500_v15, 0 }
 0x296   : > { %v1737_v23 = vadd.f32 %v5987_v62, %v1735_v46  ;;  %v1752_v59 = vadd.f32 %v6044_v57, %v1750_v16  ;;  %v3292_v8 = vld.sshfl [vmem:[#allocation1 + $0x30] sm:$0xff pattern:$0x75316420]  ;;  %v3293_v3 = vld.sshfl [vmem:[#allocation1 + $0x38] sm:$0xff pattern:$0x75316420]  ;;  %v3322_v44 = vadd.f32 %v3321_v19, %v3320_v9  ;;  %v3337_v43 = vadd.f32 %v3336_v47, %v3335_v24 }
 0x297   : > { %v6954_v39 = vperm.slane %v6195_v51, 0  ;;  %v3409_v32 = vmul.f32 %v3393_v25, %v6001_v14  ;;  %v3323_v48 = vsel %vm1732_vm11, %v3292_v8, 0.0  ;;  %v3338_v17 = vsel %vm1732_vm11, %v3293_v3, 0.0  ;;  %v3423_v56 = vld.sshfl [vmem:[#allocation1] sm:$0xff pattern:$0x75316420] }
 0x298   : > { %v3396_v7 = vsel %vm1656_vm10, %v3378_v42, %v3388_v36  ;;  %v3410_v62 = vmul.f32 %v3394_v6, %v6061_v45  ;;  %v6269_v57 = vadd.f32 %v3323_v48, %v3322_v44  ;;  %v6271_v60 = vadd.f32 %v3338_v17, %v3337_v43  ;;  %v3424_v1 = vld.sshfl [vmem:[#allocation1 + $0x8] sm:$0xff pattern:$0x75316420]  ;;  %v3427_v31 = vld.sshfl [vmem:[#allocation1 + $0x10] sm:$0xff pattern:$0x75316420] }
 0x299   : > { %v3395_v29 = vsel %vm1656_vm10, %v6954_v39, %v3387_v30  ;;  %v3389_v51 = vrot.slane %v3381_v55, 4  ;;  %v3428_v58 = vld.sshfl [vmem:[#allocation1 + $0x18] sm:$0xff pattern:$0x75316420]  ;;  %3434 = vst [vmem:[#allocation1 + $0x30] ss:$2 sm:$0xff] %v3409_v32  ;;  %v1739_v27 = vadd.f32 %v5991_v22, %v1737_v23  ;;  %v1754_v45 = vadd.f32 %v6048_v40, %v1752_v59 }
 0x29a   : > { %v3380_v14 = vperm.slane %v6229_v35, 0  ;;  %v3411_v15 = vmul.f32 %v3395_v29, %v6068_v52  ;;  %3437 = vst [vmem:[#allocation1] ss:$2 sm:$0xff] %v3410_v62  ;;  %v3503_v46 = vperm.slane %v3499_v18, 0  ;;  %v3507_v16 = vrot.slane %v3504_v5, 4 }
 0x29b   : > { %v1890_v20 = vadd.f32 %v6127_v34, %v6123_v13  ;;  %v3412_v38 = vmul.f32 %v3396_v7, %v6070_v21  ;;  %v3431_v49 = vld.sshfl [vmem:[#allocation1 + $0x20] sm:$0xff pattern:$0x75316420]  ;;  %v3432_v42 = vld.sshfl [vmem:[#allocation1 + $0x28] sm:$0xff pattern:$0x75316420]  ;;  %v1741_v5 = vadd.f32 %v6052_v33, %v1739_v27 }
 0x29c   : > { %3440 = vst [vmem:[#allocation1 + $0x10] ss:$2 sm:$0xff] %v3411_v15  ;;  %v3465_v55 = vsel %vm1732_vm11, %v3423_v56, 0.0  ;;  %v3466_v35 = vsel %vm1732_vm11, %v3427_v31, 0.0  ;;  %v3480_v52 = vsel %vm1732_vm11, %v3424_v1, 0.0  ;;  %v3481_v30 = vsel %vm1732_vm11, %v3428_v58, 0.0 }
 0x29d   : > { %v3397_v22 = vsel %vm1656_vm10, %v3380_v14, %v3389_v51  ;;  %3443 = vst [vmem:[#allocation1 + $0x20] ss:$2 sm:$0xff] %v3412_v38  ;;  %v3467_v40 = vadd.f32 %v3466_v35, %v3465_v55  ;;  %v3482_v36 = vadd.f32 %v3481_v30, %v3480_v52  ;;  %v6286_v13 = vadd.f32 1.0, %v6226_v50  ;;  %v6955_v56 = vld [vmem:[#allocation25_spill] sm:$0xff]  ;;  %v6956_v7 = vld [vmem:[#allocation10_spill] sm:$0xff]  ;;  %v6959_v15 = vld [vmem:[#allocation24_spill] sm:$0xff] }
 0x29e   : > { %v1755_v21 = vsel %vm1732_vm11, %v5246_v61, 0.0  ;;  %v3468_v34 = vsel %vm1732_vm11, %v3431_v49, 0.0  ;;  %v3483_v54 = vsel %vm1732_vm11, %v3432_v42, 0.0  ;;  %v6293_v25 = vsel %vm1656_vm10, %v3503_v46, %v3507_v16  ;;  %v6957_v1 = vld [vmem:[#allocation14_spill] sm:$0xff]  ;;  %v6960_v46 = vld [vmem:[#allocation11_spill] sm:$0xff]  ;;  %v6961_v16 = vld [vmem:[#allocation17_spill] sm:$0xff] }
 0x29f   : > { %v1891_v2 = vsel %vm1732_vm11, %v5315_v11, 0.0  ;;  %v1904_v6 = vsel %vm1732_vm11, %v5313_v10, 0.0  ;;  %v3469_v9 = vadd.f32 %v3468_v34, %v3467_v40  ;;  %v3484_v24 = vadd.f32 %v3483_v54, %v3482_v36  ;;  %v6962_v42 = vld [vmem:[#allocation15_spill] sm:$0xff]  ;;  %v6963_v35 = vld [vmem:[#allocation26_spill] sm:$0xff]  ;;  %v6965_v40 = vld [vmem:[#allocation40_spill] sm:$0xff] }
 0x2a0   : > { %v1892_v19 = vadd.f32 %v1891_v2, %v1890_v20  ;;  %v3413_v47 = vmul.f32 %v3397_v22, %v6075_v12  ;;  %v3435_v18 = vld.sshfl [vmem:[#allocation1 + $0x30] sm:$0xff pattern:$0x75316420]  ;;  %v3436_v61 = vld.sshfl [vmem:[#allocation1 + $0x38] sm:$0xff pattern:$0x75316420]  ;;  %v6307_v8 = vmul.f32 %v6293_v25, %v6286_v13  ;;  %v1756_v11 = vadd.f32 %v1755_v21, %v1754_v45 }
 0x2a1   : > { %v6301_v23 = vld.sshfl [vmem:[#allocation1] sm:$0xff pattern:$0x75316420]  ;;  %v6303_v59 = vld.sshfl [vmem:[#allocation1 + $0x8] sm:$0xff pattern:$0x75316420]  ;;  %v1743_v48 = vadd.f32 %v6056_v26, %v1741_v5 }
 0x2a2   : > { %v1757_v10 = vsel %vm1732_vm11, %v5256_v63, 0.0  ;;  %3446 = vst [vmem:[#allocation1 + $0x30] ss:$2 sm:$0xff] %v3413_v47  ;;  %v3470_v3 = vsel %vm1732_vm11, %v3435_v18, 0.0  ;;  %v3485_v12 = vsel %vm1732_vm11, %v3436_v61, 0.0  ;;  %v1893_v33 = vsel %vm1732_vm11, %v5323_v28, 0.0 }
 0x2a3   : > { %v1903_v44 = vsel %vm1732_vm11, %v5304_v37, 0.0  ;;  %v6317_v43 = vadd.f32 %v3470_v3, %v3469_v9  ;;  %v6319_v39 = vadd.f32 %v3485_v12, %v3484_v24  ;;  %v1894_v29 = vadd.f32 %v1893_v33, %v1892_v19  ;;  %3512 = vst [vmem:[#allocation1] ss:$2 sm:$0xff] %v6307_v8  ;;  %v6964_v30 = vld [vmem:[#allocation27_spill] sm:$0xff]  ;;  %v6967_v47 = vld [vmem:[#allocation38_spill] sm:$0xff]  ;;  %v6968_v61 = vld [vmem:[#allocation12_spill] sm:$0xff] }
 0x2a4   : > { %v1905_v32 = vadd.f32 %v1904_v6, %v1903_v44  ;;  %v1895_v63 = vsel %vm1732_vm11, %v5346_v0, 0.0  ;;  %v1758_v17 = vadd.f32 %v1757_v10, %v1756_v11  ;;  %v2044_v28 = vsel %vm1732_vm11, %v5375_v41, 0.0  ;;  %v6958_v0 = vld [vmem:[#allocation23_spill] sm:$0xff]  ;;  %v6966_v6 = vld [vmem:[#allocation16_spill] sm:$0xff]  ;;  %v6969_v11 = vld [vmem:[#allocation13_spill] sm:$0xff] }
 0x2a5   : > { %v2059_v37 = vsel %vm1732_vm11, %v6955_v56, 0.0  ;;  %v1744_v62 = vsel %vm1732_vm11, %v6956_v7, 0.0  ;;  %v1906_v31 = vsel %vm1732_vm11, %v6957_v1, 0.0  ;;  %v1896_v51 = vadd.f32 %v1895_v63, %v1894_v29  ;;  %v6970_v44 = vld [vmem:[#allocation19_spill] sm:$0xff] }
 0x2a6   : > { %v1907_v58 = vadd.f32 %v1906_v31, %v1905_v32  ;;  %v2043_v14 = vsel %vm1732_vm11, %v6958_v0, 0.0  ;;  %v2058_v26 = vsel %vm1732_vm11, %v6959_v15, 0.0  ;;  %v1759_v41 = vsel %vm1732_vm11, %v6960_v46, 0.0  ;;  %v6974_v31 = vld [vmem:[#allocation42_spill] sm:$0xff] }
 0x2a7   : > { %v1897_v27 = vsel %vm1732_vm11, %v6961_v16, 0.0  ;;  %v2045_v45 = vadd.f32 %v2044_v28, %v2043_v14  ;;  %v2060_v20 = vadd.f32 %v2059_v37, %v2058_v26  ;;  %v1745_v38 = vadd.f32 %v1744_v62, %v1743_v48  ;;  %v6971_v48 = vld [vmem:[#allocation28_spill] sm:$0xff]  ;;  %v6972_v28 = vld [vmem:[#allocation29_spill] sm:$0xff]  ;;  %v6973_v37 = vld [vmem:[#allocation18_spill] sm:$0xff] }
 0x2a8   : > { %v1760_v49 = vadd.f32 %v1759_v41, %v1758_v17  ;;  %v1908_v55 = vsel %vm1732_vm11, %v6962_v42, 0.0  ;;  %v2046_v52 = vsel %vm1732_vm11, %v6963_v35, 0.0  ;;  %v2061_v22 = vsel %vm1732_vm11, %v6964_v30, 0.0  ;;  %v6976_v14 = vld [vmem:[#allocation31_spill] sm:$0xff]  ;;  %v6977_v16 = vld [vmem:[#allocation21_spill] sm:$0xff] }
 0x2a9   : > { %v2208_v36 = vsel %vm1732_vm11, %v6965_v40, 0.0  ;;  %v1898_v21 = vadd.f32 %v1897_v27, %v1896_v51  ;;  %v1909_v34 = vadd.f32 %v1908_v55, %v1907_v58  ;;  %v1910_v9 = vsel %vm1732_vm11, %v6966_v6, 0.0  ;;  %v6975_v58 = vld [vmem:[#allocation30_spill] sm:$0xff]  ;;  %v6980_v40 = vld [vmem:[#allocation33_spill] sm:$0xff] }
 0x2aa   : > { %v6349_v54 = vld.sshfl [vmem:[#allocation1] sm:$0xff pattern:$0x75316420]  ;;  %v6351_v2 = vld.sshfl [vmem:[#allocation1 + $0x8] sm:$0xff pattern:$0x75316420]  ;;  %v2047_v24 = vadd.f32 %v2046_v52, %v2045_v45  ;;  %v2062_v19 = vadd.f32 %v2061_v22, %v2060_v20 }
 0x2ab   : > { %v2207_v18 = vsel %vm1732_vm11, %v6967_v47, 0.0  ;;  %3519 = vst [vmem:[#allocation1] ss:$2 sm:$0xff] %v6307_v8  ;;  %v1746_v5 = vsel %vm1732_vm11, %v6968_v61, 0.0  ;;  %v1761_v10 = vsel %vm1732_vm11, %v6969_v11, 0.0  ;;  %v1899_v29 = vsel %vm1732_vm11, %v6970_v44, 0.0 }
 0x2ac   : > { %v2209_v3 = vadd.f32 %v2208_v36, %v2207_v18  ;;  %v1747_v12 = vadd.f32 %v1746_v5, %v1745_v38  ;;  %v1762_v33 = vadd.f32 %v1761_v10, %v1760_v49  ;;  %v1900_v32 = vadd.f32 %v1899_v29, %v1898_v21  ;;  %v6978_v45 = vld [vmem:[#allocation32_spill] sm:$0xff]  ;;  %v6979_v38 = vld [vmem:[#allocation41_spill] sm:$0xff]  ;;  %v6984_v11 = vld [vmem:[#allocation46_spill] sm:$0xff] }
 0x2ad   : > { %v1911_v63 = vadd.f32 %v1910_v9, %v1909_v34  ;;  %v2048_v17 = vsel %vm1732_vm11, %v6971_v48, 0.0  ;;  %v2063_v56 = vsel %vm1732_vm11, %v6972_v28, 0.0  ;;  %v1912_v7 = vsel %vm1732_vm11, %v6973_v37, 0.0  ;;  %v6981_v21 = vld [vmem:[#allocation44_spill] sm:$0xff]  ;;  %v6982_v9 = vld [vmem:[#allocation39_spill] sm:$0xff]  ;;  %v6985_v44 = vld [vmem:[#allocation22_spill] sm:$0xff] }
 0x2ae   : > { %v2049_v62 = vadd.f32 %v2048_v17, %v2047_v24  ;;  %v2064_v1 = vadd.f32 %v2063_v56, %v2062_v19  ;;  %v2210_v51 = vsel %vm1732_vm11, %v6974_v31, 0.0  ;;  %v2050_v0 = vsel %vm1732_vm11, %v6975_v58, 0.0  ;;  %v6983_v61 = vld [vmem:[#allocation20_spill] sm:$0xff] }
 0x2af   : > { %v2065_v15 = vsel %vm1732_vm11, %v6976_v14, 0.0  ;;  %v2211_v26 = vadd.f32 %v2210_v51, %v2209_v3  ;;  %v3541_v46 = vperm.slane %v6226_v50, 5  ;;  %v6377_v41 = vmul.f32 0.35355338, %v1747_v12  ;;  %v6988_v37 = vld [vmem:[#allocation56_spill] sm:$0xff] }
 0x2b0   : > { %v1901_v27 = vsel %vm1732_vm11, %v6977_v16, 0.0  ;;  %v2052_v20 = vsel %vm1732_vm11, %v6978_v45, 0.0  ;;  %v2223_v49 = vsel %vm1732_vm11, %v6979_v38, 0.0  ;;  %v1913_v55 = vadd.f32 %v1912_v7, %v1911_v63  ;;  %v6986_v63 = vld [vmem:[#allocation34_spill] sm:$0xff]  ;;  %v6992_v16 = vld [vmem:[#allocation55_spill] sm:$0xff] }
 0x2b1   : > { %v1902_v42 = vadd.f32 %v1901_v27, %v1900_v32  ;;  %v2051_v30 = vadd.f32 %v2050_v0, %v2049_v62  ;;  %v2066_v22 = vadd.f32 %v2065_v15, %v2064_v1  ;;  %v2067_v36 = vsel %vm1732_vm11, %v6980_v40, 0.0  ;;  %v6989_v1 = vld [vmem:[#allocation57_spill] sm:$0xff]  ;;  %v6990_v0 = vld [vmem:[#allocation48_spill] sm:$0xff] }
 0x2b2   : > { %v6385_v35 = vld.sshfl [vmem:[#allocation1] sm:$0xff pattern:$0x75316420]  ;;  %v6387_v52 = vld.sshfl [vmem:[#allocation1 + $0x8] sm:$0xff pattern:$0x75316420] }
 0x2b3   : > { %v2212_v34 = vsel %vm1732_vm11, %v6981_v21, 0.0  ;;  %3526 = vst [vmem:[#allocation1] ss:$2 sm:$0xff] %v6307_v8  ;;  %v2222_v24 = vsel %vm1732_vm11, %v6982_v9, 0.0  ;;  %v3540_v19 = vperm.slane %v6226_v50, 1  ;;  %v3545_v47 = vperm.slane %v3541_v46, 1 }
 0x2b4   : > { %v2213_v6 = vadd.f32 %v2212_v34, %v2211_v26  ;;  %v6397_v18 = vmul.f32 0.35355338, %v1762_v33  ;;  %v1914_v5 = vsel %vm1732_vm11, %v6983_v61, 0.0  ;;  %v2214_v10 = vsel %vm1732_vm11, %v6984_v11, 0.0  ;;  %v6987_v33 = vld [vmem:[#allocation43_spill] sm:$0xff]  ;;  %v6991_v26 = vld [vmem:[#allocation54_spill] sm:$0xff] }
 0x2b5   : > { %v2224_v3 = vadd.f32 %v2223_v49, %v2222_v24  ;;  %v1915_v12 = vadd.f32 %v1914_v5, %v1913_v55  ;;  %v1916_v29 = vsel %vm1732_vm11, %v6985_v44, 0.0  ;;  %v6405_v32 = vmul.f32 0.35355338, %v1902_v42  ;;  %v6993_v55 = vld [vmem:[#allocation36_spill] sm:$0xff]  ;;  %v6998_v5 = vld [vmem:[#allocation58_spill] sm:$0xff]  ;;  %v7001_v44 = vld [vmem:[#allocation47_spill] sm:$0xff] }
 0x2b6   : > { %v2054_v48 = vsel %vm1732_vm11, %v6986_v63, 0.0  ;;  %v2053_v17 = vadd.f32 %v2052_v20, %v2051_v30  ;;  %v2068_v28 = vadd.f32 %v2067_v36, %v2066_v22  ;;  %v2225_v56 = vsel %vm1732_vm11, %v6987_v33, 0.0  ;;  %v6994_v22 = vld [vmem:[#allocation35_spill] sm:$0xff]  ;;  %v7003_v33 = vld [vmem:[#allocation70_spill] sm:$0xff] }
 0x2b7   : > { %v2363_v7 = vsel %vm1732_vm11, %v6988_v37, 0.0  ;;  %v2215_v62 = vadd.f32 %v2214_v10, %v2213_v6  ;;  %v2378_v31 = vsel %vm1732_vm11, %v6989_v1, 0.0  ;;  %v3544_v51 = vperm.slane %v3540_v19, 1  ;;  %v6995_v6 = vld [vmem:[#allocation45_spill] sm:$0xff]  ;;  %v6999_v10 = vld [vmem:[#allocation72_spill] sm:$0xff] }
 0x2b8   : > { %v3548_v58 = vrot.slane %v3545_v47, 4  ;;  %v2216_v14 = vsel %vm1732_vm11, %v6990_v0, 0.0  ;;  %v2226_v15 = vadd.f32 %v2225_v56, %v2224_v3  ;;  %v2362_v46 = vsel %vm1732_vm11, %v6991_v26, 0.0  ;;  %v6997_v19 = vld [vmem:[#allocation37_spill] sm:$0xff]  ;;  %v7005_v0 = vld [vmem:[#allocation52_spill] sm:$0xff] }
 0x2b9   : > { %v2377_v27 = vsel %vm1732_vm11, %v6992_v16, 0.0  ;;  %v1917_v45 = vadd.f32 %v1916_v29, %v1915_v12  ;;  %v2364_v20 = vadd.f32 %v2363_v7, %v2362_v46  ;;  %v2055_v42 = vadd.f32 %v2054_v48, %v2053_v17  ;;  %v7000_v12 = vld [vmem:[#allocation50_spill] sm:$0xff]  ;;  %v7002_v48 = vld [vmem:[#allocation59_spill] sm:$0xff]  ;;  %v7004_v37 = vld [vmem:[#allocation73_spill] sm:$0xff] }
 0x2ba   : > { %v6421_v38 = vld.sshfl [vmem:[#allocation1] sm:$0xff pattern:$0x75316420]  ;;  %v6423_v49 = vld.sshfl [vmem:[#allocation1 + $0x8] sm:$0xff pattern:$0x75316420]  ;;  %v2379_v36 = vadd.f32 %v2378_v31, %v2377_v27  ;;  %v2217_v34 = vadd.f32 %v2216_v14, %v2215_v62  ;;  %v6433_v24 = vsel %vm1656_vm10, %v3544_v51, %v3548_v58 }
 0x2bb   : > { %v2056_v30 = vsel %vm1732_vm11, %v6993_v55, 0.0  ;;  %v2069_v40 = vsel %vm1732_vm11, %v6994_v22, 0.0  ;;  %3533 = vst [vmem:[#allocation1] ss:$2 sm:$0xff] %v6307_v8  ;;  %v2227_v9 = vsel %vm1732_vm11, %v6995_v6, 0.0  ;;  %v2071_v47 = vsel %vm1732_vm11, %v6997_v19, 0.0 }
 0x2bc   : > { %v2070_v21 = vadd.f32 %v2069_v40, %v2068_v28  ;;  %6996 = vst [vmem:[#allocation25_spill] sm:$0xff] %v6433_v24  ;;  %v2228_v61 = vadd.f32 %v2227_v9, %v2226_v15  ;;  %v2365_v11 = vsel %vm1732_vm11, %v6998_v5, 0.0  ;;  %v2518_v3 = vsel %vm1732_vm11, %v6999_v10, 0.0  ;;  %v7006_v15 = vld [vmem:[#allocation60_spill] sm:$0xff]  ;;  %v7007_v46 = vld [vmem:[#allocation61_spill] sm:$0xff]  ;;  %v7008_v27 = vld [vmem:[#allocation71_spill] sm:$0xff] }
 0x2bd   : > { %v2218_v8 = vsel %vm1732_vm11, %v7000_v12, 0.0  ;;  %v2229_v29 = vsel %vm1732_vm11, %v7001_v44, 0.0  ;;  %v2366_v63 = vadd.f32 %v2365_v11, %v2364_v20  ;;  %v2380_v17 = vsel %vm1732_vm11, %v7002_v48, 0.0  ;;  %v7011_v19 = vld [vmem:[#allocation74_spill] sm:$0xff]  ;;  %v7012_v11 = vld [vmem:[#allocation63_spill] sm:$0xff] }
 0x2be   : > { %v2381_v28 = vadd.f32 %v2380_v17, %v2379_v36  ;;  %v2517_v56 = vsel %vm1732_vm11, %v7003_v33, 0.0  ;;  %v2533_v7 = vsel %vm1732_vm11, %v7004_v37, 0.0  ;;  %v6453_v62 = vmul.f32 %v6433_v24, %v6286_v13  ;;  %v7013_v44 = vld [vmem:[#allocation51_spill] sm:$0xff] }
 0x2bf   : > { %v2057_v1 = vadd.f32 %v2056_v30, %v2055_v42  ;;  %v2072_v31 = vadd.f32 %v2071_v47, %v2070_v21  ;;  %v2219_v51 = vadd.f32 %v2218_v8, %v2217_v34  ;;  %v2519_v58 = vadd.f32 %v2518_v3, %v2517_v56  ;;  %v7009_v30 = vld [vmem:[#allocation49_spill] sm:$0xff]  ;;  %v7010_v34 = vld [vmem:[#allocation62_spill] sm:$0xff] }
 0x2c0   : > { %v2220_v14 = vsel %vm1732_vm11, %v7005_v0, 0.0  ;;  %v2367_v26 = vsel %vm1732_vm11, %v7006_v15, 0.0  ;;  %v2382_v16 = vsel %vm1732_vm11, %v7007_v46, 0.0  ;;  %v2532_v20 = vsel %vm1732_vm11, %v7008_v27, 0.0  ;;  %v7019_v15 = vld [vmem:[#allocation64_spill] sm:$0xff]  ;;  %v7020_v46 = vld [vmem:[#allocation65_spill] sm:$0xff] }
 0x2c1   : > { %v2230_v55 = vadd.f32 %v2229_v29, %v2228_v61  ;;  %v2368_v22 = vadd.f32 %v2367_v26, %v2366_v63  ;;  %v2534_v40 = vadd.f32 %v2533_v7, %v2532_v20  ;;  %v2231_v21 = vsel %vm1732_vm11, %v7009_v30, 0.0  ;;  %v7014_v63 = vld [vmem:[#allocation75_spill] sm:$0xff]  ;;  %v7016_v7 = vld [vmem:[#allocation76_spill] sm:$0xff]  ;;  %v7021_v20 = vld [vmem:[#allocation78_spill] sm:$0xff] }
 0x2c2   : > { %v6463_v36 = vld.sshfl [vmem:[#allocation1] sm:$0xff pattern:$0x75316420]  ;;  %v6465_v42 = vld.sshfl [vmem:[#allocation1 + $0x8] sm:$0xff pattern:$0x75316420]  ;;  %v2383_v9 = vadd.f32 %v2382_v16, %v2381_v28  ;;  %v2221_v61 = vadd.f32 %v2220_v14, %v2219_v51 }
 0x2c3   : > { %v2369_v6 = vsel %vm1732_vm11, %v7010_v34, 0.0  ;;  %v2520_v47 = vsel %vm1732_vm11, %v7011_v19, 0.0  ;;  %3553 = vst [vmem:[#allocation1] ss:$2 sm:$0xff] %v6453_v62  ;;  %v6474_v5 = vmul.f32 0.35355338, %v1917_v45  ;;  %v2232_v17 = vadd.f32 %v2231_v21, %v2230_v55 }
 0x2c4   : > { %v2384_v10 = vsel %vm1732_vm11, %v7012_v11, 0.0  ;;  %v2521_v3 = vadd.f32 %v2520_v47, %v2519_v58  ;;  %v6478_v12 = vmul.f32 0.35355338, %v2057_v1  ;;  %v6480_v8 = vmul.f32 0.35355338, %v2072_v31  ;;  %v7015_v28 = vld [vmem:[#allocation53_spill] sm:$0xff] }
 0x2c5   : > { %v2233_v29 = vsel %vm1732_vm11, %v7013_v44, 0.0  ;;  %v2535_v48 = vsel %vm1732_vm11, %v7014_v63, 0.0  ;;  %v2235_v45 = vsel %vm1732_vm11, %v7015_v28, 0.0  ;;  %v2370_v33 = vadd.f32 %v2369_v6, %v2368_v22  ;;  %v7017_v1 = vld [vmem:[#allocation88_spill] sm:$0xff]  ;;  %v7018_v58 = vld [vmem:[#allocation89_spill] sm:$0xff]  ;;  %v7023_v30 = vld [vmem:[#allocation86_spill] sm:$0xff] }
 0x2c6   : > { %v2536_v56 = vadd.f32 %v2535_v48, %v2534_v40  ;;  %v2385_v37 = vadd.f32 %v2384_v10, %v2383_v9  ;;  %v2522_v51 = vsel %vm1732_vm11, %v7016_v7, 0.0  ;;  %v2682_v31 = vsel %vm1732_vm11, %v7017_v1, 0.0  ;;  %v7022_v22 = vld [vmem:[#allocation77_spill] sm:$0xff]  ;;  %v7024_v34 = vld [vmem:[#allocation87_spill] sm:$0xff]  ;;  %v7025_v44 = vld [vmem:[#allocation66_spill] sm:$0xff] }
 0x2c7   : > { %v2697_v0 = vsel %vm1732_vm11, %v7018_v58, 0.0  ;;  %v6494_v14 = vmul.f32 0.35355338, %v2221_v61  ;;  %v2371_v26 = vsel %vm1732_vm11, %v7019_v15, 0.0  ;;  %v2386_v16 = vsel %vm1732_vm11, %v7020_v46, 0.0  ;;  %v7026_v28 = vld [vmem:[#allocation79_spill] sm:$0xff] }
 0x2c8   : > { %v2523_v27 = vadd.f32 %v2522_v51, %v2521_v3  ;;  %v2524_v55 = vsel %vm1732_vm11, %v7021_v20, 0.0  ;;  %v2537_v40 = vsel %vm1732_vm11, %v7022_v22, 0.0  ;;  %v2681_v21 = vsel %vm1732_vm11, %v7023_v30, 0.0  ;;  %v7027_v51 = vld [vmem:[#allocation68_spill] sm:$0xff]  ;;  %v7029_v1 = vld [vmem:[#allocation69_spill] sm:$0xff]  ;;  %v7031_v15 = vld [vmem:[#allocation91_spill] sm:$0xff] }
 0x2c9   : > { %v2696_v6 = vsel %vm1732_vm11, %v7024_v34, 0.0  ;;  %v2234_v9 = vadd.f32 %v2233_v29, %v2232_v17  ;;  %v2538_v19 = vadd.f32 %v2537_v40, %v2536_v56  ;;  %v2683_v47 = vadd.f32 %v2682_v31, %v2681_v21  ;;  %v7028_v17 = vld [vmem:[#allocation67_spill] sm:$0xff]  ;;  %v7034_v22 = vld [vmem:[#allocation80_spill] sm:$0xff] }
 0x2ca   : > { %v2698_v61 = vadd.f32 %v2697_v0, %v2696_v6  ;;  %v6508_v11 = vld.sshfl [vmem:[#allocation1] sm:$0xff pattern:$0x75316420]  ;;  %v6510_v10 = vld.sshfl [vmem:[#allocation1 + $0x8] sm:$0xff pattern:$0x75316420]  ;;  %v2372_v3 = vadd.f32 %v2371_v26, %v2370_v33  ;;  %v2387_v48 = vadd.f32 %v2386_v16, %v2385_v37  ;;  %v2525_v58 = vadd.f32 %v2524_v55, %v2523_v27 }
 0x2cb   : > { %v2373_v63 = vsel %vm1732_vm11, %v7025_v44, 0.0  ;;  %v2539_v7 = vsel %vm1732_vm11, %v7026_v28, 0.0  ;;  %3560 = vst [vmem:[#allocation1] ss:$2 sm:$0xff] %v6453_v62  ;;  %v2375_v29 = vsel %vm1732_vm11, %v7027_v51, 0.0  ;;  %v2388_v56 = vsel %vm1732_vm11, %v7028_v17, 0.0 }
 0x2cc   : > { %v2390_v31 = vsel %vm1732_vm11, %v7029_v1, 0.0  ;;  %v7030_v33 = vld [vmem:[#allocation90_spill] sm:$0xff]  ;;  %v2699_v37 = vsel %vm1732_vm11, %v7031_v15, 0.0  ;;  %v7032_v26 = vld [vmem:[#allocation104_spill] sm:$0xff]  ;;  %v7033_v16 = vld [vmem:[#allocation105_spill] sm:$0xff]  ;;  %v2526_v40 = vsel %vm1732_vm11, %v7034_v22, 0.0  ;;  %v2540_v30 = vadd.f32 %v2539_v7, %v2538_v19 }
 0x2cd   : > { %v2684_v0 = vsel %vm1732_vm11, %v7030_v33, 0.0  ;;  %v2837_v46 = vsel %vm1732_vm11, %v7032_v26, 0.0  ;;  %v2852_v20 = vsel %vm1732_vm11, %v7033_v16, 0.0  ;;  %v2700_v34 = vadd.f32 %v2699_v37, %v2698_v61  ;;  %v7035_v27 = vld [vmem:[#allocation81_spill] sm:$0xff]  ;;  %v7036_v44 = vld [vmem:[#allocation102_spill] sm:$0xff]  ;;  %v7037_v51 = vld [vmem:[#allocation103_spill] sm:$0xff] }
 0x2ce   : > { %v2685_v21 = vadd.f32 %v2684_v0, %v2683_v47  ;;  %v2374_v6 = vadd.f32 %v2373_v63, %v2372_v3  ;;  %v2541_v55 = vsel %vm1732_vm11, %v7035_v27, 0.0  ;;  %v2836_v28 = vsel %vm1732_vm11, %v7036_v44, 0.0  ;;  %v7038_v22 = vld [vmem:[#allocation82_spill] sm:$0xff]  ;;  %v7039_v47 = vld [vmem:[#allocation92_spill] sm:$0xff]  ;;  %v7040_v3 = vld [vmem:[#allocation93_spill] sm:$0xff] }
 0x2cf   : > { %v2851_v17 = vsel %vm1732_vm11, %v7037_v51, 0.0  ;;  %v2389_v1 = vadd.f32 %v2388_v56, %v2387_v48  ;;  %v2838_v33 = vadd.f32 %v2837_v46, %v2836_v28  ;;  %v3582_v26 = vperm.slane %v6226_v50, 6  ;;  %v7041_v56 = vld [vmem:[#allocation94_spill] sm:$0xff]  ;;  %v7042_v46 = vld [vmem:[#allocation95_spill] sm:$0xff] }
 0x2d0   : > { %v2853_v15 = vadd.f32 %v2852_v20, %v2851_v17  ;;  %v2527_v16 = vadd.f32 %v2526_v40, %v2525_v58  ;;  %v2528_v19 = vsel %vm1732_vm11, %v7038_v22, 0.0  ;;  %v2686_v61 = vsel %vm1732_vm11, %v7039_v47, 0.0  ;;  %v7043_v40 = vld [vmem:[#allocation106_spill] sm:$0xff]  ;;  %v7044_v51 = vld [vmem:[#allocation107_spill] sm:$0xff] }
 0x2d1   : > { %v2701_v63 = vsel %vm1732_vm11, %v7040_v3, 0.0  ;;  %v2236_v7 = vadd.f32 %v2235_v45, %v2234_v9  ;;  %v2542_v0 = vadd.f32 %v2541_v55, %v2540_v30  ;;  %v2687_v37 = vadd.f32 %v2686_v61, %v2685_v21  ;;  %v7045_v47 = vld [vmem:[#allocation83_spill] sm:$0xff]  ;;  %v7046_v3 = vld [vmem:[#allocation84_spill] sm:$0xff] }
 0x2d2   : > { %v2702_v27 = vadd.f32 %v2701_v63, %v2700_v34  ;;  %v6546_v44 = vld.sshfl [vmem:[#allocation1] sm:$0xff pattern:$0x75316420]  ;;  %v6548_v48 = vld.sshfl [vmem:[#allocation1 + $0x8] sm:$0xff pattern:$0x75316420]  ;;  %v2376_v34 = vadd.f32 %v2375_v29, %v2374_v6  ;;  %v2391_v55 = vadd.f32 %v2390_v31, %v2389_v1  ;;  %v2529_v22 = vadd.f32 %v2528_v19, %v2527_v16 }
 0x2d3   : > { %v2688_v58 = vsel %vm1732_vm11, %v7041_v56, 0.0  ;;  %v2703_v20 = vsel %vm1732_vm11, %v7042_v46, 0.0  ;;  %v2839_v28 = vsel %vm1732_vm11, %v7043_v40, 0.0  ;;  %v2854_v17 = vsel %vm1732_vm11, %v7044_v51, 0.0  ;;  %3567 = vst [vmem:[#allocation1] ss:$2 sm:$0xff] %v6453_v62 }
 0x2d4   : > { %v2840_v45 = vadd.f32 %v2839_v28, %v2838_v33  ;;  %v2855_v9 = vadd.f32 %v2854_v17, %v2853_v15  ;;  %v3581_v30 = vperm.slane %v6226_v50, 2  ;;  %v3586_v21 = vperm.slane %v3582_v26, 2  ;;  %v7047_v51 = vld [vmem:[#allocation96_spill] sm:$0xff]  ;;  %v7048_v33 = vld [vmem:[#allocation97_spill] sm:$0xff] }
 0x2d5   : > { %v2543_v61 = vsel %vm1732_vm11, %v7045_v47, 0.0  ;;  %v2530_v63 = vsel %vm1732_vm11, %v7046_v3, 0.0  ;;  %v2689_v46 = vadd.f32 %v2688_v58, %v2687_v37  ;;  %v2704_v40 = vadd.f32 %v2703_v20, %v2702_v27  ;;  %v7049_v50 = vld [vmem:[#allocation108_spill] sm:$0xff]  ;;  %v7050_v31 = vld [vmem:[#allocation109_spill] sm:$0xff]  ;;  %v7052_v27 = vld [vmem:[#allocation110_spill] sm:$0xff] }
 0x2d6   : > { %v2544_v56 = vadd.f32 %v2543_v61, %v2542_v0  ;;  %v2690_v24 = vsel %vm1732_vm11, %v7047_v51, 0.0  ;;  %v2705_v15 = vsel %vm1732_vm11, %v7048_v33, 0.0  ;;  %v2841_v29 = vsel %vm1732_vm11, %v7049_v50, 0.0  ;;  %v7051_v0 = vld [vmem:[#allocation85_spill] sm:$0xff]  ;;  %v7053_v20 = vld [vmem:[#allocation111_spill] sm:$0xff]  ;;  %v7055_v50 = vld [vmem:[#allocation112_spill] sm:$0xff] }
 0x2d7   : > { %v2856_v6 = vsel %vm1732_vm11, %v7050_v31, 0.0  ;;  %v2842_v1 = vadd.f32 %v2841_v29, %v2840_v45  ;;  %v3585_v16 = vperm.slane %v3581_v30, 2  ;;  %v3589_v19 = vrot.slane %v3586_v21, 4  ;;  %v7058_v31 = vld [vmem:[#allocation99_spill] sm:$0xff] }
 0x2d8   : > { %v2857_v26 = vadd.f32 %v2856_v6, %v2855_v9  ;;  %v2531_v28 = vadd.f32 %v2530_v63, %v2529_v22  ;;  %v2545_v37 = vsel %vm1732_vm11, %v7051_v0, 0.0  ;;  %v2843_v58 = vsel %vm1732_vm11, %v7052_v27, 0.0 }
 0x2d9   : > { %v2858_v17 = vsel %vm1732_vm11, %v7053_v20, 0.0  ;;  %v2546_v47 = vadd.f32 %v2545_v37, %v2544_v56  ;;  %v2691_v61 = vadd.f32 %v2690_v24, %v2689_v46  ;;  %v6582_v45 = vmul.f32 0.35355338, %v2236_v7  ;;  %v7054_v24 = vld [vmem:[#allocation98_spill] sm:$0xff] }
 0x2da   : > { %v6578_v3 = vld.sshfl [vmem:[#allocation1] sm:$0xff pattern:$0x75316420]  ;;  %v6580_v51 = vld.sshfl [vmem:[#allocation1 + $0x8] sm:$0xff pattern:$0x75316420]  ;;  %v2706_v30 = vadd.f32 %v2705_v15, %v2704_v40  ;;  %v2844_v22 = vadd.f32 %v2843_v58, %v2842_v1  ;;  %v2859_v63 = vadd.f32 %v2858_v17, %v2857_v26  ;;  %v6590_v33 = vsel %vm1656_vm10, %v3585_v16, %v3589_v19 }
 0x2db   : > { %v6584_v9 = vmul.f32 0.35355338, %v2376_v34  ;;  %3574 = vst [vmem:[#allocation1] ss:$2 sm:$0xff] %v6453_v62  ;;  %v6587_v21 = vmul.f32 0.35355338, %v2391_v55  ;;  %v6612_v0 = vmul.f32 %v6590_v33, %v6286_v13 }
 0x2dc   : > { %v6592_v56 = vmul.f32 0.35355338, %v2531_v28  ;;  %v2692_v46 = vsel %vm1732_vm11, %v7054_v24, 0.0  ;;  %v2845_v7 = vsel %vm1732_vm11, %v7055_v50, 0.0  ;;  %v7056_v34 = vld [vmem:[#allocation113_spill] sm:$0xff]  ;;  %v7057_v55 = vld [vmem:[#allocation100_spill] sm:$0xff] }
 0x2dd   : > { %v2860_v40 = vsel %vm1732_vm11, %v7056_v34, 0.0  ;;  %v6600_v15 = vmul.f32 0.35355338, %v2546_v47  ;;  %v2693_v62 = vadd.f32 %v2692_v46, %v2691_v61  ;;  %v2694_v29 = vsel %vm1732_vm11, %v7057_v55, 0.0  ;;  %v7059_v26 = vld [vmem:[#allocation101_spill] sm:$0xff]  ;;  %v7060_v19 = vld [vmem:[#allocation114_spill] sm:$0xff] }
 0x2de   : > { %v2707_v6 = vsel %vm1732_vm11, %v7058_v31, 0.0  ;;  %v2709_v16 = vsel %vm1732_vm11, %v7059_v26, 0.0  ;;  %v2847_v28 = vsel %vm1732_vm11, %v7060_v19, 0.0  ;;  %v2846_v37 = vadd.f32 %v2845_v7, %v2844_v22  ;;  %v7061_v58 = vld [vmem:[#allocation115_spill] sm:$0xff]  ;;  %v7062_v34 = vld [vmem:[#allocation116_spill] sm:$0xff] }
 0x2df   : > { %v2708_v1 = vadd.f32 %v2707_v6, %v2706_v30  ;;  %v2861_v27 = vadd.f32 %v2860_v40, %v2859_v63  ;;  %v2862_v20 = vsel %vm1732_vm11, %v7061_v58, 0.0  ;;  %v3185_v17 = vmul.f32 0.35355338, %v6169_v4  ;;  %v7063_v40 = vld [vmem:[#allocation117_spill] sm:$0xff] }
 0x2e0   : > { %v3186_v47 = vmul.f32 0.35355338, %v6173_v53  ;;  %v3340_v61 = vmul.f32 0.35355338, %v6269_v57  ;;  %v3341_v30 = vmul.f32 0.35355338, %v6271_v60  ;;  %v2695_v4 = vadd.f32 %v2694_v29, %v2693_v62 }
 0x2e1   : > { %v6621_v50 = vadd.f32 %v6463_v36, %v3185_v17  ;;  %v2710_v53 = vadd.f32 %v2709_v16, %v2708_v1  ;;  %v2848_v7 = vadd.f32 %v2847_v28, %v2846_v37  ;;  %v2863_v57 = vadd.f32 %v2862_v20, %v2861_v27  ;;  %v3441_v31 = vld.sshfl [vmem:[#allocation1 + $0x10] sm:$0xff pattern:$0x75316420]  ;;  %v3442_v6 = vld.sshfl [vmem:[#allocation1 + $0x18] sm:$0xff pattern:$0x75316420] }
 0x2e2   : > { %v3575_v24 = vld.sshfl [vmem:[#allocation1] sm:$0xff pattern:$0x75316420]  ;;  %v3576_v46 = vld.sshfl [vmem:[#allocation1 + $0x8] sm:$0xff pattern:$0x75316420]  ;;  %v6624_v13 = vadd.f32 %v6465_v42, %v3186_v47  ;;  %v3558_v1 = vadd.f32 %v6508_v11, %v6405_v32  ;;  %v3559_v26 = vadd.f32 %v6510_v10, %v6474_v5  ;;  %v3518_v32 = vadd.f32 %v6351_v2, %v6397_v18 }
 0x2e3   : > { %v6626_v22 = vadd.f32 %v3575_v24, %v3340_v61  ;;  %v6628_v63 = vadd.f32 %v3576_v46, %v3341_v30  ;;  %3594 = vst [vmem:[#allocation1] ss:$2 sm:$0xff] %v6612_v0  ;;  %v2849_v60 = vsel %vm1732_vm11, %v7062_v34, 0.0  ;;  %v2864_v36 = vsel %vm1732_vm11, %v7063_v40, 0.0  ;;  %v7065_v2 = vld [vmem:[#allocation119_spill] sm:$0xff] }
 0x2e4   : > { %v3472_v62 = vsel %vm1732_vm11, %v6301_v23, 0.0  ;;  %v3487_v29 = vsel %vm1732_vm11, %v6303_v59, 0.0  ;;  %v6647_v16 = vmul.f32 0.35355338, %v2695_v4  ;;  %v6649_v19 = vmul.f32 0.35355338, %v2710_v53 }
 0x2e5   : > { %v3628_v42 = vmax.f32 %v6621_v50, %v6626_v22  ;;  %v3629_v55 = vmax.f32 %v6624_v13, %v6628_v63  ;;  %v2850_v28 = vadd.f32 %v2849_v60, %v2848_v7  ;;  %v2865_v37 = vadd.f32 %v2864_v36, %v2863_v57  ;;  %v3444_v27 = vld.sshfl [vmem:[#allocation1 + $0x20] sm:$0xff pattern:$0x75316420]  ;;  %v3445_v17 = vld.sshfl [vmem:[#allocation1 + $0x28] sm:$0xff pattern:$0x75316420] }
 0x2e6   : > { %v3474_v58 = vsel %vm1732_vm11, %v3441_v31, 0.0  ;;  %v3489_v23 = vsel %vm1732_vm11, %v3442_v6, 0.0  ;;  %v3517_v59 = vadd.f32 %v6349_v54, %v6377_v41  ;;  %v3473_v11 = vadd.f32 %v3472_v62, %v6317_v43  ;;  %v7064_v41 = vld [vmem:[#allocation118_spill] sm:$0xff]  ;;  %v3447_v31 = vld.sshfl [vmem:[#allocation1 + $0x30] sm:$0xff pattern:$0x75316420] }
 0x2e7   : > { %v3488_v5 = vadd.f32 %v3487_v29, %v6319_v39  ;;  %v3623_v24 = vmax.f32 %v3518_v32, %v3559_v26  ;;  %v2866_v46 = vmul.f32 0.35355338, %v2850_v28  ;;  %v2867_v54 = vmul.f32 0.35355338, %v2865_v37 }
 0x2e8   : > { %v3622_v30 = vmax.f32 %v3517_v59, %v3558_v1  ;;  %v6663_v4 = vmul.f32 0.35355338, %v7064_v41  ;;  %v6666_v43 = vmul.f32 0.35355338, %v7065_v2  ;;  %v3476_v39 = vsel %vm1732_vm11, %v3444_v27, 0.0 }
 0x2e9   : > { %v3475_v7 = vadd.f32 %v3474_v58, %v3473_v11  ;;  %v3565_v57 = vadd.f32 %v6546_v44, %v6584_v9  ;;  %v3566_v34 = vadd.f32 %v6548_v48, %v6587_v21  ;;  %v3448_v6 = vld.sshfl [vmem:[#allocation1 + $0x38] sm:$0xff pattern:$0x75316420]  ;;  %v3524_v62 = vadd.f32 %v6385_v35, %v6494_v14 }
 0x2ea   : > { %v3595_v10 = vld.sshfl [vmem:[#allocation1] sm:$0xff pattern:$0x75316420]  ;;  %v3596_v20 = vld.sshfl [vmem:[#allocation1 + $0x8] sm:$0xff pattern:$0x75316420]  ;;  %v3525_v29 = vadd.f32 %v6387_v52, %v6582_v45  ;;  %v3532_v41 = vadd.f32 %v6423_v49, %v6649_v19 }
 0x2eb   : > { %v3599_v47 = vadd.f32 %v3595_v10, %v6478_v12  ;;  %v3600_v61 = vadd.f32 %v3596_v20, %v6480_v8  ;;  %3601 = vst [vmem:[#allocation1] ss:$2 sm:$0xff] %v6612_v0  ;;  %v3490_v12 = vadd.f32 %v3489_v23, %v3488_v5  ;;  %v3491_v8 = vsel %vm1732_vm11, %v3445_v17, 0.0 }
 0x2ec   : > { %v3477_v44 = vadd.f32 %v3476_v39, %v3475_v7  ;;  %v3624_v35 = vmax.f32 %v3524_v62, %v3565_v57  ;;  %v3625_v14 = vmax.f32 %v3525_v29, %v3566_v34  ;;  %v3478_v52 = vsel %vm1732_vm11, %v3447_v31, 0.0 }
 0x2ed   : > { %v3630_v18 = vmax.f32 %v3622_v30, %v3599_v47  ;;  %v3631_v53 = vmax.f32 %v3623_v24, %v3600_v61  ;;  %v3492_v9 = vadd.f32 %v3491_v8, %v3490_v12  ;;  %v3493_v45 = vsel %vm1732_vm11, %v3448_v6, 0.0 }
 0x2ee   : > { %v3572_v20 = vadd.f32 %v6578_v3, %v2866_v46  ;;  %v3531_v24 = vadd.f32 %v6421_v38, %v6647_v16 }
 0x2ef   : > { %v3638_v60 = vsub.f32 %v3517_v59, %v3630_v18  ;;  %v3639_v40 = vsub.f32 %v3518_v32, %v3631_v53  ;;  %v3662_v36 = vsub.f32 %v3558_v1, %v3630_v18  ;;  %v3663_v28 = vsub.f32 %v3559_v26, %v3631_v53 }
 0x2f0   : > { %v3686_v23 = vsub.f32 %v3599_v47, %v3630_v18  ;;  %v3687_v21 = vsub.f32 %v3600_v61, %v3631_v53  ;;  %v3626_v53 = vmax.f32 %v3531_v24, %v3572_v20 }
 0x2f1   : > { %v3640_v37 = vmul.f32 1.442695, %v3638_v60  ;;  %v3642_v27 = vmul.f32 1.442695, %v3639_v40  ;;  %v3664_v58 = vmul.f32 1.442695, %v3662_v36 }
 0x2f2   : > { %v3602_v11 = vld.sshfl [vmem:[#allocation1] sm:$0xff pattern:$0x75316420]  ;;  %v3603_v48 = vld.sshfl [vmem:[#allocation1 + $0x8] sm:$0xff pattern:$0x75316420] }
 0x2f3   : > { %v3606_v1 = vadd.f32 %v3602_v11, %v6592_v56  ;;  %v3607_v59 = vadd.f32 %v3603_v48, %v6600_v15  ;;  %3608 = vst [vmem:[#allocation1] ss:$2 sm:$0xff] %v6612_v0  ;;  %4277 = vpow2.f32 %v3640_v37  ;;  %v3666_v26 = vmul.f32 1.442695, %v3663_v28 }
 0x2f4   : > { %4279 = vpow2.f32 %v3642_v27  ;;  %v3688_v10 = vmul.f32 1.442695, %v3686_v23  ;;  %v6685_v56 = vadd.f32 %v6580_v51, %v2867_v54  ;;  %v3690_v15 = vmul.f32 1.442695, %v3687_v21 }
 0x2f5   : > { %v3632_v32 = vmax.f32 %v3624_v35, %v3606_v1  ;;  %v3633_v5 = vmax.f32 %v3625_v14, %v3607_v59  ;;  %4281 = vpow2.f32 %v3664_v58 }
 0x2f6   : > { %4283 = vpow2.f32 %v3666_v26  ;;  %v3627_v7 = vmax.f32 %v3532_v41, %v6685_v56 }
 0x2f7   : > { %v3644_v17 = vsub.f32 %v3524_v62, %v3632_v32  ;;  %v3645_v47 = vsub.f32 %v3525_v29, %v3633_v5  ;;  %v3668_v61 = vsub.f32 %v3565_v57, %v3632_v32  ;;  %v3669_v30 = vsub.f32 %v3566_v34, %v3633_v5 }
 0x2f8   : > { %v3692_v2 = vsub.f32 %v3606_v1, %v3632_v32  ;;  %4285 = vpow2.f32 %v3688_v10  ;;  %v3693_v12 = vsub.f32 %v3607_v59, %v3633_v5  ;;  %v3479_v57 = vadd.f32 %v3478_v52, %v3477_v44 }
 0x2f9   : > { %v3646_v39 = vmul.f32 1.442695, %v3644_v17  ;;  %v3648_v18 = vmul.f32 1.442695, %v3645_v47  ;;  %v3670_v3 = vmul.f32 1.442695, %v3668_v61  ;;  %v6691_v51 = vpop.eup %4277  ;;  %4287 = vpow2.f32 %v3690_v15 }
 0x2fa   : > { %v3609_v46 = vld.sshfl [vmem:[#allocation1] sm:$0xff pattern:$0x75316420]  ;;  %v3610_v54 = vld.sshfl [vmem:[#allocation1 + $0x8] sm:$0xff pattern:$0x75316420]  ;;  %v6694_v8 = vpop.eup %4279  ;;  %v3494_v34 = vadd.f32 %v3493_v45, %v3492_v9 }
 0x2fb   : > { %v3613_v38 = vadd.f32 %v3609_v46, %v6663_v4  ;;  %v3614_v49 = vadd.f32 %v3610_v54, %v6666_v43  ;;  %3615 = vst [vmem:[#allocation1] ss:$2 sm:$0xff] %v6612_v0  ;;  %4289 = vpow2.f32 %v3646_v39  ;;  %v3672_v16 = vmul.f32 1.442695, %v3669_v30  ;;  %v6699_v19 = vpop.eup %4281 }
 0x2fc   : > { %4291 = vpow2.f32 %v3648_v18  ;;  %v3694_v60 = vmul.f32 1.442695, %v3692_v2  ;;  %v6701_v31 = vpop.eup %4283  ;;  %v3696_v6 = vmul.f32 1.442695, %v3693_v12  ;;  %v3495_v37 = vmul.f32 0.35355338, %v3479_v57 }
 0x2fd   : > { %v3634_v40 = vmax.f32 %v3626_v53, %v3613_v38  ;;  %v3635_v36 = vmax.f32 %v3627_v7, %v3614_v49  ;;  %4293 = vpow2.f32 %v3670_v3  ;;  %v3496_v27 = vmul.f32 0.35355338, %v3494_v34 }
 0x2fe   : > { %4295 = vpow2.f32 %v3672_v16  ;;  %v6703_v4 = vpop.eup %4285  ;;  %v3710_v58 = vadd.f32 %v6699_v19, %v6691_v51 }
 0x2ff   : > { %v3650_v43 = vsub.f32 %v3531_v24, %v3634_v40  ;;  %v3651_v62 = vsub.f32 %v3532_v41, %v3635_v36  ;;  %v3674_v0 = vsub.f32 %v3572_v20, %v3634_v40  ;;  %v3675_v29 = vsub.f32 %v6685_v56, %v3635_v36  ;;  %v6706_v28 = vpop.eup %4287 }
 0x300   : > { %4297 = vpow2.f32 %v3694_v60  ;;  %v3698_v48 = vsub.f32 %v3613_v38, %v3634_v40  ;;  %v3699_v35 = vsub.f32 %v3614_v49, %v3635_v36  ;;  %v3718_v5 = vadd.f32 %v6703_v4, %v3710_v58 }
 0x301   : > { %v6710_v23 = vpop.eup %4289  ;;  %v3652_v44 = vmul.f32 1.442695, %v3650_v43  ;;  %v3654_v9 = vmul.f32 1.442695, %v3651_v62  ;;  %v3676_v11 = vmul.f32 1.442695, %v3674_v0  ;;  %4299 = vpow2.f32 %v3696_v6 }
 0x302   : > { %v6712_v21 = vpop.eup %4291  ;;  %v3616_v1 = vld.sshfl [vmem:[#allocation1] sm:$0xff pattern:$0x75316420]  ;;  %v3617_v59 = vld.sshfl [vmem:[#allocation1 + $0x8] sm:$0xff pattern:$0x75316420] }
 0x303   : > { %v6714_v14 = vpop.eup %4293  ;;  %v3620_v52 = vadd.f32 %v3616_v1, %v3495_v37  ;;  %v3621_v45 = vadd.f32 %v3617_v59, %v3496_v27  ;;  %4301 = vpow2.f32 %v3652_v44  ;;  %v3678_v26 = vmul.f32 1.442695, %v3675_v29 }
 0x304   : > { %v6716_v32 = vpop.eup %4295  ;;  %4303 = vpow2.f32 %v3654_v9  ;;  %v3700_v56 = vmul.f32 1.442695, %v3698_v48  ;;  %v3702_v17 = vmul.f32 1.442695, %v3699_v35 }
 0x305   : > { %v3636_v10 = vmax.f32 %v3628_v42, %v3620_v52  ;;  %v3637_v20 = vmax.f32 %v3629_v55, %v3621_v45  ;;  %4305 = vpow2.f32 %v3676_v11  ;;  %v3711_v55 = vadd.f32 %v6701_v31, %v6694_v8 }
 0x306   : > { %v6725_v15 = vpop.eup %4297  ;;  %4307 = vpow2.f32 %v3678_v26  ;;  %v3713_v53 = vadd.f32 %v6716_v32, %v6712_v21 }
 0x307   : > { %v3656_v47 = vsub.f32 %v6621_v50, %v3636_v10  ;;  %v3657_v61 = vsub.f32 %v6624_v13, %v3637_v20  ;;  %v3680_v30 = vsub.f32 %v6626_v22, %v3636_v10  ;;  %v3681_v24 = vsub.f32 %v6628_v63, %v3637_v20  ;;  %v6731_v41 = vpop.eup %4299 }
 0x308   : > { %v3704_v42 = vsub.f32 %v3620_v52, %v3636_v10  ;;  %v3705_v2 = vsub.f32 %v3621_v45, %v3637_v20  ;;  %4309 = vrcp.f32 %v3718_v5  ;;  %v3712_v22 = vadd.f32 %v6714_v14, %v6710_v23 }
 0x309   : > { %v6735_v39 = vpop.eup %4301  ;;  %v3658_v18 = vmul.f32 1.442695, %v3656_v47  ;;  %v3660_v3 = vmul.f32 1.442695, %v3657_v61  ;;  %v3682_v46 = vmul.f32 1.442695, %v3680_v30  ;;  %4311 = vpow2.f32 %v3700_v56 }
 0x30a   : > { %v4304_v50 = vpop.eup %4303  ;;  %v3684_v13 = vmul.f32 1.442695, %v3681_v24  ;;  %4313 = vpow2.f32 %v3702_v17  ;;  %v3706_v54 = vmul.f32 1.442695, %v3704_v42  ;;  %v3708_v12 = vmul.f32 1.442695, %v3705_v2 }
 0x30b   : > { %v4306_v63 = vpop.eup %4305  ;;  %4315 = vpow2.f32 %v3658_v18  ;;  %v3719_v16 = vadd.f32 %v6706_v28, %v3711_v55  ;;  %v3720_v34 = vadd.f32 %v6725_v15, %v3712_v22  ;;  %v3721_v40 = vadd.f32 %v6731_v41, %v3713_v53 }
 0x30c   : > { %v4308_v7 = vpop.eup %4307  ;;  %4317 = vpow2.f32 %v3660_v3  ;;  %v3714_v38 = vadd.f32 %v4306_v63, %v6735_v39 }
 0x30d   : > { %4319 = vpow2.f32 %v3682_v46  ;;  %v3715_v49 = vadd.f32 %v4308_v7, %v4304_v50 }
 0x30e   : > { %v4310_v57 = vpop.eup %4309  ;;  %4321 = vpow2.f32 %v3684_v13 }
 0x30f   : > { %v4312_v60 = vpop.eup %4311  ;;  %4323 = vpow2.f32 %v3706_v54  ;;  %v3734_v35 = vmul.f32 %v4310_v57, %v6691_v51  ;;  %v3777_v45 = vmul.f32 %v4310_v57, %v6699_v19 }
 0x310   : > { %v4314_v36 = vpop.eup %4313  ;;  %4325 = vpow2.f32 %v3708_v12  ;;  %v3722_v6 = vadd.f32 %v4312_v60, %v3714_v38 }
 0x311   : > { %v4316_v43 = vpop.eup %4315  ;;  %v3723_v62 = vadd.f32 %v4314_v36, %v3715_v49  ;;  %4327 = vrcp.f32 %v3719_v16 }
 0x312   : > { %v4318_v0 = vpop.eup %4317  ;;  %4329 = vrcp.f32 %v3720_v34 }
 0x313   : > { %v4320_v29 = vpop.eup %4319  ;;  %4331 = vrcp.f32 %v3721_v40 }
 0x314   : > { %v4322_v37 = vpop.eup %4321  ;;  %v3716_v27 = vadd.f32 %v4320_v29, %v4316_v43  ;;  %4333 = vrcp.f32 %v3722_v6 }
 0x315   : > { %v4324_v58 = vpop.eup %4323  ;;  %v3717_v44 = vadd.f32 %v4322_v37, %v4318_v0  ;;  %4335 = vrcp.f32 %v3723_v62  ;;  %v4345_v62 = vld [vmem:[%s6211_s10] sm:$0x77] }
 0x316   : > { %v4326_v9 = vpop.eup %4325  ;;  %v3724_v11 = vadd.f32 %v4324_v58, %v3716_v27 }
 0x317   : > { %v4328_v48 = vpop.eup %4327  ;;  %v3725_v1 = vadd.f32 %v4326_v9, %v3717_v44 }
 0x318   : > { %v4330_v59 = vpop.eup %4329  ;;  %4337 = vrcp.f32 %v3724_v11  ;;  %v3735_v52 = vmul.f32 %v4328_v48, %v6694_v8  ;;  %v3778_v10 = vmul.f32 %v4328_v48, %v6701_v31  ;;  %v3820_v31 = vmul.f32 %v4310_v57, %v6703_v4 }
 0x319   : > { %v4332_v26 = vpop.eup %4331  ;;  %4339 = vrcp.f32 %v3725_v1  ;;  %v3736_v5 = vmul.f32 %v4330_v59, %v6710_v23  ;;  %v3779_v20 = vmul.f32 %v4330_v59, %v6714_v14  ;;  %v3822_v61 = vmul.f32 %v4330_v59, %v6725_v15 }
 0x31a   : > { %v4334_v56 = vpop.eup %4333  ;;  %v3737_v17 = vmul.f32 %v4332_v26, %v6712_v21  ;;  %v3780_v47 = vmul.f32 %v4332_v26, %v6716_v32  ;;  %v3823_v51 = vmul.f32 %v4332_v26, %v6731_v41  ;;  %v3821_v14 = vmul.f32 %v4328_v48, %v6706_v28 }
 0x31b   : > { %v4336_v8 = vpop.eup %4335  ;;  %v3738_v30 = vadd.f32 %v3736_v5, %v3734_v35  ;;  %v3740_v19 = vmul.f32 %v4334_v56, %v6735_v39  ;;  %v3781_v24 = vadd.f32 %v3779_v20, %v3777_v45  ;;  %v3783_v42 = vmul.f32 %v4334_v56, %v4306_v63  ;;  %v7066_v35 = vld [vmem:[#allocation25_spill] sm:$0xff] }
 0x31c   : > { %v3741_v23 = vmul.f32 %v4336_v8, %v4304_v50  ;;  %v3784_v2 = vmul.f32 %v4336_v8, %v4308_v7  ;;  %v3739_v55 = vadd.f32 %v3737_v17, %v3735_v52  ;;  %v3782_v18 = vadd.f32 %v3780_v47, %v3778_v10 }
 0x31d   : > { %v3742_v21 = vadd.f32 %v3740_v19, %v3738_v30  ;;  %v3785_v32 = vadd.f32 %v3783_v42, %v3781_v24  ;;  %v3824_v15 = vadd.f32 %v3822_v61, %v3820_v31  ;;  %v3825_v46 = vadd.f32 %v3823_v51, %v3821_v14 }
 0x31e   : > { %v4338_v3 = vpop.eup %4337  ;;  %v3826_v41 = vmul.f32 %v4334_v56, %v4312_v60  ;;  %v3827_v13 = vmul.f32 %v4336_v8, %v4314_v36  ;;  %v3743_v54 = vadd.f32 %v3741_v23, %v3739_v55  ;;  %v3786_v7 = vadd.f32 %v3784_v2, %v3782_v18 }
 0x31f   : > { %v4340_v22 = vpop.eup %4339  ;;  %v3744_v39 = vmul.f32 %v4338_v3, %v4316_v43  ;;  %v3787_v53 = vmul.f32 %v4338_v3, %v4320_v29  ;;  %v3830_v50 = vmul.f32 %v4338_v3, %v4324_v58  ;;  %v3750_v43 = vmul.f32 %v4345_v62, %v6293_v25 }
 0x320   : > { %v3745_v63 = vmul.f32 %v4340_v22, %v4318_v0  ;;  %v3788_v4 = vmul.f32 %v4340_v22, %v4322_v37  ;;  %v3828_v12 = vadd.f32 %v3826_v41, %v3824_v15  ;;  %v3829_v49 = vadd.f32 %v3827_v13, %v3825_v46 }
 0x321   : > { %v3746_v28 = vadd.f32 %v3744_v39, %v3742_v21  ;;  %v3789_v38 = vadd.f32 %v3787_v53, %v3785_v32  ;;  %v3831_v16 = vmul.f32 %v4340_v22, %v4326_v9  ;;  %v3793_v52 = vmul.f32 %v4345_v62, %v7066_v35 }
 0x322   : > { %v3747_v57 = vadd.f32 %v3745_v63, %v3743_v54  ;;  %v3790_v34 = vadd.f32 %v3788_v4, %v3786_v7  ;;  %v3832_v40 = vadd.f32 %v3830_v50, %v3828_v12  ;;  %v3836_v5 = vmul.f32 %v4345_v62, %v6590_v33 }
 0x323   : > { %v3833_v6 = vadd.f32 %v3831_v16, %v3829_v49  ;;  %v3748_v27 = vmul.f32 0.25, %v3746_v28  ;;  %v3791_v0 = vmul.f32 0.25, %v3789_v38 }
 0x324   : > { %v3749_v60 = vmul.f32 0.25, %v3747_v57  ;;  %v3792_v36 = vmul.f32 0.25, %v3790_v34  ;;  %v3834_v37 = vmul.f32 0.25, %v3832_v40 }
 0x325   : > { %v3835_v29 = vmul.f32 0.25, %v3833_v6 }
 0x326   : > { %v3753_v58 = vrot.slane %v3749_v60, 4  ;;  %v3796_v44 = vrot.slane %v3792_v36, 4 }
 0x327   : > { %v3839_v11 = vrot.slane %v3835_v29, 4 }
 0x328   : > { %v3754_v48 = vsel %vm1656_vm10, %v3748_v27, %v3753_v58  ;;  %v3797_v9 = vsel %vm1656_vm10, %v3791_v0, %v3796_v44 }
 0x329   : > { %v3756_v1 = vmul.f32 %v3754_v48, %v3750_v43  ;;  %v3840_v59 = vsel %vm1656_vm10, %v3834_v37, %v3839_v11  ;;  %v3799_v45 = vmul.f32 %v3797_v9, %v3793_v52 }
 0x32a   : > { %v3842_v47 = vmul.f32 %v3840_v59, %v3836_v5 }
 0x32b   : > { %3758 = vst [vmem:[#allocation1] ss:$2 sm:$0xff] %v3756_v1 }
 0x332   : > { %v3759_v26 = vld.sshfl [vmem:[#allocation1] sm:$0xff pattern:$0x75316420]  ;;  %v3760_v25 = vld.sshfl [vmem:[#allocation1 + $0x8] sm:$0xff pattern:$0x75316420] }
 0x333   : > { %3801 = vst [vmem:[#allocation1] ss:$2 sm:$0xff] %v3799_v45  ;;  %v3763_v10 = vsel %vm1732_vm11, %v3759_v26, 0.0  ;;  %v3770_v20 = vsel %vm1732_vm11, %v3760_v25, 0.0 }
 0x334   : > { %v3764_v56 = vrot.slane %v3763_v10, 4  ;;  %v3771_v17 = vrot.slane %v3770_v20, 4 }
 0x336   : > { %v3765_v19 = vadd.f32 %v3764_v56, %v3763_v10  ;;  %v3772_v24 = vadd.f32 %v3771_v17, %v3770_v20 }
 0x338   : > { %v3766_v31 = vrot.slane %v3765_v19, 2  ;;  %v3773_v14 = vrot.slane %v3772_v24, 2 }
 0x33a   : > { %v3802_v61 = vld.sshfl [vmem:[#allocation1] sm:$0xff pattern:$0x75316420]  ;;  %v3803_v51 = vld.sshfl [vmem:[#allocation1 + $0x8] sm:$0xff pattern:$0x75316420]  ;;  %v3767_v13 = vadd.f32 %v3766_v31, %v3765_v19  ;;  %v3774_v22 = vadd.f32 %v3773_v14, %v3772_v24 }
 0x33b   : > { %v3806_v8 = vsel %vm1732_vm11, %v3802_v61, 0.0  ;;  %v3813_v30 = vsel %vm1732_vm11, %v3803_v51, 0.0  ;;  %3844 = vst [vmem:[#allocation1] ss:$2 sm:$0xff] %v3842_v47 }
 0x33c   : > { %v3807_v42 = vrot.slane %v3806_v8, 4  ;;  %v3814_v23 = vrot.slane %v3813_v30, 4  ;;  %v3768_v4 = vrot.slane %v3767_v13, 1  ;;  %v3775_v12 = vrot.slane %v3774_v22, 1 }
 0x33e   : > { %v3808_v2 = vadd.f32 %v3807_v42, %v3806_v8  ;;  %v3815_v33 = vadd.f32 %v3814_v23, %v3813_v30  ;;  %v3769_v40 = vadd.f32 %v3768_v4, %v3767_v13  ;;  %v3776_v6 = vadd.f32 %v3775_v12, %v3774_v22 }
 0x340   : > { %v3809_v55 = vrot.slane %v3808_v2, 2  ;;  %v3816_v21 = vrot.slane %v3815_v33, 2 }
 0x342   : > { %v3810_v18 = vadd.f32 %v3809_v55, %v3808_v2  ;;  %v3817_v32 = vadd.f32 %v3816_v21, %v3815_v33  ;;  %v3845_v3 = vld.sshfl [vmem:[#allocation1] sm:$0xff pattern:$0x75316420]  ;;  %v3846_v15 = vld.sshfl [vmem:[#allocation1 + $0x8] sm:$0xff pattern:$0x75316420] }
 0x343   : > { %v3849_v46 = vsel %vm1732_vm11, %v3845_v3, 0.0  ;;  %v3856_v41 = vsel %vm1732_vm11, %v3846_v15, 0.0 }
 0x344   : > { %v3850_v54 = vrot.slane %v3849_v46, 4  ;;  %v3857_v39 = vrot.slane %v3856_v41, 4  ;;  %v3811_v53 = vrot.slane %v3810_v18, 1  ;;  %v3818_v50 = vrot.slane %v3817_v32, 1 }
 0x346   : > { %v3851_v63 = vadd.f32 %v3850_v54, %v3849_v46  ;;  %v3858_v7 = vadd.f32 %v3857_v39, %v3856_v41  ;;  %v3812_v49 = vadd.f32 %v3811_v53, %v3810_v18  ;;  %v3819_v16 = vadd.f32 %v3818_v50, %v3817_v32 }
 0x348   : > { %v3852_v28 = vrot.slane %v3851_v63, 2  ;;  %v3859_v38 = vrot.slane %v3858_v7, 2  ;;  %v3863_v29 = vadd.f32 %v3812_v49, %v3769_v40  ;;  %v3864_v27 = vadd.f32 %v3819_v16, %v3776_v6 }
 0x34a   : > { %v3853_v57 = vadd.f32 %v3852_v28, %v3851_v63  ;;  %v3860_v34 = vadd.f32 %v3859_v38, %v3858_v7 }
 0x34c   : > { %v3854_v60 = vrot.slane %v3853_v57, 1  ;;  %v3861_v36 = vrot.slane %v3860_v34, 1 }
 0x34e   : > { %v3855_v62 = vadd.f32 %v3854_v60, %v3853_v57  ;;  %v3862_v43 = vadd.f32 %v3861_v36, %v3860_v34 }
 0x350   : > { %v3865_v58 = vadd.f32 %v3863_v29, %v3855_v62  ;;  %v3866_v0 = vadd.f32 %v3864_v27, %v3862_v43 }
 0x352   : > { %v3867_v44 = vadd.f32 1e-08, %v3865_v58  ;;  %v3868_v37 = vadd.f32 1e-08, %v3866_v0 }
 0x354   : > { %4341 = vrcp.f32 %v3867_v44 }
 0x355   : > { %4343 = vrcp.f32 %v3868_v37 }
 0x35a   : > { %v4342_v11 = vpop.eup %4341 }
 0x35b   : > { %v4344_v48 = vpop.eup %4343  ;;  %v3871_v35 = vmul.f32 %v4342_v11, %v3769_v40  ;;  %v3879_v52 = vmul.f32 %v4342_v11, %v3812_v49  ;;  %v3888_v25 = vmul.f32 %v4342_v11, %v3855_v62 }
 0x35c   : > { %v3872_v9 = vmul.f32 %v4344_v48, %v3776_v6  ;;  %v3880_v1 = vmul.f32 %v4344_v48, %v3819_v16  ;;  %v3889_v59 = vmul.f32 %v4344_v48, %v3862_v43 }
 0x35e   : > { %v3875_v45 = vrot.slane %v3872_v9, 7  ;;  %v3883_v26 = vrot.slane %v3880_v1, 7  ;;  %v3892_v5 = vrot.slane %v3889_v59, 7 }
 0x360   : > { %v3876_v10 = vsel %vm438_vm1, %v3871_v35, %v3875_v45  ;;  %v3884_v20 = vsel %vm438_vm1, %v3879_v52, %v3883_v26  ;;  %v3893_v56 = vsel %vm438_vm1, %v3888_v25, %v3892_v5 }
 0x361   : > { %3878 = vst.msk [vmem:[%s233_s11] ss:$4 sm:$0x3] %vm4657_vm6, %v3876_v10 }
 0x362   : > { %4193 = vst.msk [vmem:[%s233_s11 + $0x1] ss:$4 sm:$0x3] %vm4657_vm6, %v3884_v20 }
 0x363   : > { %4194 = vst.msk [vmem:[%s233_s11 + $0x2] ss:$4 sm:$0x3] %vm4657_vm6, %v3893_v56 }
 0x364   : > { %4403 = shalt.err (!%p4400_p8)
}
 0x365   : > { %4226 = dma.vmem_to_hbm [thread:$0]  (%p4519_p11), %s3912_s12, 128, %s3914_s19, %s3898_s20  }
 0x366 PF: > { %s3925_s7 = sand.u32 1, %s4430_s15   ;;  %p4233_p10 = pnand %p4090_p9, %p4523_p12 }
 0x367   : > { %s3926_s10 = scalar_lea.sflag [#allocation5], %s3925_s7 }
 0x368   : > { %p4234_p1 = pneg %p4233_p10 }
 0x36a   : > { %4425 = dma.done.wait (%p4234_p1), %s3926_s10, 128  }
 0x36b   : > { %4427 = vsyncadd (%p4234_p1), %s3926_s10, 4294967168  ;;  %p17_p2 = scmp.ge.s32.totalorder %s4498_s21, 4   ;;  %s7068_s15 = smov %s4434_s16 }
 0x36c   : > { %s7069_s16 = smov %s4438_s17  ;;  %s7070_s17 = smov %s4510_s24 }
 0x36d   : > { %s7071_s18 = smov %s4498_s21  ;;  %19 = sbr.rel (!%p17_p2) target bundleno = 5 (0x5), region = 414 }
 0x372   :  { %3932 = vsyncpa [#allocation4], 1 }
 0x373   :  { %3934 = vsyncpa [#allocation4 + $0x1], 1 }
 0x374   :  { %3935 = vsyncpa [#allocation5], 1 }
 0x375   :  { %3937 = vsyncpa [#allocation5 + $0x1], 1 }

</bundles_post_ra>
